<compile_context>
chip_gen: v6e
topology: v6e:2x2x1
jax: 0.10.0
libtpu: 0.0.40
codegen_flags: <defaults>
</compile_context>

<pallas_src>
import math
import jax
import jax.numpy as jnp
from jax.experimental import pallas as pl
from jax.experimental.pallas import tpu as pltpu


# --------------------------- linear (matmul + bias) --------------------------

def _linear_kernel(x_ref, w_ref, b_ref, o_ref):
    # y = x @ w_t + b   (bf16 operands, f32 accumulation on the MXU),
    # stored in the output dtype (bf16 for the QKV projection, f32 for W_o).
    o_ref[...] = (jnp.dot(x_ref[...], w_ref[...],
                          preferred_element_type=jnp.float32)
                  + b_ref[...]).astype(o_ref.dtype)


def _tensorcores_per_chip():
    """2 on v7x (block counts should balance across its two TensorCores),
    1 on single-TC v5e / v6e (minimize grid steps instead)."""
    try:
        kind = jax.devices()[0].device_kind.lower()
    except Exception:
        return 1
    return 2 if "v7" in kind else 1


_NTC = _tensorcores_per_chip()


def linear_pallas(x, w_t, b, out_dtype=jnp.float32):
    """y = x @ w_t + b.   x: (M, K) bf16, w_t: (K, N) bf16 (pre-transposed),
    b: (1, N) f32.  Both grid axes are 'parallel'.  tn is one full block on
    1-TC chips and N // 2 on v7x so the two TensorCores get balanced work."""
    M, K = x.shape
    N = w_t.shape[1]
    tm = M if M <= 512 else 512
    tn = N // _NTC if (_NTC > 1 and N % (_NTC * 128) == 0) else N
    # keep the double-buffered weight block comfortably inside VMEM
    while K * tn * w_t.dtype.itemsize > (8 << 20) and tn % 256 == 0:
        tn //= 2
    grid = (pl.cdiv(M, tm), pl.cdiv(N, tn))
    return pl.pallas_call(
        _linear_kernel,
        out_shape=jax.ShapeDtypeStruct((M, N), out_dtype),
        grid=grid,
        in_specs=[
            pl.BlockSpec((tm, K), lambda m, n: (m, 0)),
            pl.BlockSpec((K, tn), lambda m, n: (0, n)),
            pl.BlockSpec((1, tn), lambda m, n: (0, n)),
        ],
        out_specs=pl.BlockSpec((tm, tn), lambda m, n: (m, n)),
        compiler_params=pltpu.CompilerParams(
            dimension_semantics=("parallel", "parallel")),
    )(x, w_t, b)


# -------------------- full S = Q K^T (sampling-score path) -------------------

def _qk_scores_kernel(q_ref, k_ref, o_ref):
    # (L, D) @ (L, D)^T -> (L, L), f32 accumulation; Q and K are read straight
    # out of the packed qkv buffer (no slice materialization).
    o_ref[...] = jax.lax.dot_general(
        q_ref[...], k_ref[...], (((1,), (1,)), ((), ())),
        preferred_element_type=jnp.float32)


def qk_scores(qkv3):
    """Unscaled per-batch S = Q @ K^T, reading Q/K from the packed (B, L, 3D)
    qkv buffer via last-axis block offsets (Q -> block 0, K -> block 1)."""
    B, L, threeD = qkv3.shape
    D = threeD // 3
    return pl.pallas_call(
        _qk_scores_kernel,
        out_shape=jax.ShapeDtypeStruct((B, L, L), jnp.float32),
        grid=(B,),
        in_specs=[
            pl.BlockSpec((None, L, D), lambda b: (b, 0, 0)),   # Q
            pl.BlockSpec((None, L, D), lambda b: (b, 0, 1)),   # K
        ],
        out_specs=pl.BlockSpec((None, L, L), lambda b: (b, 0, 0)),
        compiler_params=pltpu.CompilerParams(
            dimension_semantics=("parallel",)),
    )(qkv3, qkv3)


# ------- fused sparse attention + cumsum context + scatter (one kernel) ------

def _make_sparse_ctx_kernel(scale):
    # Finite stand-in for -inf: NaN-safe and numerically identical after exp().
    mask_val = jnp.finfo(jnp.float32).min

    def kernel(thr_col_ref, thr_row_ref, q_ref, k_ref, v_ref, o_ref):
        q = q_ref[...]            # (BU, D) bf16   selected queries, all j folded
        k = k_ref[...]            # (L, D)  bf16
        v = v_ref[...]            # (L, D)  bf16
        thr_c = thr_col_ref[...]  # (BU, 1) int32  M_top row index per selection
        thr_r = thr_row_ref[...]  # (1, BU) int32  same values, lane layout

        BU = q.shape[0]
        L = k.shape[0]

        # scores = (Q_sel @ K^T) * scale, bf16 operands / f32 accumulation.
        s = jax.lax.dot_general(q, k, (((1,), (1,)), ((), ())),
                                preferred_element_type=jnp.float32) * scale
        # ProbMask: mask columns > M_top (col 0 never masked since M_top >= 0).
        cols = jax.lax.broadcasted_iota(jnp.int32, s.shape, 1)
        s = jnp.where(cols > thr_c, mask_val, s)
        # softmax kept in f32 (v5e VPU/EUP have no bf16 path).
        s_max = jnp.max(s, axis=-1, keepdims=True)
        e = jnp.exp(s - s_max)
        attn = e * pl.reciprocal(jnp.sum(e, axis=-1, keepdims=True),
                                 approx=False)
        upd = jnp.dot(attn.astype(v.dtype), v,
                      preferred_element_type=jnp.float32)           # (BU, D)

        # Initial context = cumsum_L(V) as a lower-triangular MXU matmul.
        li = jax.lax.broadcasted_iota(jnp.int32, (L, L), 0)
        lj = jax.lax.broadcasted_iota(jnp.int32, (L, L), 1)
        tril = jnp.where(lj <= li, 1.0, 0.0).astype(v.dtype)
        ctx = jnp.dot(tril, v, preferred_element_type=jnp.float32)  # (L, D)

        # In-kernel scatter of the updates at rows M_top (last-write-wins,
        # matching index_put_'s "some consistent resolution") via one-hot matmul.
        rows = jax.lax.broadcasted_iota(jnp.int32, (L, BU), 0)
        kks = jax.lax.broadcasted_iota(jnp.int32, (L, BU), 1)
        kk_last = jnp.max(jnp.where(rows == thr_r, kks, -1),
                          axis=-1, keepdims=True)                   # (L, 1)
        onehot = jnp.where(kks == kk_last, 1.0, 0.0).astype(v.dtype)
        scattered = jnp.dot(onehot, upd.astype(v.dtype),
                            preferred_element_type=jnp.float32)     # (L, D)
        ctx = jnp.where(kk_last >= 0, scattered, ctx)

        o_ref[...] = ctx.astype(o_ref.dtype)                        # (L, D) bf16

    return kernel


def sparse_context(thr_col, thr_row, q_sel, qkv3, scale):
    """One grid step per batch i: Q_sel @ K^T + scale + ProbMask + softmax +
    attn @ V, fused with the cumsum initial context and the row scatter, all
    reading K/V directly from the packed qkv buffer and writing the full
    (1, L, D) context block (lane-dense, bf16).

    thr_col: (B*u, 1) int32, thr_row: (1, B*u) int32  (flattened M_top)
    q_sel:   (B, B*u, D) bf16   q[i, M_top[j, kk], :]   (H==1 squeeze quirk)
    qkv3:    (B, L, 3D)  bf16   packed Q|K|V
    returns  (B, L, D)   bf16 context
    """
    B, BU, D = q_sel.shape
    L = qkv3.shape[1]
    # TODO(synk): for large L add an L ("arbitrary") grid axis with flash-style
    # running max/sum scratch so the K/V blocks stay bounded on v7x's 64 MiB VMEM.
    return pl.pallas_call(
        _make_sparse_ctx_kernel(scale),
        out_shape=jax.ShapeDtypeStruct((B, L, D), jnp.bfloat16),
        grid=(B,),
        in_specs=[
            pl.BlockSpec((BU, 1), lambda i: (0, 0)),
            pl.BlockSpec((1, BU), lambda i: (0, 0)),
            pl.BlockSpec((None, BU, D), lambda i: (i, 0, 0)),   # Q_sel
            pl.BlockSpec((None, L, D), lambda i: (i, 0, 1)),    # K from qkv
            pl.BlockSpec((None, L, D), lambda i: (i, 0, 2)),    # V from qkv
        ],
        out_specs=pl.BlockSpec((None, L, D), lambda i: (i, 0, 0)),
        compiler_params=pltpu.CompilerParams(
            dimension_semantics=("parallel",)),
    )(thr_col, thr_row, q_sel, qkv3, qkv3)


# ----------------------------- parameters ------------------------------------

def init_params(key, d_model=512):
    """Deterministic nn.Linear-style init: U(-1/sqrt(in), 1/sqrt(in)).
    Weights are stored pre-transposed, Q/K/V pre-concatenated, and pre-cast to
    bf16 so the forward never transposes or re-casts weights."""
    ks = jax.random.split(key, 8)
    bound = 1.0 / math.sqrt(d_model)

    def lin(kw, kb):
        W = jax.random.uniform(kw, (d_model, d_model), jnp.float32, -bound, bound)
        b = jax.random.uniform(kb, (d_model,), jnp.float32, -bound, bound)
        return W, b

    Wq, bq = lin(ks[0], ks[1])
    Wk, bk = lin(ks[2], ks[3])
    Wv, bv = lin(ks[4], ks[5])
    Wo, bo = lin(ks[6], ks[7])
    return dict(
        Wqkv_t=jnp.concatenate([Wq.T, Wk.T, Wv.T], axis=1).astype(jnp.bfloat16),
        bqkv=jnp.concatenate([bq, bk, bv]).reshape(1, 3 * d_model),
        Wo_t=jnp.asarray(Wo.T, jnp.bfloat16),
        bo=bo.reshape(1, d_model),
    )


# ----------------------------- forward pass -----------------------------------

def prob_attention_forward(params, x, sample_key, factor=5, scale=None):
    """ProbAttention.forward with keys=values=queries, mask_flag=True,
    output_attention=False (the module defaults)."""
    B, L, D = x.shape

    # Fused bf16 Q/K/V projection, kept packed as (B, L, 3D) — never sliced.
    x2 = x.reshape(B * L, D).astype(jnp.bfloat16)
    qkv = linear_pallas(x2, params["Wqkv_t"], params["bqkv"],
                        out_dtype=jnp.bfloat16)                 # (B*L, 3D) bf16
    qkv3 = qkv.reshape(B, L, 3 * D)

    # --- _prob_QK sampling / top-k --------------------------------------------
    # Small-L path: compute the full S = Q K^T once (Pallas) and sample columns.
    # TODO(synk): for large L, replace with a Pallas kernel that DMA-gathers the
    # sampled K rows per Q tile (scalar-prefetched sample_idx) instead of full S.
    S = qk_scores(qkv3)                                          # (B, L, L) f32
    U_part = min(int(factor * math.ceil(math.log(L))), L)
    u = U_part
    # torch.randint(L_K, (L_Q, sample_k)) -> deterministic JAX equivalent.
    sample_idx = jax.random.randint(sample_key, (L, U_part), 0, L)
    QKs = jnp.take_along_axis(
        S, jnp.broadcast_to(sample_idx[None], (B, L, U_part)), axis=2)
    Mmeas = jnp.max(QKs, axis=-1) - jnp.sum(QKs, axis=-1) / L    # (B, L)
    _, M_top = jax.lax.top_k(Mmeas, u)                           # (B, u)

    sc = scale if scale is not None else 1.0 / math.sqrt(D)

    # H==1 squeeze quirk: selected rows q[i, M_top[j, kk], :] — fold the
    # broadcasted (j, kk) axes so one kernel step per i handles all B*u rows.
    idx_flat = M_top.reshape(B * u).astype(jnp.int32)
    thr_col = idx_flat.reshape(B * u, 1)
    thr_row = idx_flat.reshape(1, B * u)
    q_sel = qkv3[:, idx_flat, :D]                                # (B, B*u, D) bf16

    # Fused scores + ProbMask + softmax + attn@V + cumsum-context + scatter.
    context = sparse_context(thr_col, thr_row, q_sel, qkv3, sc)  # (B, L, D) bf16

    # Output projection W_o (f32 output, no extra cast on the bf16 context).
    out = linear_pallas(context.reshape(B * L, D), params["Wo_t"], params["bo"],
                        out_dtype=jnp.float32)
    out = out.reshape(B, L, D)
    attn = None  # output_attention=False
    return out, attn


# ----------------------------- main -------------------------------------------

if __name__ == "__main__":
    B, L, D = 2, 16, 512   # D fixed to 512 by the module's Linear(512, 512)
    root = jax.random.PRNGKey(0)
    k_x, k_p, k_s = jax.random.split(root, 3)

    x = jax.random.normal(k_x, (B, L, D), jnp.float32)
    params = init_params(k_p, D)

    fwd = jax.jit(prob_attention_forward)   # glue + pallas_calls under one jit
    out, attn = fwd(params, x, k_s)
    out = jax.block_until_ready(out)

    assert out.shape == (B, L, D)
    assert bool(jnp.all(jnp.isfinite(out)))
    print("KERNEL_OK")
</pallas_src>

<mosaic_0001>
module attributes {stable_mosaic.version = 11 : i64} {
  func.func @_linear_kernel(%arg0: i32, %arg1: i32, %arg2: memref<32x512xbf16, #tpu.memory_space<vmem>>, %arg3: memref<512x1536xbf16, #tpu.memory_space<vmem>>, %arg4: memref<1x1536xf32, #tpu.memory_space<vmem>>, %arg5: memref<32x1536xbf16, #tpu.memory_space<vmem>>) attributes {dimension_semantics = [#tpu.dimension_semantics<parallel>, #tpu.dimension_semantics<parallel>], iteration_bounds = array<i64: 1, 1>, scalar_prefetch = 0 : i64, scratch_operands = 0 : i64, tpu.core_type = #tpu.core_type<tc>, window_params = [{transform_indices = @transform_0, window_bounds = array<i64: 32, 512>}, {transform_indices = @transform_1, window_bounds = array<i64: 512, 1536>}, {transform_indices = @transform_2, window_bounds = array<i64: 1, 1536>}, {transform_indices = @transform_3, window_bounds = array<i64: 32, 1536>}]} {
    %c0 = arith.constant 0 : index
    %c0_0 = arith.constant 0 : index
    %0 = vector.load %arg2[%c0, %c0_0] : memref<32x512xbf16, #tpu.memory_space<vmem>>, vector<32x512xbf16>
    %c0_1 = arith.constant 0 : index
    %c0_2 = arith.constant 0 : index
    %1 = vector.load %arg3[%c0_1, %c0_2] : memref<512x1536xbf16, #tpu.memory_space<vmem>>, vector<512x1536xbf16>
    %cst = arith.constant dense<0.000000e+00> : vector<32x1536xf32>
    %2 = tpu.matmul %0, %1, %cst {dimension_numbers = #tpu.dot_dimension_numbers<[1], [0], [0], [1], [0, 0, 1, 1], [], []>} : vector<32x512xbf16>, vector<512x1536xbf16>, vector<32x1536xf32> -> vector<32x1536xf32>
    %c0_3 = arith.constant 0 : index
    %c0_4 = arith.constant 0 : index
    %3 = vector.load %arg4[%c0_3, %c0_4] : memref<1x1536xf32, #tpu.memory_space<vmem>>, vector<1x1536xf32>
    %4 = vector.broadcast %3 : vector<1x1536xf32> to vector<32x1536xf32>
    %5 = arith.addf %2, %4 : vector<32x1536xf32>
    %6 = arith.truncf %5 : vector<32x1536xf32> to vector<32x1536xbf16>
    %c0_5 = arith.constant 0 : index
    %c0_6 = arith.constant 0 : index
    %7 = vector.load %arg5[%c0_5, %c0_6] : memref<32x1536xbf16, #tpu.memory_space<vmem>>, vector<32x1536xbf16>
    tpu.vector_store %arg5[%c0_5, %c0_6], %6 {strides = array<i32>} : memref<32x1536xbf16, #tpu.memory_space<vmem>>, vector<32x1536xbf16>,
    return
  }
  func.func @transform_0(%arg0: i32, %arg1: i32) -> (i32, i32) {
    %c0_i32 = arith.constant 0 : i32
    %c0_i32_0 = arith.constant 0 : i32
    return %arg0, %c0_i32 : i32, i32
  }
  func.func @transform_1(%arg0: i32, %arg1: i32) -> (i32, i32) {
    %c0_i32 = arith.constant 0 : i32
    %c0_i32_0 = arith.constant 0 : i32
    return %c0_i32, %arg1 : i32, i32
  }
  func.func @transform_2(%arg0: i32, %arg1: i32) -> (i32, i32) {
    %c0_i32 = arith.constant 0 : i32
    %c0_i32_0 = arith.constant 0 : i32
    return %c0_i32, %arg1 : i32, i32
  }
  func.func @transform_3(%arg0: i32, %arg1: i32) -> (i32, i32) {
    %c0_i32 = arith.constant 0 : i32
    return %arg0, %arg1 : i32, i32
  }
}

module attributes {stable_mosaic.version = 11 : i64} {
  func.func @_qk_scores_kernel(%arg0: i32, %arg1: memref<1x16x512xbf16, #tpu.memory_space<vmem>>, %arg2: memref<1x16x512xbf16, #tpu.memory_space<vmem>>, %arg3: memref<1x16x16xf32, #tpu.memory_space<vmem>>) attributes {dimension_semantics = [#tpu.dimension_semantics<parallel>], iteration_bounds = array<i64: 2>, scalar_prefetch = 0 : i64, scratch_operands = 0 : i64, tpu.core_type = #tpu.core_type<tc>, window_params = [{transform_indices = @transform_0, window_bounds = array<i64: 1, 16, 512>}, {transform_indices = @transform_1, window_bounds = array<i64: 1, 16, 512>}, {transform_indices = @transform_2, window_bounds = array<i64: 1, 16, 16>}]} {
    %c0 = arith.constant 0 : index
    %c0_0 = arith.constant 0 : index
    %c0_1 = arith.constant 0 : index
    %0 = vector.load %arg1[%c0, %c0_0, %c0_1] : memref<1x16x512xbf16, #tpu.memory_space<vmem>>, vector<1x16x512xbf16>
    %1 = vector.shape_cast %0 : vector<1x16x512xbf16> to vector<16x512xbf16>
    %c0_2 = arith.constant 0 : index
    %c0_3 = arith.constant 0 : index
    %c0_4 = arith.constant 0 : index
    %2 = vector.load %arg2[%c0_2, %c0_3, %c0_4] : memref<1x16x512xbf16, #tpu.memory_space<vmem>>, vector<1x16x512xbf16>
    %3 = vector.shape_cast %2 : vector<1x16x512xbf16> to vector<16x512xbf16>
    %cst = arith.constant dense<0.000000e+00> : vector<16x16xf32>
    %4 = tpu.matmul %1, %3, %cst {dimension_numbers = #tpu.dot_dimension_numbers<[1], [1], [0], [0], [0, 0, 1, 0], [], []>} : vector<16x512xbf16>, vector<16x512xbf16>, vector<16x16xf32> -> vector<16x16xf32>
    %c0_5 = arith.constant 0 : index
    %c0_6 = arith.constant 0 : index
    %c0_7 = arith.constant 0 : index
    %5 = vector.load %arg3[%c0_5, %c0_6, %c0_7] : memref<1x16x16xf32, #tpu.memory_space<vmem>>, vector<1x16x16xf32>
    %6 = vector.shape_cast %5 : vector<1x16x16xf32> to vector<16x16xf32>
    %7 = vector.shape_cast %4 : vector<16x16xf32> to vector<1x16x16xf32>
    tpu.vector_store %arg3[%c0_5, %c0_6, %c0_7], %7 {strides = array<i32>} : memref<1x16x16xf32, #tpu.memory_space<vmem>>, vector<1x16x16xf32>,
    return
  }
  func.func @transform_0(%arg0: i32) -> (i32, i32, i32) {
    %c0_i32 = arith.constant 0 : i32
    %c0_i32_0 = arith.constant 0 : i32
    %c0_i32_1 = arith.constant 0 : i32
    return %arg0, %c0_i32, %c0_i32_0 : i32, i32, i32
  }
  func.func @transform_1(%arg0: i32) -> (i32, i32, i32) {
    %c0_i32 = arith.constant 0 : i32
    %c1_i32 = arith.constant 1 : i32
    %c0_i32_0 = arith.constant 0 : i32
    return %arg0, %c0_i32, %c1_i32 : i32, i32, i32
  }
  func.func @transform_2(%arg0: i32) -> (i32, i32, i32) {
    %c0_i32 = arith.constant 0 : i32
    %c0_i32_0 = arith.constant 0 : i32
    %c0_i32_1 = arith.constant 0 : i32
    return %arg0, %c0_i32, %c0_i32_0 : i32, i32, i32
  }
}

module attributes {stable_mosaic.version = 11 : i64} {
  func.func @kernel(%arg0: i32, %arg1: memref<30x1xi32, #tpu.memory_space<vmem>>, %arg2: memref<1x30xi32, #tpu.memory_space<vmem>>, %arg3: memref<1x30x512xbf16, #tpu.memory_space<vmem>>, %arg4: memref<1x16x512xbf16, #tpu.memory_space<vmem>>, %arg5: memref<1x16x512xbf16, #tpu.memory_space<vmem>>, %arg6: memref<1x16x512xbf16, #tpu.memory_space<vmem>>) attributes {dimension_semantics = [#tpu.dimension_semantics<parallel>], iteration_bounds = array<i64: 2>, scalar_prefetch = 0 : i64, scratch_operands = 0 : i64, tpu.core_type = #tpu.core_type<tc>, window_params = [{pipeline_mode = #tpu.pipeline_mode<synchronous>, transform_indices = @transform_0, window_bounds = array<i64: 30, 1>}, {pipeline_mode = #tpu.pipeline_mode<synchronous>, transform_indices = @transform_1, window_bounds = array<i64: 1, 30>}, {transform_indices = @transform_2, window_bounds = array<i64: 1, 30, 512>}, {transform_indices = @transform_3, window_bounds = array<i64: 1, 16, 512>}, {transform_indices = @transform_4, window_bounds = array<i64: 1, 16, 512>}, {transform_indices = @transform_5, window_bounds = array<i64: 1, 16, 512>}]} {
    %c0 = arith.constant 0 : index
    %c0_0 = arith.constant 0 : index
    %c0_1 = arith.constant 0 : index
    %0 = vector.load %arg3[%c0, %c0_0, %c0_1] : memref<1x30x512xbf16, #tpu.memory_space<vmem>>, vector<1x30x512xbf16>
    %1 = vector.shape_cast %0 : vector<1x30x512xbf16> to vector<30x512xbf16>
    %c0_2 = arith.constant 0 : index
    %c0_3 = arith.constant 0 : index
    %c0_4 = arith.constant 0 : index
    %2 = vector.load %arg4[%c0_2, %c0_3, %c0_4] : memref<1x16x512xbf16, #tpu.memory_space<vmem>>, vector<1x16x512xbf16>
    %3 = vector.shape_cast %2 : vector<1x16x512xbf16> to vector<16x512xbf16>
    %c0_5 = arith.constant 0 : index
    %c0_6 = arith.constant 0 : index
    %c0_7 = arith.constant 0 : index
    %4 = vector.load %arg5[%c0_5, %c0_6, %c0_7] : memref<1x16x512xbf16, #tpu.memory_space<vmem>>, vector<1x16x512xbf16>
    %5 = vector.shape_cast %4 : vector<1x16x512xbf16> to vector<16x512xbf16>
    %c0_8 = arith.constant 0 : index
    %c0_9 = arith.constant 0 : index
    %6 = vector.load %arg1[%c0_8, %c0_9] : memref<30x1xi32, #tpu.memory_space<vmem>>, vector<30x1xi32>
    %c0_10 = arith.constant 0 : index
    %c0_11 = arith.constant 0 : index
    %7 = vector.load %arg2[%c0_10, %c0_11] : memref<1x30xi32, #tpu.memory_space<vmem>>, vector<1x30xi32>
    %cst = arith.constant dense<0.000000e+00> : vector<30x16xf32>
    %8 = tpu.matmul %1, %3, %cst {dimension_numbers = #tpu.dot_dimension_numbers<[1], [1], [0], [0], [0, 0, 1, 0], [], []>} : vector<30x512xbf16>, vector<16x512xbf16>, vector<30x16xf32> -> vector<30x16xf32>
    %cst_12 = arith.constant 0.0441941731 : f32
    %9 = vector.broadcast %cst_12 : f32 to vector<30x16xf32>
    %10 = arith.mulf %8, %9 : vector<30x16xf32>
    %11 = tpu.iota {dimensions = array<i32: 1>} : vector<30x16xi32>
    %12 = vector.broadcast %6 : vector<30x1xi32> to vector<30x16xi32>
    %13 = arith.cmpi sgt, %11, %12 : vector<30x16xi32>
    %cst_13 = arith.constant -3.40282347E+38 : f32
    %14 = vector.broadcast %cst_13 : f32 to vector<30x16xf32>
    %15 = arith.select %13, %14, %10 : vector<30x16xi1>, vector<30x16xf32>
    %cst_14 = arith.constant dense<0xFF800000> : vector<30xf32>
    %16 = vector.multi_reduction <maximumf>, %15, %cst_14 [1] : vector<30x16xf32> to vector<30xf32>
    %17 = vector.shape_cast %16 : vector<30xf32> to vector<30x1xf32>
    %18 = vector.broadcast %17 : vector<30x1xf32> to vector<30x16xf32>
    %19 = arith.subf %15, %18 : vector<30x16xf32>
    %20 = math.exp %19 : vector<30x16xf32>
    %cst_15 = arith.constant dense<0.000000e+00> : vector<30xf32>
    %21 = vector.multi_reduction <add>, %20, %cst_15 [1] : vector<30x16xf32> to vector<30xf32>
    %22 = vector.shape_cast %21 : vector<30xf32> to vector<30x1xf32>
    %23 = tpu.reciprocal %22 : vector<30x1xf32> -> vector<30x1xf32>
    %24 = vector.broadcast %23 : vector<30x1xf32> to vector<30x16xf32>
    %25 = arith.mulf %20, %24 : vector<30x16xf32>
    %26 = arith.truncf %25 : vector<30x16xf32> to vector<30x16xbf16>
    %cst_16 = arith.constant dense<0.000000e+00> : vector<30x512xf32>
    %27 = tpu.matmul %26, %5, %cst_16 {dimension_numbers = #tpu.dot_dimension_numbers<[1], [0], [0], [1], [0, 0, 1, 1], [], []>} : vector<30x16xbf16>, vector<16x512xbf16>, vector<30x512xf32> -> vector<30x512xf32>
    %28 = tpu.iota {dimensions = array<i32: 0>} : vector<16x16xi32>
    %29 = tpu.iota {dimensions = array<i32: 1>} : vector<16x16xi32>
    %30 = arith.cmpi sle, %29, %28 : vector<16x16xi32>
    %cst_17 = arith.constant 1.000000e+00 : f32
    %cst_18 = arith.constant 0.000000e+00 : f32
    %31 = vector.broadcast %cst_17 : f32 to vector<16x16xf32>
    %32 = vector.broadcast %cst_18 : f32 to vector<16x16xf32>
    %33 = arith.select %30, %31, %32 : vector<16x16xi1>, vector<16x16xf32>
    %34 = arith.truncf %33 : vector<16x16xf32> to vector<16x16xbf16>
    %cst_19 = arith.constant dense<0.000000e+00> : vector<16x512xf32>
    %35 = tpu.matmul %34, %5, %cst_19 {dimension_numbers = #tpu.dot_dimension_numbers<[1], [0], [0], [1], [0, 0, 1, 1], [], []>} : vector<16x16xbf16>, vector<16x512xbf16>, vector<16x512xf32> -> vector<16x512xf32>
    %36 = tpu.iota {dimensions = array<i32: 0>} : vector<16x30xi32>
    %37 = tpu.iota {dimensions = array<i32: 1>} : vector<16x30xi32>
    %38 = vector.broadcast %7 : vector<1x30xi32> to vector<16x30xi32>
    %39 = arith.cmpi eq, %36, %38 : vector<16x30xi32>
    %c-1_i32 = arith.constant -1 : i32
    %40 = vector.broadcast %c-1_i32 : i32 to vector<16x30xi32>
    %41 = arith.select %39, %37, %40 : vector<16x30xi1>, vector<16x30xi32>
    %cst_20 = arith.constant dense<-2147483648> : vector<16xi32>
    %42 = vector.multi_reduction <maxsi>, %41, %cst_20 [1] : vector<16x30xi32> to vector<16xi32>
    %43 = vector.shape_cast %42 : vector<16xi32> to vector<16x1xi32>
    %44 = vector.broadcast %43 : vector<16x1xi32> to vector<16x30xi32>
    %45 = arith.cmpi eq, %37, %44 : vector<16x30xi32>
    %cst_21 = arith.constant 1.000000e+00 : f32
    %cst_22 = arith.constant 0.000000e+00 : f32
    %46 = vector.broadcast %cst_21 : f32 to vector<16x30xf32>
    %47 = vector.broadcast %cst_22 : f32 to vector<16x30xf32>
    %48 = arith.select %45, %46, %47 : vector<16x30xi1>, vector<16x30xf32>
    %49 = arith.truncf %48 : vector<16x30xf32> to vector<16x30xbf16>
    %50 = arith.truncf %27 : vector<30x512xf32> to vector<30x512xbf16>
    %cst_23 = arith.constant dense<0.000000e+00> : vector<16x512xf32>
    %51 = tpu.matmul %49, %50, %cst_23 {dimension_numbers = #tpu.dot_dimension_numbers<[1], [0], [0], [1], [0, 0, 1, 1], [], []>} : vector<16x30xbf16>, vector<30x512xbf16>, vector<16x512xf32> -> vector<16x512xf32>
    %c0_i32 = arith.constant 0 : i32
    %52 = vector.broadcast %c0_i32 : i32 to vector<16x1xi32>
    %53 = arith.cmpi sge, %43, %52 : vector<16x1xi32>
    %54 = vector.shape_cast %53 : vector<16x1xi1> to vector<16x1xi1>
    %55 = vector.broadcast %54 : vector<16x1xi1> to vector<16x512xi1>
    %56 = arith.select %55, %51, %35 : vector<16x512xi1>, vector<16x512xf32>
    %57 = arith.truncf %56 : vector<16x512xf32> to vector<16x512xbf16>
    %c0_24 = arith.constant 0 : index
    %c0_25 = arith.constant 0 : index
    %c0_26 = arith.constant 0 : index
    %58 = vector.load %arg6[%c0_24, %c0_25, %c0_26] : memref<1x16x512xbf16, #tpu.memory_space<vmem>>, vector<1x16x512xbf16>
    %59 = vector.shape_cast %58 : vector<1x16x512xbf16> to vector<16x512xbf16>
    %60 = vector.shape_cast %57 : vector<16x512xbf16> to vector<1x16x512xbf16>
    tpu.vector_store %arg6[%c0_24, %c0_25, %c0_26], %60 {strides = array<i32>} : memref<1x16x512xbf16, #tpu.memory_space<vmem>>, vector<1x16x512xbf16>,
    return
  }
  func.func @transform_0(%arg0: i32) -> (i32, i32) {
    %c0_i32 = arith.constant 0 : i32
    %c0_i32_0 = arith.constant 0 : i32
    %c0_i32_1 = arith.constant 0 : i32
    return %c0_i32, %c0_i32_0 : i32, i32
  }
  func.func @transform_1(%arg0: i32) -> (i32, i32) {
    %c0_i32 = arith.constant 0 : i32
    %c0_i32_0 = arith.constant 0 : i32
    %c0_i32_1 = arith.constant 0 : i32
    return %c0_i32, %c0_i32_0 : i32, i32
  }
  func.func @transform_2(%arg0: i32) -> (i32, i32, i32) {
    %c0_i32 = arith.constant 0 : i32
    %c0_i32_0 = arith.constant 0 : i32
    %c0_i32_1 = arith.constant 0 : i32
    return %arg0, %c0_i32, %c0_i32_0 : i32, i32, i32
  }
  func.func @transform_3(%arg0: i32) -> (i32, i32, i32) {
    %c0_i32 = arith.constant 0 : i32
    %c1_i32 = arith.constant 1 : i32
    %c0_i32_0 = arith.constant 0 : i32
    return %arg0, %c0_i32, %c1_i32 : i32, i32, i32
  }
  func.func @transform_4(%arg0: i32) -> (i32, i32, i32) {
    %c0_i32 = arith.constant 0 : i32
    %c2_i32 = arith.constant 2 : i32
    %c0_i32_0 = arith.constant 0 : i32
    return %arg0, %c0_i32, %c2_i32 : i32, i32, i32
  }
  func.func @transform_5(%arg0: i32) -> (i32, i32, i32) {
    %c0_i32 = arith.constant 0 : i32
    %c0_i32_0 = arith.constant 0 : i32
    %c0_i32_1 = arith.constant 0 : i32
    return %arg0, %c0_i32, %c0_i32_0 : i32, i32, i32
  }
}

module attributes {stable_mosaic.version = 11 : i64} {
  func.func @_linear_kernel(%arg0: i32, %arg1: i32, %arg2: memref<32x512xbf16, #tpu.memory_space<vmem>>, %arg3: memref<512x512xbf16, #tpu.memory_space<vmem>>, %arg4: memref<1x512xf32, #tpu.memory_space<vmem>>, %arg5: memref<32x512xf32, #tpu.memory_space<vmem>>) attributes {dimension_semantics = [#tpu.dimension_semantics<parallel>, #tpu.dimension_semantics<parallel>], iteration_bounds = array<i64: 1, 1>, scalar_prefetch = 0 : i64, scratch_operands = 0 : i64, tpu.core_type = #tpu.core_type<tc>, window_params = [{transform_indices = @transform_0, window_bounds = array<i64: 32, 512>}, {transform_indices = @transform_1, window_bounds = array<i64: 512, 512>}, {transform_indices = @transform_2, window_bounds = array<i64: 1, 512>}, {transform_indices = @transform_3, window_bounds = array<i64: 32, 512>}]} {
    %c0 = arith.constant 0 : index
    %c0_0 = arith.constant 0 : index
    %0 = vector.load %arg2[%c0, %c0_0] : memref<32x512xbf16, #tpu.memory_space<vmem>>, vector<32x512xbf16>
    %c0_1 = arith.constant 0 : index
    %c0_2 = arith.constant 0 : index
    %1 = vector.load %arg3[%c0_1, %c0_2] : memref<512x512xbf16, #tpu.memory_space<vmem>>, vector<512x512xbf16>
    %cst = arith.constant dense<0.000000e+00> : vector<32x512xf32>
    %2 = tpu.matmul %0, %1, %cst {dimension_numbers = #tpu.dot_dimension_numbers<[1], [0], [0], [1], [0, 0, 1, 1], [], []>} : vector<32x512xbf16>, vector<512x512xbf16>, vector<32x512xf32> -> vector<32x512xf32>
    %c0_3 = arith.constant 0 : index
    %c0_4 = arith.constant 0 : index
    %3 = vector.load %arg4[%c0_3, %c0_4] : memref<1x512xf32, #tpu.memory_space<vmem>>, vector<1x512xf32>
    %4 = vector.broadcast %3 : vector<1x512xf32> to vector<32x512xf32>
    %5 = arith.addf %2, %4 : vector<32x512xf32>
    %c0_5 = arith.constant 0 : index
    %c0_6 = arith.constant 0 : index
    %6 = vector.load %arg5[%c0_5, %c0_6] : memref<32x512xf32, #tpu.memory_space<vmem>>, vector<32x512xf32>
    tpu.vector_store %arg5[%c0_5, %c0_6], %5 {strides = array<i32>} : memref<32x512xf32, #tpu.memory_space<vmem>>, vector<32x512xf32>,
    return
  }
  func.func @transform_0(%arg0: i32, %arg1: i32) -> (i32, i32) {
    %c0_i32 = arith.constant 0 : i32
    %c0_i32_0 = arith.constant 0 : i32
    return %arg0, %c0_i32 : i32, i32
  }
  func.func @transform_1(%arg0: i32, %arg1: i32) -> (i32, i32) {
    %c0_i32 = arith.constant 0 : i32
    %c0_i32_0 = arith.constant 0 : i32
    return %c0_i32, %arg1 : i32, i32
  }
  func.func @transform_2(%arg0: i32, %arg1: i32) -> (i32, i32) {
    %c0_i32 = arith.constant 0 : i32
    %c0_i32_0 = arith.constant 0 : i32
    return %c0_i32, %arg1 : i32, i32
  }
  func.func @transform_3(%arg0: i32, %arg1: i32) -> (i32, i32) {
    %c0_i32 = arith.constant 0 : i32
    return %arg0, %arg1 : i32, i32
  }
}

</mosaic_0001>

<bundles_post_ra>
// kernel: prob_attention_forward.5
= control target key start
LH: loop header
LB: loop body
LE: loop exit
PB: predicated region body
PF: predicated region fallthrough
CT: control target
= control target key end

     0   :  { %s536_s9 = smov 0   ;;  %s538_s10 = smov 0   ;;  %s603_s0 = inlined_call_operand.vmem [shape: bf16[2,16,1536], index: 0, kind: input, shape index: {}, may-alias: {0,1}]   ;;  %s604_s1 = inlined_call_operand.vmem [shape: bf16[2,16,1536], index: 1, kind: input, shape index: {}, may-alias: {0,1}]   ;;  %s605_s2 = inlined_call_operand.vmem [shape: f32[2,16,16], index: 2, kind: output, shape index: {}]  }
   0x1   :  { %s540_s11 = smov 0  }
   0x2 LB: > { %s432_s12 = sadd.s32 4294967295, %s519_s11   ;;  %s553_s13 = sadd.s32 1, %s519_s11   ;;  %s519_s11 = sphi %s540_s11, %s609_s11   ;;  %s515_s10 = sphi %s538_s10, %s608_s10   ;;  %s511_s9 = sphi %s536_s9, %s607_s9  }
   0x3   : > { %s16_s14 = ssub.s32 %s519_s11, %s553_s13  ;;  %s19_s15 = sadd.s32 1, %s515_s10 }
   0x4   : > { %p17_p0 = scmp.eq.s32.totalorder %s16_s14, 0  ;;  %p26_p1 = scmp.ne.s32.totalorder %s515_s10, %s511_s9 }
   0x5   : > { %p27_p2 = scmp.eq.s32.totalorder %s519_s11, 0  ;;  %p435_p4 = scmp.ge.s32.totalorder %s519_s11, 2 }
   0x6   : > { %s562_s16 = scalar_select %p17_p0, %s515_s10, %s19_s15  }
   0x7   : > { %p564_p3 = por %p27_p2, %p26_p1  ;;  %104 = sbr.rel (%p435_p4) target bundleno = 26 (0x1a), region = 16 }
   0xc   : > { %107 = sbr.rel (!%p564_p3) target bundleno = 19 (0x13), region = 20  ;;  %s109_s18 = sand.u32 (%p564_p3), 1, %s515_s10  }
   0xd   : > { %s460_s19 = smul.u32 (%p564_p3), 96, %s519_s11  ;;  %s436_s20 = sshll.u32 (%p564_p3), %s109_s18, 5 }
   0xe   : > { %s111_s24 = scalar_lea.vmem (%p564_p3), [#allocation2], %s436_s20 }
   0xf   : > { %s114_s23 = scalar_lea.vmem (%p564_p3), %s603_s0, %s460_s19 }
  0x10   : > { %v127_v0 = vld [vmem:[%s114_s23] sm:$0xff] (%p564_p3)  ;;  %v129_v1 = vld [vmem:[%s114_s23 + $0x8] sm:$0xff] (%p564_p3)  ;;  %v131_v2 = vld [vmem:[%s114_s23 + $0x30] sm:$0xff] (%p564_p3) }
  0x11   : > { %128 = vst [vmem:[%s111_s24] sm:$0xff] %v127_v0  ;;  %130 = vst [vmem:[%s111_s24 + $0x8] sm:$0xff] %v129_v1  ;;  %v133_v3 = vld [vmem:[%s114_s23 + $0x38] sm:$0xff] }
  0x12   : > { %132 = vst [vmem:[%s111_s24 + $0x10] sm:$0xff] %v131_v2  ;;  %134 = vst [vmem:[%s111_s24 + $0x18] sm:$0xff] %v133_v3 }
  0x13 PF: > { %140 = sbr.rel (!%p564_p3) target bundleno = 26 (0x1a), region = 43  ;;  %s142_s25 = sand.u32 (%p564_p3), 1, %s515_s10  }
  0x14   : > { %s439_s26 = smul.u32 (%p564_p3), 96, %s519_s11  ;;  %s438_s27 = sshll.u32 (%p564_p3), %s142_s25, 5 }
  0x15   : > { %s144_s3 = scalar_lea.vmem (%p564_p3), [#allocation3], %s438_s27 }
  0x16   : > { %s380_s30 = scalar_lea.vmem (%p564_p3), %s604_s1, %s439_s26 }
  0x17   : > { %v440_v4 = vld [vmem:[%s380_s30 + $0x10] sm:$0xff] (%p564_p3)  ;;  %v441_v5 = vld [vmem:[%s380_s30 + $0x18] sm:$0xff] (%p564_p3)  ;;  %v442_v6 = vld [vmem:[%s380_s30 + $0x40] sm:$0xff] (%p564_p3) }
  0x18   : > { %162 = vst [vmem:[%s144_s3] sm:$0xff] %v440_v4  ;;  %164 = vst [vmem:[%s144_s3 + $0x8] sm:$0xff] %v441_v5  ;;  %v443_v7 = vld [vmem:[%s380_s30 + $0x48] sm:$0xff] }
  0x19   : > { %166 = vst [vmem:[%s144_s3 + $0x10] sm:$0xff] %v442_v6  ;;  %168 = vst [vmem:[%s144_s3 + $0x18] sm:$0xff] %v443_v7 }
  0x1a PF: > { %p444_p5 = scmp.ge.s32.totalorder %s519_s11, 1  ;;  %p173_p6 = scmp.lt.s32.totalorder %s519_s11, 3 }
  0x1c   : > { %p174_p7 = pnand %p444_p5, %p173_p6 }
  0x1d   : > { %s180_s4 = sand.u32 (!%p174_p7), 1, %s511_s9   ;;  %p212_p8 = scmp.lt.s32.totalorder (!%p174_p7), %s432_s12, 1 }
  0x1e   : > { %177 = sbr.rel (%p174_p7) target bundleno = 244 (0xf4), region = 66  ;;  %s445_s5 = sshll.u32 (!%p174_p7), %s180_s4, 5 }
  0x1f   : > { %s189_s6 = scalar_lea.vmem (!%p174_p7), [#allocation3], %s445_s5  ;;  %s182_s7 = scalar_lea.vmem (!%p174_p7), [#allocation2], %s445_s5 }
  0x23   : > { %v485_v8 = vld [vmem:[%s189_s6 + $0x4] ss:$16 sps:$4 sm:$0xff]   ;;  %v487_v9 = vld [vmem:[%s189_s6 + $0xc] ss:$16 sps:$4 sm:$0xff]   ;;  %v489_v10 = vld [vmem:[%s189_s6] ss:$16 sps:$4 sm:$0xff]  }
  0x24   : > { %280 = vmatprep.subr.bf16.mxu0 %v485_v8  ;;  %v490_v11 = vld [vmem:[%s189_s6 + $0x8] ss:$16 sps:$4 sm:$0xff]   ;;  %321 = vmatprep.subr.bf16.mxu1 %v487_v9  ;;  %v493_v12 = vld [vmem:[%s182_s7 + $0x4] ss:$16 sps:$4 sm:$0xff]   ;;  %v496_v13 = vld [vmem:[%s182_s7 + $0xc] ss:$16 sps:$4 sm:$0xff]  }
  0x25   : > { %281 = vmatpush1.bf16.xpose.msra.mxu0 %v489_v10  ;;  %322 = vmatpush1.bf16.xpose.msra.mxu1 %v490_v11  ;;  %v491_v14 = vld [vmem:[%s182_s7] ss:$16 sps:$4 sm:$0xff]   ;;  %v494_v15 = vld [vmem:[%s182_s7 + $0x8] ss:$16 sps:$4 sm:$0xff]   ;;  %s611_s12 = smov (!%p212_p8, %s432_s12), 1  ;;  %vm348_vm0 = vcmask 130048  }
  0x26   : > { %298 = vmatprep.mubr.bf16.mxu0 %v493_v12  ;;  %339 = vmatprep.mubr.bf16.mxu1 %v496_v13  ;;  %s459_s8 = sshll.u32 %s611_s12, 4 }
  0x27   : > { %s216_s15 = scalar_lea.vmem %s605_s2, %s459_s8 }
  0x2c   : > { %299 = vmatmul.mubr.bf16.vlgmr.msra.gmra.mxu0 %v491_v14  ;;  %340 = vmatmul.mubr.bf16.vlgmr.msra.gmra.mxu1 %v494_v15 }
  0xec   : > { %v300_v16 = vpop.f32.mrf.mxu0  ;;  %v341_v17 = vpop.f32.mrf.mxu1 }
  0xed   : > { %v342_v18 = vadd.f32 %v341_v17, %v300_v16 }
  0xee   : > { %v302_v19 = vpop.f32.mrf.mxu0  ;;  %v343_v20 = vpop.f32.mrf.mxu1 }
  0xef   : > { %349 = vst.msk [vmem:[%s216_s15] sm:$0xff] %vm348_vm0, %v342_v18 }
  0xf0   : > { %v303_v21 = vpop.f32.mrf.mxu0  ;;  %v344_v22 = vpop.f32.mrf.mxu1 }
  0xf1   : > { %v345_v23 = vadd.f32 %v344_v22, %v303_v21 }
  0xf2   : > { %v305_v24 = vpop.f32.mrf.mxu0  ;;  %v346_v25 = vpop.f32.mrf.mxu1 }
  0xf3   : > { %350 = vst.msk [vmem:[%s216_s15 + $0x8] sm:$0xff] %vm348_vm0, %v345_v23 }
  0xf4 PF: > { %p9_p9 = scmp.ge.s32.totalorder %s553_s13, 4   ;;  %s607_s9 = smov %s515_s10 }
  0xf5   : > { %s608_s10 = smov %s562_s16  ;;  %s609_s11 = smov %s553_s13 }
  0xf6   :  { %11 = sbr.rel (!%p9_p9) target bundleno = 2 (0x2), region = 117 }

// kernel: prob_attention_forward.4
= control target key start
LH: loop header
LB: loop body
LE: loop exit
PB: predicated region body
PF: predicated region fallthrough
CT: control target
= control target key end

     0   :  { %8 = vsyncpa [#allocation3], 0  ;;  %s4640_s0 = inlined_call_operand.vmem [shape: bf16[32,512], index: 0, kind: input, shape index: {}]   ;;  %s4641_s1 = inlined_call_operand.hbm [shape: bf16[512,1536], index: 1, kind: input, shape index: {}]   ;;  %s4642_s2 = inlined_call_operand.hbm [shape: f32[1,1536], index: 2, kind: input, shape index: {}]   ;;  %s4643_s3 = inlined_call_operand.vmem [shape: bf16[32,1536], index: 3, kind: output, shape index: {}]  }
   0x1   :  { %9 = vsyncpa [#allocation5], 0  ;;  %s4350_s12 = smov [#allocation2]  }
   0x2   :  { %s17_s13 = sshll.u32 %s4350_s12, 4  ;;  %s18_s13 = int_to_ptr.vmem [resolvable:$true] %s17_s13 }
   0x3   :  { %s4314_s14 = scalar_lea.vmem %s18_s13, 49152  ;;  %p4319_p1 = scmp.lt.s32.totalorder %s18_s13, %s18_s13 }
   0x4   :  { %p4315_p0 = scmp.ne.s32.totalorder %s18_s13, %s4314_s14  ;;  %p4320_p2 = scmp.lt.s32.totalorder %s4314_s14, %s4314_s14 }
   0x6   :  { %p4321_p3 = por %p4320_p2, %p4319_p1 }
   0x8   :  { %p4322_p4 = pnand %p4321_p3, %p4315_p0 }
   0xa   :  { %4325 = shalt.err (!%p4322_p4)
}
   0xb   :  { %s4351_s15 = smov 768   ;;  %s4352_s16 = smov 48  }
   0xc   :  { %23 = dma.hbm_to_vmem [thread:$0]  %s4641_s1, 49152, %s18_s13, [#allocation3], %s4351_s15, %s4351_s15, %s4352_s16  }
   0xd   :  { %s4353_s19 = smov [#allocation4]  }
   0xe   :  { %s30_s20 = sshll.u32 %s4353_s19, 4  ;;  %s31_s20 = int_to_ptr.vmem [resolvable:$true] %s30_s20 }
   0xf   :  { %s4334_s21 = scalar_lea.vmem %s31_s20, 192  ;;  %p4339_p6 = scmp.lt.s32.totalorder %s31_s20, %s31_s20 }
  0x10   :  { %p4335_p5 = scmp.ne.s32.totalorder %s31_s20, %s4334_s21  ;;  %p4340_p7 = scmp.lt.s32.totalorder %s4334_s21, %s4334_s21 }
  0x12   :  { %p4341_p8 = por %p4340_p7, %p4339_p6 }
  0x14   :  { %p4342_p9 = pnand %p4341_p8, %p4335_p5 }
  0x16   :  { %4345 = shalt.err (!%p4342_p9)
}
  0x17   :  { %33 = dma.hbm_to_vmem [thread:$0]  %s4642_s2, 192, %s31_s20, [#allocation5]  }
  0x18   :  { %4346 = dma.done.wait [#allocation3], 49152  }
  0x19   :  { %4347 = vsyncadd [#allocation3], 4294918144 }
  0x1a   :  { %4348 = dma.done.wait [#allocation5], 192  }
  0x1b   :  { %4349 = vsyncadd [#allocation5], 4294967104  ;;  %v3710_v0 = vld [vmem:[#allocation2 + $0x2a4] ss:$48 sps:$4 sm:$0xff]   ;;  %v3714_v2 = vld [vmem:[#allocation2 + $0x2a0] ss:$48 sps:$4 sm:$0xff]  }
  0x1c   :  { %v3712_v1 = vld [vmem:[#allocation2 + $0x8a4] ss:$48 sps:$4 sm:$0xff]   ;;  %2456 = vmatprep.subr.bf16.mxu0 %v3710_v0  ;;  %v3715_v3 = vld [vmem:[#allocation2 + $0x8a0] ss:$48 sps:$4 sm:$0xff]   ;;  %v4388_v50 = vld [vmem:[%s4640_s0 + $0xc] ss:$16 sps:$4 sm:$0xff]  }
  0x1d   :  { %2509 = vmatprep.subr.bf16.mxu1 %v3712_v1  ;;  %v3716_v4 = vld [vmem:[#allocation2 + $0x244] ss:$48 sps:$4 sm:$0xff]   ;;  %2457 = vmatpush1.bf16.msra.mxu0 %v3714_v2  ;;  %v3720_v6 = vld [vmem:[#allocation2 + $0x240] ss:$48 sps:$4 sm:$0xff]   ;;  %v3814_v2 = vld [vmem:[#allocation2 + $0x2ac] ss:$48 sps:$4 sm:$0xff]  }
  0x1e   :  { %2510 = vmatpush1.bf16.msra.mxu1 %v3715_v3  ;;  %v3718_v5 = vld [vmem:[#allocation2 + $0x844] ss:$48 sps:$4 sm:$0xff]   ;;  %2458 = vmatprep.subr.bf16.mxu0 %v3716_v4  ;;  %v3721_v7 = vld [vmem:[#allocation2 + $0x840] ss:$48 sps:$4 sm:$0xff]   ;;  %v3817_v3 = vld [vmem:[#allocation2 + $0x8ac] ss:$48 sps:$4 sm:$0xff]  }
  0x1f   :  { %2511 = vmatprep.subr.bf16.mxu1 %v3718_v5  ;;  %v3722_v8 = vld [vmem:[#allocation2 + $0x1e4] ss:$48 sps:$4 sm:$0xff]   ;;  %v3726_v10 = vld [vmem:[#allocation2 + $0x1e0] ss:$48 sps:$4 sm:$0xff]   ;;  %2541 = vmatprep.mubr.bf16.mxu1 %v4388_v50  ;;  %v4400_v5 = vld [vmem:[%s4640_s0 + $0x8] ss:$16 sps:$4 sm:$0xff]  }
  0x20   :  { %v3724_v9 = vld [vmem:[#allocation2 + $0x7e4] ss:$48 sps:$4 sm:$0xff]   ;;  %v3727_v11 = vld [vmem:[#allocation2 + $0x7e0] ss:$48 sps:$4 sm:$0xff]  }
  0x21   :  { %2459 = vmatpush1.bf16.msra.mxu0 %v3720_v6  ;;  %v3728_v12 = vld [vmem:[#allocation2 + $0x184] ss:$48 sps:$4 sm:$0xff]   ;;  %v3732_v14 = vld [vmem:[#allocation2 + $0x180] ss:$48 sps:$4 sm:$0xff]   ;;  %v3812_v6 = vld [vmem:[#allocation2 + $0x2a8] ss:$48 sps:$4 sm:$0xff]  }
  0x22   :  { %2512 = vmatpush1.bf16.msra.mxu1 %v3721_v7  ;;  %2460 = vmatprep.subr.bf16.mxu0 %v3722_v8  ;;  %v3730_v13 = vld [vmem:[#allocation2 + $0x784] ss:$48 sps:$4 sm:$0xff]   ;;  %v3733_v15 = vld [vmem:[#allocation2 + $0x780] ss:$48 sps:$4 sm:$0xff]   ;;  %v3815_v7 = vld [vmem:[#allocation2 + $0x8a8] ss:$48 sps:$4 sm:$0xff]  }
  0x23   :  { %2513 = vmatprep.subr.bf16.mxu1 %v3724_v9  ;;  %v3734_v16 = vld [vmem:[#allocation2 + $0x124] ss:$48 sps:$4 sm:$0xff]   ;;  %v3738_v18 = vld [vmem:[#allocation2 + $0x120] ss:$48 sps:$4 sm:$0xff]   ;;  %v3820_v8 = vld [vmem:[#allocation2 + $0x24c] ss:$48 sps:$4 sm:$0xff]  }
  0x24   :  { %v3736_v17 = vld [vmem:[#allocation2 + $0x724] ss:$48 sps:$4 sm:$0xff]   ;;  %v3739_v19 = vld [vmem:[#allocation2 + $0x720] ss:$48 sps:$4 sm:$0xff]   ;;  %v3823_v9 = vld [vmem:[#allocation2 + $0x84c] ss:$48 sps:$4 sm:$0xff]  }
  0x25   :  { %2461 = vmatpush1.bf16.msra.mxu0 %v3726_v10  ;;  %v3740_v20 = vld [vmem:[#allocation2 + $0xc4] ss:$48 sps:$4 sm:$0xff]   ;;  %v3744_v22 = vld [vmem:[#allocation2 + $0xc0] ss:$48 sps:$4 sm:$0xff]   ;;  %v3818_v10 = vld [vmem:[#allocation2 + $0x248] ss:$48 sps:$4 sm:$0xff]  }
  0x26   :  { %2514 = vmatpush1.bf16.msra.mxu1 %v3727_v11  ;;  %2462 = vmatprep.subr.bf16.mxu0 %v3728_v12  ;;  %v3742_v21 = vld [vmem:[#allocation2 + $0x6c4] ss:$48 sps:$4 sm:$0xff]   ;;  %v3745_v23 = vld [vmem:[#allocation2 + $0x6c0] ss:$48 sps:$4 sm:$0xff]   ;;  %v3821_v11 = vld [vmem:[#allocation2 + $0x848] ss:$48 sps:$4 sm:$0xff]  }
  0x27   :  { %2515 = vmatprep.subr.bf16.mxu1 %v3730_v13  ;;  %v3746_v24 = vld [vmem:[#allocation2 + $0x64] ss:$48 sps:$4 sm:$0xff]   ;;  %v3750_v26 = vld [vmem:[#allocation2 + $0x60] ss:$48 sps:$4 sm:$0xff]   ;;  %v3826_v12 = vld [vmem:[#allocation2 + $0x1ec] ss:$48 sps:$4 sm:$0xff]  }
  0x28   :  { %v3748_v25 = vld [vmem:[#allocation2 + $0x664] ss:$48 sps:$4 sm:$0xff]   ;;  %v3751_v27 = vld [vmem:[#allocation2 + $0x660] ss:$48 sps:$4 sm:$0xff]   ;;  %v3829_v13 = vld [vmem:[#allocation2 + $0x7ec] ss:$48 sps:$4 sm:$0xff]  }
  0x29   :  { %2463 = vmatpush1.bf16.msra.mxu0 %v3732_v14  ;;  %v3752_v28 = vld [vmem:[#allocation2 + $0x4] ss:$48 sps:$4 sm:$0xff]   ;;  %v3756_v30 = vld [vmem:[#allocation2] ss:$48 sps:$4 sm:$0xff]   ;;  %v3824_v14 = vld [vmem:[#allocation2 + $0x1e8] ss:$48 sps:$4 sm:$0xff]  }
  0x2a   :  { %2516 = vmatpush1.bf16.msra.mxu1 %v3733_v15  ;;  %2464 = vmatprep.subr.bf16.mxu0 %v3734_v16  ;;  %v3754_v29 = vld [vmem:[#allocation2 + $0x604] ss:$48 sps:$4 sm:$0xff]   ;;  %v3757_v31 = vld [vmem:[#allocation2 + $0x600] ss:$48 sps:$4 sm:$0xff]   ;;  %v3827_v15 = vld [vmem:[#allocation2 + $0x7e8] ss:$48 sps:$4 sm:$0xff]  }
  0x2b   :  { %2517 = vmatprep.subr.bf16.mxu1 %v3736_v17  ;;  %v3758_v32 = vld [vmem:[#allocation2 + $0x5a4] ss:$48 sps:$4 sm:$0xff]   ;;  %v3762_v34 = vld [vmem:[#allocation2 + $0x5a0] ss:$48 sps:$4 sm:$0xff]   ;;  %v3832_v16 = vld [vmem:[#allocation2 + $0x18c] ss:$48 sps:$4 sm:$0xff]  }
  0x2c   :  { %v3760_v33 = vld [vmem:[#allocation2 + $0xba4] ss:$48 sps:$4 sm:$0xff]   ;;  %v3763_v35 = vld [vmem:[#allocation2 + $0xba0] ss:$48 sps:$4 sm:$0xff]   ;;  %v3835_v17 = vld [vmem:[#allocation2 + $0x78c] ss:$48 sps:$4 sm:$0xff]  }
  0x2d   :  { %2465 = vmatpush1.bf16.msra.mxu0 %v3738_v18  ;;  %v3764_v36 = vld [vmem:[#allocation2 + $0x544] ss:$48 sps:$4 sm:$0xff]   ;;  %v3768_v38 = vld [vmem:[#allocation2 + $0x540] ss:$48 sps:$4 sm:$0xff]   ;;  %v3830_v18 = vld [vmem:[#allocation2 + $0x188] ss:$48 sps:$4 sm:$0xff]  }
  0x2e   :  { %2518 = vmatpush1.bf16.msra.mxu1 %v3739_v19  ;;  %2466 = vmatprep.subr.bf16.mxu0 %v3740_v20  ;;  %v3766_v37 = vld [vmem:[#allocation2 + $0xb44] ss:$48 sps:$4 sm:$0xff]   ;;  %v3769_v39 = vld [vmem:[#allocation2 + $0xb40] ss:$48 sps:$4 sm:$0xff]   ;;  %v3833_v19 = vld [vmem:[#allocation2 + $0x788] ss:$48 sps:$4 sm:$0xff]  }
  0x2f   :  { %2519 = vmatprep.subr.bf16.mxu1 %v3742_v21  ;;  %v3770_v40 = vld [vmem:[#allocation2 + $0x4e4] ss:$48 sps:$4 sm:$0xff]   ;;  %v3774_v42 = vld [vmem:[#allocation2 + $0x4e0] ss:$48 sps:$4 sm:$0xff]   ;;  %v3838_v20 = vld [vmem:[#allocation2 + $0x12c] ss:$48 sps:$4 sm:$0xff]  }
  0x30   :  { %v3772_v41 = vld [vmem:[#allocation2 + $0xae4] ss:$48 sps:$4 sm:$0xff]   ;;  %v3775_v43 = vld [vmem:[#allocation2 + $0xae0] ss:$48 sps:$4 sm:$0xff]   ;;  %v3841_v21 = vld [vmem:[#allocation2 + $0x72c] ss:$48 sps:$4 sm:$0xff]  }
  0x31   :  { %2467 = vmatpush1.bf16.msra.mxu0 %v3744_v22  ;;  %v3776_v44 = vld [vmem:[#allocation2 + $0x484] ss:$48 sps:$4 sm:$0xff]   ;;  %v3780_v46 = vld [vmem:[#allocation2 + $0x480] ss:$48 sps:$4 sm:$0xff]   ;;  %v3836_v22 = vld [vmem:[#allocation2 + $0x128] ss:$48 sps:$4 sm:$0xff]  }
  0x32   :  { %2520 = vmatpush1.bf16.msra.mxu1 %v3745_v23  ;;  %2468 = vmatprep.subr.bf16.mxu0 %v3746_v24  ;;  %v3778_v45 = vld [vmem:[#allocation2 + $0xa84] ss:$48 sps:$4 sm:$0xff]   ;;  %v3781_v47 = vld [vmem:[#allocation2 + $0xa80] ss:$48 sps:$4 sm:$0xff]   ;;  %v3839_v23 = vld [vmem:[#allocation2 + $0x728] ss:$48 sps:$4 sm:$0xff]  }
  0x33   :  { %2521 = vmatprep.subr.bf16.mxu1 %v3748_v25  ;;  %v4383_v48 = vld [vmem:[%s4640_s0 + $0x4] ss:$16 sps:$4 sm:$0xff]   ;;  %v3786_v52 = vld [vmem:[#allocation2 + $0x420] ss:$48 sps:$4 sm:$0xff]   ;;  %v3844_v24 = vld [vmem:[#allocation2 + $0xcc] ss:$48 sps:$4 sm:$0xff]  }
  0x34   :  { %v3782_v49 = vld [vmem:[#allocation2 + $0x424] ss:$48 sps:$4 sm:$0xff]   ;;  %2488 = vmatprep.mubr.bf16.mxu0 %v4383_v48  ;;  %v3787_v53 = vld [vmem:[#allocation2 + $0xa20] ss:$48 sps:$4 sm:$0xff]   ;;  %v3847_v25 = vld [vmem:[#allocation2 + $0x6cc] ss:$48 sps:$4 sm:$0xff]  }
  0x35   :  { %2469 = vmatpush1.bf16.msra.mxu0 %v3750_v26  ;;  %v3784_v51 = vld [vmem:[#allocation2 + $0xa24] ss:$48 sps:$4 sm:$0xff]   ;;  %v3792_v56 = vld [vmem:[#allocation2 + $0x3c0] ss:$48 sps:$4 sm:$0xff]  }
  0x36   :  { %2522 = vmatpush1.bf16.msra.mxu1 %v3751_v27  ;;  %2470 = vmatprep.subr.bf16.mxu0 %v3752_v28  ;;  %v3788_v54 = vld [vmem:[#allocation2 + $0x3c4] ss:$48 sps:$4 sm:$0xff]   ;;  %v3793_v57 = vld [vmem:[#allocation2 + $0x9c0] ss:$48 sps:$4 sm:$0xff]   ;;  %v4418_v28 = vld [vmem:[%s4640_s0 + $0x2c] ss:$16 sps:$4 sm:$0xff]  }
  0x37   :  { %2523 = vmatprep.subr.bf16.mxu1 %v3754_v29  ;;  %v3790_v55 = vld [vmem:[#allocation2 + $0x9c4] ss:$48 sps:$4 sm:$0xff]   ;;  %v3798_v60 = vld [vmem:[#allocation2 + $0x360] ss:$48 sps:$4 sm:$0xff]   ;;  %v3842_v29 = vld [vmem:[#allocation2 + $0xc8] ss:$48 sps:$4 sm:$0xff]  }
  0x38   :  { %v3794_v58 = vld [vmem:[#allocation2 + $0x364] ss:$48 sps:$4 sm:$0xff]   ;;  %v3799_v61 = vld [vmem:[#allocation2 + $0x960] ss:$48 sps:$4 sm:$0xff]  }
  0x39   :  { %2471 = vmatpush1.bf16.msra.mxu0 %v3756_v30  ;;  %v3796_v59 = vld [vmem:[#allocation2 + $0x964] ss:$48 sps:$4 sm:$0xff]   ;;  %v3804_v0 = vld [vmem:[#allocation2 + $0x300] ss:$48 sps:$4 sm:$0xff]   ;;  %v3845_v30 = vld [vmem:[#allocation2 + $0x6c8] ss:$48 sps:$4 sm:$0xff]  }
  0x3a   :  { %2524 = vmatpush1.bf16.msra.mxu1 %v3757_v31  ;;  %2472 = vmatprep.subr.bf16.mxu0 %v3758_v32  ;;  %v3800_v62 = vld [vmem:[#allocation2 + $0x304] ss:$48 sps:$4 sm:$0xff]   ;;  %v3805_v1 = vld [vmem:[#allocation2 + $0x900] ss:$48 sps:$4 sm:$0xff]   ;;  %v3850_v31 = vld [vmem:[#allocation2 + $0x6c] ss:$48 sps:$4 sm:$0xff]  }
  0x3b   :  { %2525 = vmatprep.subr.bf16.mxu1 %v3760_v33  ;;  %v3802_v63 = vld [vmem:[#allocation2 + $0x904] ss:$48 sps:$4 sm:$0xff]   ;;  %v4395_v4 = vld [vmem:[%s4640_s0] ss:$16 sps:$4 sm:$0xff]   ;;  %v3853_v32 = vld [vmem:[#allocation2 + $0x66c] ss:$48 sps:$4 sm:$0xff]  }
  0x3c   :  { %v4407_v26 = vld [vmem:[%s4640_s0 + $0x24] ss:$16 sps:$4 sm:$0xff]   ;;  %v4412_v27 = vld [vmem:[%s4640_s0 + $0x20] ss:$16 sps:$4 sm:$0xff]   ;;  %v4424_v33 = vld [vmem:[%s4640_s0 + $0x28] ss:$16 sps:$4 sm:$0xff]  }
  0x3d   :  { %2473 = vmatpush2.bf16.msra.mxu0 %v3762_v34  ;;  %v3848_v34 = vld [vmem:[#allocation2 + $0x68] ss:$48 sps:$4 sm:$0xff]  }
  0x3e   :  { %2526 = vmatpush2.bf16.msra.mxu1 %v3763_v35  ;;  %2474 = vmatprep.subr.bf16.mxu0 %v3764_v36  ;;  %v3851_v35 = vld [vmem:[#allocation2 + $0x668] ss:$48 sps:$4 sm:$0xff]   ;;  %v3856_v36 = vld [vmem:[#allocation2 + $0xc] ss:$48 sps:$4 sm:$0xff]  }
  0x3f   :  { %2527 = vmatprep.subr.bf16.mxu1 %v3766_v37  ;;  %v3859_v37 = vld [vmem:[#allocation2 + $0x60c] ss:$48 sps:$4 sm:$0xff]  }
  0x41   :  { %2475 = vmatpush2.bf16.msra.mxu0 %v3768_v38  ;;  %v3854_v38 = vld [vmem:[#allocation2 + $0x8] ss:$48 sps:$4 sm:$0xff]  }
  0x42   :  { %2528 = vmatpush2.bf16.msra.mxu1 %v3769_v39  ;;  %2476 = vmatprep.subr.bf16.mxu0 %v3770_v40  ;;  %v3857_v39 = vld [vmem:[#allocation2 + $0x608] ss:$48 sps:$4 sm:$0xff]   ;;  %v3862_v40 = vld [vmem:[#allocation2 + $0x5ac] ss:$48 sps:$4 sm:$0xff]  }
  0x43   :  { %2529 = vmatprep.subr.bf16.mxu1 %v3772_v41  ;;  %v3865_v41 = vld [vmem:[#allocation2 + $0xbac] ss:$48 sps:$4 sm:$0xff]  }
  0x45   :  { %2477 = vmatpush2.bf16.msra.mxu0 %v3774_v42  ;;  %v3860_v42 = vld [vmem:[#allocation2 + $0x5a8] ss:$48 sps:$4 sm:$0xff]  }
  0x46   :  { %2530 = vmatpush2.bf16.msra.mxu1 %v3775_v43  ;;  %2478 = vmatprep.subr.bf16.mxu0 %v3776_v44  ;;  %v3863_v43 = vld [vmem:[#allocation2 + $0xba8] ss:$48 sps:$4 sm:$0xff]   ;;  %v3868_v44 = vld [vmem:[#allocation2 + $0x54c] ss:$48 sps:$4 sm:$0xff]  }
  0x47   :  { %2531 = vmatprep.subr.bf16.mxu1 %v3778_v45  ;;  %v3871_v45 = vld [vmem:[#allocation2 + $0xb4c] ss:$48 sps:$4 sm:$0xff]  }
  0x49   :  { %2479 = vmatpush2.bf16.msra.mxu0 %v3780_v46  ;;  %v3866_v46 = vld [vmem:[#allocation2 + $0x548] ss:$48 sps:$4 sm:$0xff]  }
  0x4a   :  { %2532 = vmatpush2.bf16.msra.mxu1 %v3781_v47  ;;  %2480 = vmatprep.subr.bf16.mxu0 %v3782_v49  ;;  %v3869_v47 = vld [vmem:[#allocation2 + $0xb48] ss:$48 sps:$4 sm:$0xff]   ;;  %v3874_v49 = vld [vmem:[#allocation2 + $0x4ec] ss:$48 sps:$4 sm:$0xff]  }
  0x4b   :  { %2533 = vmatprep.subr.bf16.mxu1 %v3784_v51  ;;  %v3877_v51 = vld [vmem:[#allocation2 + $0xaec] ss:$48 sps:$4 sm:$0xff]  }
  0x4d   :  { %2481 = vmatpush2.bf16.msra.mxu0 %v3786_v52  ;;  %v3872_v52 = vld [vmem:[#allocation2 + $0x4e8] ss:$48 sps:$4 sm:$0xff]  }
  0x4e   :  { %2534 = vmatpush2.bf16.msra.mxu1 %v3787_v53  ;;  %2482 = vmatprep.subr.bf16.mxu0 %v3788_v54  ;;  %v3875_v53 = vld [vmem:[#allocation2 + $0xae8] ss:$48 sps:$4 sm:$0xff]   ;;  %v3880_v54 = vld [vmem:[#allocation2 + $0x48c] ss:$48 sps:$4 sm:$0xff]  }
  0x4f   :  { %2535 = vmatprep.subr.bf16.mxu1 %v3790_v55  ;;  %v3883_v55 = vld [vmem:[#allocation2 + $0xa8c] ss:$48 sps:$4 sm:$0xff]  }
  0x51   :  { %2483 = vmatpush2.bf16.msra.mxu0 %v3792_v56  ;;  %v3878_v56 = vld [vmem:[#allocation2 + $0x488] ss:$48 sps:$4 sm:$0xff]  }
  0x52   :  { %2536 = vmatpush2.bf16.msra.mxu1 %v3793_v57  ;;  %2484 = vmatprep.subr.bf16.mxu0 %v3794_v58  ;;  %v3881_v57 = vld [vmem:[#allocation2 + $0xa88] ss:$48 sps:$4 sm:$0xff]   ;;  %v3886_v58 = vld [vmem:[#allocation2 + $0x42c] ss:$48 sps:$4 sm:$0xff]  }
  0x53   :  { %2537 = vmatprep.subr.bf16.mxu1 %v3796_v59  ;;  %v3889_v59 = vld [vmem:[#allocation2 + $0xa2c] ss:$48 sps:$4 sm:$0xff]  }
  0x55   :  { %2485 = vmatpush2.bf16.msra.mxu0 %v3798_v60  ;;  %v3884_v60 = vld [vmem:[#allocation2 + $0x428] ss:$48 sps:$4 sm:$0xff]  }
  0x56   :  { %2538 = vmatpush2.bf16.msra.mxu1 %v3799_v61  ;;  %2486 = vmatprep.subr.bf16.mxu0 %v3800_v62  ;;  %v3887_v61 = vld [vmem:[#allocation2 + $0xa28] ss:$48 sps:$4 sm:$0xff]   ;;  %v3897_v62 = vld [vmem:[#allocation2 + $0x3cc] ss:$48 sps:$4 sm:$0xff]  }
  0x57   :  { %2539 = vmatprep.subr.bf16.mxu1 %v3802_v63  ;;  %v3900_v63 = vld [vmem:[#allocation2 + $0x9cc] ss:$48 sps:$4 sm:$0xff]  }
  0x59   :  { %2487 = vmatpush2.bf16.msra.mxu0 %v3804_v0  ;;  %v3895_v0 = vld [vmem:[#allocation2 + $0x3c8] ss:$48 sps:$4 sm:$0xff]  }
  0x5a   :  { %2540 = vmatpush2.bf16.msra.mxu1 %v3805_v1  ;;  %2562 = vmatprep.subr.bf16.mxu0 %v3814_v2  ;;  %v3898_v1 = vld [vmem:[#allocation2 + $0x9c8] ss:$48 sps:$4 sm:$0xff]   ;;  %v3904_v2 = vld [vmem:[#allocation2 + $0x36c] ss:$48 sps:$4 sm:$0xff]  }
  0x5b   :  { %2615 = vmatprep.subr.bf16.mxu1 %v3817_v3  ;;  %v3907_v3 = vld [vmem:[#allocation2 + $0x96c] ss:$48 sps:$4 sm:$0xff]  }
  0x5c   :  { %2489 = vmatmul.mubr.bf16.vlgmr.msra.gmra.mxu0 %v4395_v4 }
  0x5d   :  { %2542 = vmatmul.mubr.bf16.vlgmr.msra.gmra.mxu1 %v4400_v5  ;;  %2563 = vmatpush1.bf16.msra.mxu0 %v3812_v6  ;;  %v3902_v6 = vld [vmem:[#allocation2 + $0x368] ss:$48 sps:$4 sm:$0xff]  }
  0x5e   :  { %2616 = vmatpush1.bf16.msra.mxu1 %v3815_v7  ;;  %2564 = vmatprep.subr.bf16.mxu0 %v3820_v8  ;;  %v3905_v7 = vld [vmem:[#allocation2 + $0x968] ss:$48 sps:$4 sm:$0xff]   ;;  %v3910_v8 = vld [vmem:[#allocation2 + $0x30c] ss:$48 sps:$4 sm:$0xff]  }
  0x5f   :  { %2617 = vmatprep.subr.bf16.mxu1 %v3823_v9  ;;  %2498 = vmatprep.mubr.bf16.mxu0 %v4407_v26  ;;  %v3913_v9 = vld [vmem:[#allocation2 + $0x90c] ss:$48 sps:$4 sm:$0xff]  }
  0x60   :  { %2551 = vmatprep.mubr.bf16.mxu1 %v4418_v28 }
  0x61   :  { %2565 = vmatpush1.bf16.msra.mxu0 %v3818_v10  ;;  %v3908_v10 = vld [vmem:[#allocation2 + $0x308] ss:$48 sps:$4 sm:$0xff]  }
  0x62   :  { %2618 = vmatpush1.bf16.msra.mxu1 %v3821_v11  ;;  %2566 = vmatprep.subr.bf16.mxu0 %v3826_v12  ;;  %v3911_v11 = vld [vmem:[#allocation2 + $0x908] ss:$48 sps:$4 sm:$0xff]   ;;  %v3916_v12 = vld [vmem:[#allocation2 + $0x2b4] ss:$48 sps:$4 sm:$0xff]  }
  0x63   :  { %2619 = vmatprep.subr.bf16.mxu1 %v3829_v13  ;;  %v3919_v13 = vld [vmem:[#allocation2 + $0x8b4] ss:$48 sps:$4 sm:$0xff]  }
  0x64   :  { %2499 = vmatmul.mubr.bf16.gmra.mxu0 %v4412_v27 }
  0x65   :  { %2567 = vmatpush1.bf16.msra.mxu0 %v3824_v14  ;;  %2594 = vmatprep.mubr.bf16.mxu0 %v4383_v48  ;;  %v3914_v14 = vld [vmem:[#allocation2 + $0x2b0] ss:$48 sps:$4 sm:$0xff]  }
  0x66   :  { %2620 = vmatpush1.bf16.msra.mxu1 %v3827_v15  ;;  %2568 = vmatprep.subr.bf16.mxu0 %v3832_v16  ;;  %v3917_v15 = vld [vmem:[#allocation2 + $0x8b0] ss:$48 sps:$4 sm:$0xff]   ;;  %v3922_v16 = vld [vmem:[#allocation2 + $0x254] ss:$48 sps:$4 sm:$0xff]  }
  0x67   :  { %2621 = vmatprep.subr.bf16.mxu1 %v3835_v17  ;;  %2552 = vmatmul.mubr.bf16.gmra.mxu1 %v4424_v33  ;;  %v3925_v17 = vld [vmem:[#allocation2 + $0x854] ss:$48 sps:$4 sm:$0xff]  }
  0x68   :  { %2647 = vmatprep.mubr.bf16.mxu1 %v4388_v50 }
  0x69   :  { %2569 = vmatpush1.bf16.msra.mxu0 %v3830_v18  ;;  %v3920_v18 = vld [vmem:[#allocation2 + $0x250] ss:$48 sps:$4 sm:$0xff]  }
  0x6a   :  { %2622 = vmatpush1.bf16.msra.mxu1 %v3833_v19  ;;  %2570 = vmatprep.subr.bf16.mxu0 %v3838_v20  ;;  %v3923_v19 = vld [vmem:[#allocation2 + $0x850] ss:$48 sps:$4 sm:$0xff]   ;;  %v3928_v20 = vld [vmem:[#allocation2 + $0x1f4] ss:$48 sps:$4 sm:$0xff]  }
  0x6b   :  { %2623 = vmatprep.subr.bf16.mxu1 %v3841_v21  ;;  %v3931_v21 = vld [vmem:[#allocation2 + $0x7f4] ss:$48 sps:$4 sm:$0xff]  }
  0x6d   :  { %2571 = vmatpush1.bf16.msra.mxu0 %v3836_v22  ;;  %v3926_v22 = vld [vmem:[#allocation2 + $0x1f0] ss:$48 sps:$4 sm:$0xff]  }
  0x6e   :  { %2624 = vmatpush1.bf16.msra.mxu1 %v3839_v23  ;;  %2572 = vmatprep.subr.bf16.mxu0 %v3844_v24  ;;  %v3929_v23 = vld [vmem:[#allocation2 + $0x7f0] ss:$48 sps:$4 sm:$0xff]   ;;  %v3934_v24 = vld [vmem:[#allocation2 + $0x194] ss:$48 sps:$4 sm:$0xff]  }
  0x6f   :  { %2625 = vmatprep.subr.bf16.mxu1 %v3847_v25  ;;  %v3937_v25 = vld [vmem:[#allocation2 + $0x794] ss:$48 sps:$4 sm:$0xff]  }
  0x71   :  { %2573 = vmatpush1.bf16.msra.mxu0 %v3842_v29  ;;  %v3932_v29 = vld [vmem:[#allocation2 + $0x190] ss:$48 sps:$4 sm:$0xff]  }
  0x72   :  { %2626 = vmatpush1.bf16.msra.mxu1 %v3845_v30  ;;  %2574 = vmatprep.subr.bf16.mxu0 %v3850_v31  ;;  %v3935_v30 = vld [vmem:[#allocation2 + $0x790] ss:$48 sps:$4 sm:$0xff]   ;;  %v3940_v31 = vld [vmem:[#allocation2 + $0x134] ss:$48 sps:$4 sm:$0xff]  }
  0x73   :  { %2627 = vmatprep.subr.bf16.mxu1 %v3853_v32  ;;  %v3943_v32 = vld [vmem:[#allocation2 + $0x734] ss:$48 sps:$4 sm:$0xff]  }
  0x75   :  { %2575 = vmatpush1.bf16.msra.mxu0 %v3848_v34  ;;  %v3938_v34 = vld [vmem:[#allocation2 + $0x130] ss:$48 sps:$4 sm:$0xff]  }
  0x76   :  { %2628 = vmatpush1.bf16.msra.mxu1 %v3851_v35  ;;  %2576 = vmatprep.subr.bf16.mxu0 %v3856_v36  ;;  %v3941_v35 = vld [vmem:[#allocation2 + $0x730] ss:$48 sps:$4 sm:$0xff]   ;;  %v3946_v36 = vld [vmem:[#allocation2 + $0xd4] ss:$48 sps:$4 sm:$0xff]  }
  0x77   :  { %2629 = vmatprep.subr.bf16.mxu1 %v3859_v37  ;;  %v3949_v37 = vld [vmem:[#allocation2 + $0x6d4] ss:$48 sps:$4 sm:$0xff]  }
  0x79   :  { %2577 = vmatpush1.bf16.msra.mxu0 %v3854_v38  ;;  %v3944_v38 = vld [vmem:[#allocation2 + $0xd0] ss:$48 sps:$4 sm:$0xff]  }
  0x7a   :  { %2630 = vmatpush1.bf16.msra.mxu1 %v3857_v39  ;;  %2578 = vmatprep.subr.bf16.mxu0 %v3862_v40  ;;  %v3947_v39 = vld [vmem:[#allocation2 + $0x6d0] ss:$48 sps:$4 sm:$0xff]   ;;  %v3952_v40 = vld [vmem:[#allocation2 + $0x74] ss:$48 sps:$4 sm:$0xff]  }
  0x7b   :  { %2631 = vmatprep.subr.bf16.mxu1 %v3865_v41  ;;  %v3955_v41 = vld [vmem:[#allocation2 + $0x674] ss:$48 sps:$4 sm:$0xff]  }
  0x7d   :  { %2579 = vmatpush2.bf16.msra.mxu0 %v3860_v42  ;;  %v3950_v42 = vld [vmem:[#allocation2 + $0x70] ss:$48 sps:$4 sm:$0xff]  }
  0x7e   :  { %2632 = vmatpush2.bf16.msra.mxu1 %v3863_v43  ;;  %2580 = vmatprep.subr.bf16.mxu0 %v3868_v44  ;;  %v3961_v43 = vld [vmem:[#allocation2 + $0x614] ss:$48 sps:$4 sm:$0xff]   ;;  %v3956_v44 = vld [vmem:[#allocation2 + $0x10] ss:$48 sps:$4 sm:$0xff]  }
  0x7f   :  { %2633 = vmatprep.subr.bf16.mxu1 %v3871_v45  ;;  %v3959_v45 = vld [vmem:[#allocation2 + $0x610] ss:$48 sps:$4 sm:$0xff]  }
  0x81   :  { %2581 = vmatpush2.bf16.msra.mxu0 %v3866_v46  ;;  %v3964_v46 = vld [vmem:[#allocation2 + $0x5b4] ss:$48 sps:$4 sm:$0xff]  }
  0x82   :  { %2634 = vmatpush2.bf16.msra.mxu1 %v3869_v47  ;;  %2582 = vmatprep.subr.bf16.mxu0 %v3874_v49  ;;  %v3967_v47 = vld [vmem:[#allocation2 + $0xbb4] ss:$48 sps:$4 sm:$0xff]   ;;  %v3962_v49 = vld [vmem:[#allocation2 + $0x5b0] ss:$48 sps:$4 sm:$0xff]  }
  0x83   :  { %2635 = vmatprep.subr.bf16.mxu1 %v3877_v51  ;;  %v3965_v51 = vld [vmem:[#allocation2 + $0xbb0] ss:$48 sps:$4 sm:$0xff]  }
  0x85   :  { %2583 = vmatpush2.bf16.msra.mxu0 %v3872_v52  ;;  %v3970_v52 = vld [vmem:[#allocation2 + $0x554] ss:$48 sps:$4 sm:$0xff]  }
  0x86   :  { %2636 = vmatpush2.bf16.msra.mxu1 %v3875_v53  ;;  %2584 = vmatprep.subr.bf16.mxu0 %v3880_v54  ;;  %v3973_v53 = vld [vmem:[#allocation2 + $0xb54] ss:$48 sps:$4 sm:$0xff]   ;;  %v3968_v54 = vld [vmem:[#allocation2 + $0x550] ss:$48 sps:$4 sm:$0xff]  }
  0x87   :  { %2637 = vmatprep.subr.bf16.mxu1 %v3883_v55  ;;  %v3971_v55 = vld [vmem:[#allocation2 + $0xb50] ss:$48 sps:$4 sm:$0xff]  }
  0x89   :  { %2585 = vmatpush2.bf16.msra.mxu0 %v3878_v56  ;;  %v3976_v56 = vld [vmem:[#allocation2 + $0x4f4] ss:$48 sps:$4 sm:$0xff]  }
  0x8a   :  { %2638 = vmatpush2.bf16.msra.mxu1 %v3881_v57  ;;  %2586 = vmatprep.subr.bf16.mxu0 %v3886_v58  ;;  %v3979_v57 = vld [vmem:[#allocation2 + $0xaf4] ss:$48 sps:$4 sm:$0xff]   ;;  %v3974_v58 = vld [vmem:[#allocation2 + $0x4f0] ss:$48 sps:$4 sm:$0xff]  }
  0x8b   :  { %2639 = vmatprep.subr.bf16.mxu1 %v3889_v59  ;;  %v3977_v59 = vld [vmem:[#allocation2 + $0xaf0] ss:$48 sps:$4 sm:$0xff]  }
  0x8d   :  { %2587 = vmatpush2.bf16.msra.mxu0 %v3884_v60  ;;  %v3982_v60 = vld [vmem:[#allocation2 + $0x494] ss:$48 sps:$4 sm:$0xff]  }
  0x8e   :  { %2640 = vmatpush2.bf16.msra.mxu1 %v3887_v61  ;;  %2588 = vmatprep.subr.bf16.mxu0 %v3897_v62  ;;  %v3985_v61 = vld [vmem:[#allocation2 + $0xa94] ss:$48 sps:$4 sm:$0xff]   ;;  %v3980_v62 = vld [vmem:[#allocation2 + $0x490] ss:$48 sps:$4 sm:$0xff]  }
  0x8f   :  { %2641 = vmatprep.subr.bf16.mxu1 %v3900_v63  ;;  %v3983_v63 = vld [vmem:[#allocation2 + $0xa90] ss:$48 sps:$4 sm:$0xff]  }
  0x91   :  { %2589 = vmatpush2.bf16.msra.mxu0 %v3895_v0  ;;  %v3988_v0 = vld [vmem:[#allocation2 + $0x434] ss:$48 sps:$4 sm:$0xff]  }
  0x92   :  { %2642 = vmatpush2.bf16.msra.mxu1 %v3898_v1  ;;  %2590 = vmatprep.subr.bf16.mxu0 %v3904_v2  ;;  %v3991_v1 = vld [vmem:[#allocation2 + $0xa34] ss:$48 sps:$4 sm:$0xff]   ;;  %v3986_v2 = vld [vmem:[#allocation2 + $0x430] ss:$48 sps:$4 sm:$0xff]  }
  0x93   :  { %2643 = vmatprep.subr.bf16.mxu1 %v3907_v3  ;;  %v3989_v3 = vld [vmem:[#allocation2 + $0xa30] ss:$48 sps:$4 sm:$0xff]  }
  0x95   :  { %2591 = vmatpush2.bf16.msra.mxu0 %v3902_v6  ;;  %v3994_v6 = vld [vmem:[#allocation2 + $0x3d4] ss:$48 sps:$4 sm:$0xff]  }
  0x96   :  { %2644 = vmatpush2.bf16.msra.mxu1 %v3905_v7  ;;  %2592 = vmatprep.subr.bf16.mxu0 %v3910_v8  ;;  %v3997_v7 = vld [vmem:[#allocation2 + $0x9d4] ss:$48 sps:$4 sm:$0xff]   ;;  %v3992_v8 = vld [vmem:[#allocation2 + $0x3d0] ss:$48 sps:$4 sm:$0xff]  }
  0x97   :  { %2645 = vmatprep.subr.bf16.mxu1 %v3913_v9  ;;  %v3995_v9 = vld [vmem:[#allocation2 + $0x9d0] ss:$48 sps:$4 sm:$0xff]  }
  0x99   :  { %2593 = vmatpush2.bf16.msra.mxu0 %v3908_v10  ;;  %v4000_v10 = vld [vmem:[#allocation2 + $0x374] ss:$48 sps:$4 sm:$0xff]  }
  0x9a   :  { %2646 = vmatpush2.bf16.msra.mxu1 %v3911_v11  ;;  %2668 = vmatprep.subr.bf16.mxu0 %v3916_v12  ;;  %v4003_v11 = vld [vmem:[#allocation2 + $0x974] ss:$48 sps:$4 sm:$0xff]   ;;  %v3998_v12 = vld [vmem:[#allocation2 + $0x370] ss:$48 sps:$4 sm:$0xff]  }
  0x9b   :  { %2721 = vmatprep.subr.bf16.mxu1 %v3919_v13  ;;  %v4001_v13 = vld [vmem:[#allocation2 + $0x970] ss:$48 sps:$4 sm:$0xff]  }
  0x9c   :  { %2595 = vmatmul.mubr.bf16.vlgmr.msra.gmra.mxu0 %v4395_v4 }
  0x9d   :  { %2648 = vmatmul.mubr.bf16.vlgmr.msra.gmra.mxu1 %v4400_v5  ;;  %2669 = vmatpush1.bf16.msra.mxu0 %v3914_v14  ;;  %v4006_v14 = vld [vmem:[#allocation2 + $0x314] ss:$48 sps:$4 sm:$0xff]  }
  0x9e   :  { %2722 = vmatpush1.bf16.msra.mxu1 %v3917_v15  ;;  %2670 = vmatprep.subr.bf16.mxu0 %v3922_v16  ;;  %v4009_v15 = vld [vmem:[#allocation2 + $0x914] ss:$48 sps:$4 sm:$0xff]   ;;  %v4004_v16 = vld [vmem:[#allocation2 + $0x310] ss:$48 sps:$4 sm:$0xff]  }
  0x9f   :  { %2723 = vmatprep.subr.bf16.mxu1 %v3925_v17  ;;  %2604 = vmatprep.mubr.bf16.mxu0 %v4407_v26  ;;  %v4007_v17 = vld [vmem:[#allocation2 + $0x910] ss:$48 sps:$4 sm:$0xff]  }
  0xa0   :  { %2657 = vmatprep.mubr.bf16.mxu1 %v4418_v28 }
  0xa1   :  { %2671 = vmatpush1.bf16.msra.mxu0 %v3920_v18  ;;  %v4012_v18 = vld [vmem:[#allocation2 + $0x2bc] ss:$48 sps:$4 sm:$0xff]  }
  0xa2   :  { %2724 = vmatpush1.bf16.msra.mxu1 %v3923_v19  ;;  %2672 = vmatprep.subr.bf16.mxu0 %v3928_v20  ;;  %v4015_v19 = vld [vmem:[#allocation2 + $0x8bc] ss:$48 sps:$4 sm:$0xff]   ;;  %v4010_v20 = vld [vmem:[#allocation2 + $0x2b8] ss:$48 sps:$4 sm:$0xff]  }
  0xa3   :  { %2725 = vmatprep.subr.bf16.mxu1 %v3931_v21  ;;  %v4013_v21 = vld [vmem:[#allocation2 + $0x8b8] ss:$48 sps:$4 sm:$0xff]  }
  0xa4   :  { %2605 = vmatmul.mubr.bf16.gmra.mxu0 %v4412_v27 }
  0xa5   :  { %2658 = vmatmul.mubr.bf16.gmra.mxu1 %v4424_v33  ;;  %2673 = vmatpush1.bf16.msra.mxu0 %v3926_v22  ;;  %v4018_v22 = vld [vmem:[#allocation2 + $0x25c] ss:$48 sps:$4 sm:$0xff]  }
  0xa6   :  { %2726 = vmatpush1.bf16.msra.mxu1 %v3929_v23  ;;  %2674 = vmatprep.subr.bf16.mxu0 %v3934_v24  ;;  %v4021_v23 = vld [vmem:[#allocation2 + $0x85c] ss:$48 sps:$4 sm:$0xff]   ;;  %v4016_v24 = vld [vmem:[#allocation2 + $0x258] ss:$48 sps:$4 sm:$0xff]  }
  0xa7   :  { %2727 = vmatprep.subr.bf16.mxu1 %v3937_v25  ;;  %2700 = vmatprep.mubr.bf16.mxu0 %v4383_v48  ;;  %v3953_v48 = vld [vmem:[#allocation2 + $0x670] ss:$48 sps:$4 sm:$0xff]   ;;  %v4019_v25 = vld [vmem:[#allocation2 + $0x858] ss:$48 sps:$4 sm:$0xff]  }
  0xa8   :  { %2753 = vmatprep.mubr.bf16.mxu1 %v4388_v50  ;;  %v3958_v50 = vld [vmem:[#allocation2 + $0x14] ss:$48 sps:$4 sm:$0xff]  }
  0xa9   :  { %2675 = vmatpush1.bf16.msra.mxu0 %v3932_v29  ;;  %v4024_v29 = vld [vmem:[#allocation2 + $0x1fc] ss:$48 sps:$4 sm:$0xff]  }
  0xaa   :  { %2728 = vmatpush1.bf16.msra.mxu1 %v3935_v30  ;;  %2676 = vmatprep.subr.bf16.mxu0 %v3940_v31  ;;  %v4027_v30 = vld [vmem:[#allocation2 + $0x7fc] ss:$48 sps:$4 sm:$0xff]   ;;  %v4022_v31 = vld [vmem:[#allocation2 + $0x1f8] ss:$48 sps:$4 sm:$0xff]  }
  0xab   :  { %2729 = vmatprep.subr.bf16.mxu1 %v3943_v32  ;;  %v4025_v32 = vld [vmem:[#allocation2 + $0x7f8] ss:$48 sps:$4 sm:$0xff]  }
  0xad   :  { %2677 = vmatpush1.bf16.msra.mxu0 %v3938_v34  ;;  %v4028_v34 = vld [vmem:[#allocation2 + $0x198] ss:$48 sps:$4 sm:$0xff]  }
  0xae   :  { %2730 = vmatpush1.bf16.msra.mxu1 %v3941_v35  ;;  %2678 = vmatprep.subr.bf16.mxu0 %v3946_v36  ;;  %v4031_v35 = vld [vmem:[#allocation2 + $0x798] ss:$48 sps:$4 sm:$0xff]   ;;  %v4447_v36 = vld [vmem:[%s4640_s0 + $0x4] ss:$16 sps:$4 sm:$0xff]  }
  0xaf   :  { %2731 = vmatprep.subr.bf16.mxu1 %v3949_v37  ;;  %v4037_v37 = vld [vmem:[#allocation2 + $0x738] ss:$48 sps:$4 sm:$0xff]  }
  0xb1   :  { %2679 = vmatpush1.bf16.msra.mxu0 %v3944_v38  ;;  %v4042_v38 = vld [vmem:[#allocation2 + $0xdc] ss:$48 sps:$4 sm:$0xff]  }
  0xb2   :  { %2732 = vmatpush1.bf16.msra.mxu1 %v3947_v39  ;;  %2680 = vmatprep.subr.bf16.mxu0 %v3952_v40  ;;  %v4045_v39 = vld [vmem:[#allocation2 + $0x6dc] ss:$48 sps:$4 sm:$0xff]   ;;  %v4040_v40 = vld [vmem:[#allocation2 + $0xd8] ss:$48 sps:$4 sm:$0xff]  }
  0xb3   :  { %2733 = vmatprep.subr.bf16.mxu1 %v3955_v41  ;;  %v4043_v41 = vld [vmem:[#allocation2 + $0x6d8] ss:$48 sps:$4 sm:$0xff]  }
  0xb5   :  { %2681 = vmatpush1.bf16.msra.mxu0 %v3950_v42  ;;  %v4048_v42 = vld [vmem:[#allocation2 + $0x7c] ss:$48 sps:$4 sm:$0xff]  }
  0xb6   :  { %2734 = vmatpush1.bf16.msra.mxu1 %v3953_v48  ;;  %2682 = vmatprep.subr.bf16.mxu0 %v3958_v50  ;;  %v4051_v48 = vld [vmem:[#allocation2 + $0x67c] ss:$48 sps:$4 sm:$0xff]   ;;  %v4046_v50 = vld [vmem:[#allocation2 + $0x78] ss:$48 sps:$4 sm:$0xff]  }
  0xb7   :  { %2735 = vmatprep.subr.bf16.mxu1 %v3961_v43  ;;  %v4049_v43 = vld [vmem:[#allocation2 + $0x678] ss:$48 sps:$4 sm:$0xff]  }
  0xb9   :  { %2683 = vmatpush1.bf16.msra.mxu0 %v3956_v44  ;;  %v4054_v44 = vld [vmem:[#allocation2 + $0x1c] ss:$48 sps:$4 sm:$0xff]  }
  0xba   :  { %2736 = vmatpush1.bf16.msra.mxu1 %v3959_v45  ;;  %2684 = vmatprep.subr.bf16.mxu0 %v3964_v46  ;;  %v4057_v45 = vld [vmem:[#allocation2 + $0x61c] ss:$48 sps:$4 sm:$0xff]   ;;  %v4052_v46 = vld [vmem:[#allocation2 + $0x18] ss:$48 sps:$4 sm:$0xff]  }
  0xbb   :  { %2737 = vmatprep.subr.bf16.mxu1 %v3967_v47  ;;  %v4055_v47 = vld [vmem:[#allocation2 + $0x618] ss:$48 sps:$4 sm:$0xff]  }
  0xbd   :  { %2685 = vmatpush2.bf16.msra.mxu0 %v3962_v49  ;;  %v4060_v49 = vld [vmem:[#allocation2 + $0x5bc] ss:$48 sps:$4 sm:$0xff]  }
  0xbe   :  { %2738 = vmatpush2.bf16.msra.mxu1 %v3965_v51  ;;  %2686 = vmatprep.subr.bf16.mxu0 %v3970_v52  ;;  %v4063_v51 = vld [vmem:[#allocation2 + $0xbbc] ss:$48 sps:$4 sm:$0xff]   ;;  %v4058_v52 = vld [vmem:[#allocation2 + $0x5b8] ss:$48 sps:$4 sm:$0xff]  }
  0xbf   :  { %2739 = vmatprep.subr.bf16.mxu1 %v3973_v53  ;;  %v4061_v53 = vld [vmem:[#allocation2 + $0xbb8] ss:$48 sps:$4 sm:$0xff]  }
  0xc1   :  { %2687 = vmatpush2.bf16.msra.mxu0 %v3968_v54  ;;  %v4066_v54 = vld [vmem:[#allocation2 + $0x55c] ss:$48 sps:$4 sm:$0xff]  }
  0xc2   :  { %2740 = vmatpush2.bf16.msra.mxu1 %v3971_v55  ;;  %2688 = vmatprep.subr.bf16.mxu0 %v3976_v56  ;;  %v4069_v55 = vld [vmem:[#allocation2 + $0xb5c] ss:$48 sps:$4 sm:$0xff]   ;;  %v4064_v56 = vld [vmem:[#allocation2 + $0x558] ss:$48 sps:$4 sm:$0xff]  }
  0xc3   :  { %2741 = vmatprep.subr.bf16.mxu1 %v3979_v57  ;;  %v4067_v57 = vld [vmem:[#allocation2 + $0xb58] ss:$48 sps:$4 sm:$0xff]  }
  0xc5   :  { %2689 = vmatpush2.bf16.msra.mxu0 %v3974_v58  ;;  %v4072_v58 = vld [vmem:[#allocation2 + $0x4fc] ss:$48 sps:$4 sm:$0xff]  }
  0xc6   :  { %2742 = vmatpush2.bf16.msra.mxu1 %v3977_v59  ;;  %2690 = vmatprep.subr.bf16.mxu0 %v3982_v60  ;;  %v4075_v59 = vld [vmem:[#allocation2 + $0xafc] ss:$48 sps:$4 sm:$0xff]   ;;  %v4070_v60 = vld [vmem:[#allocation2 + $0x4f8] ss:$48 sps:$4 sm:$0xff]  }
  0xc7   :  { %2743 = vmatprep.subr.bf16.mxu1 %v3985_v61  ;;  %v4073_v61 = vld [vmem:[#allocation2 + $0xaf8] ss:$48 sps:$4 sm:$0xff]  }
  0xc9   :  { %2691 = vmatpush2.bf16.msra.mxu0 %v3980_v62  ;;  %v4078_v62 = vld [vmem:[#allocation2 + $0x49c] ss:$48 sps:$4 sm:$0xff]  }
  0xca   :  { %2744 = vmatpush2.bf16.msra.mxu1 %v3983_v63  ;;  %2692 = vmatprep.subr.bf16.mxu0 %v3988_v0  ;;  %v4081_v63 = vld [vmem:[#allocation2 + $0xa9c] ss:$48 sps:$4 sm:$0xff]   ;;  %v4076_v0 = vld [vmem:[#allocation2 + $0x498] ss:$48 sps:$4 sm:$0xff]  }
  0xcb   :  { %2745 = vmatprep.subr.bf16.mxu1 %v3991_v1  ;;  %v4079_v1 = vld [vmem:[#allocation2 + $0xa98] ss:$48 sps:$4 sm:$0xff]  }
  0xcd   :  { %2693 = vmatpush2.bf16.msra.mxu0 %v3986_v2  ;;  %v4084_v2 = vld [vmem:[#allocation2 + $0x43c] ss:$48 sps:$4 sm:$0xff]  }
  0xce   :  { %2746 = vmatpush2.bf16.msra.mxu1 %v3989_v3  ;;  %2694 = vmatprep.subr.bf16.mxu0 %v3994_v6  ;;  %v4087_v3 = vld [vmem:[#allocation2 + $0xa3c] ss:$48 sps:$4 sm:$0xff]   ;;  %v4082_v6 = vld [vmem:[#allocation2 + $0x438] ss:$48 sps:$4 sm:$0xff]  }
  0xcf   :  { %2747 = vmatprep.subr.bf16.mxu1 %v3997_v7  ;;  %v4085_v7 = vld [vmem:[#allocation2 + $0xa38] ss:$48 sps:$4 sm:$0xff]  }
  0xd1   :  { %2695 = vmatpush2.bf16.msra.mxu0 %v3992_v8  ;;  %v4090_v8 = vld [vmem:[#allocation2 + $0x3dc] ss:$48 sps:$4 sm:$0xff]  }
  0xd2   :  { %2748 = vmatpush2.bf16.msra.mxu1 %v3995_v9  ;;  %2696 = vmatprep.subr.bf16.mxu0 %v4000_v10  ;;  %v4093_v9 = vld [vmem:[#allocation2 + $0x9dc] ss:$48 sps:$4 sm:$0xff]   ;;  %v4088_v10 = vld [vmem:[#allocation2 + $0x3d8] ss:$48 sps:$4 sm:$0xff]  }
  0xd3   :  { %2749 = vmatprep.subr.bf16.mxu1 %v4003_v11  ;;  %v4091_v11 = vld [vmem:[#allocation2 + $0x9d8] ss:$48 sps:$4 sm:$0xff]  }
  0xd5   :  { %2697 = vmatpush2.bf16.msra.mxu0 %v3998_v12  ;;  %v436_v12 = vlaneseq }
  0xd6   :  { %2750 = vmatpush2.bf16.msra.mxu1 %v4001_v13  ;;  %2698 = vmatprep.subr.bf16.mxu0 %v4006_v14  ;;  %v4096_v13 = vld [vmem:[#allocation2 + $0x37c] ss:$48 sps:$4 sm:$0xff]  }
  0xd7   :  { %2751 = vmatprep.subr.bf16.mxu1 %v4009_v15  ;;  %v4099_v14 = vld [vmem:[#allocation2 + $0x97c] ss:$48 sps:$4 sm:$0xff]   ;;  %v4094_v15 = vld [vmem:[#allocation2 + $0x378] ss:$48 sps:$4 sm:$0xff]  }
  0xd9   :  { %2699 = vmatpush2.bf16.msra.mxu0 %v4004_v16  ;;  %v4097_v16 = vld [vmem:[#allocation2 + $0x978] ss:$48 sps:$4 sm:$0xff]  }
  0xda   :  { %2752 = vmatpush2.bf16.msra.mxu1 %v4007_v17  ;;  %2774 = vmatprep.subr.bf16.mxu0 %v4012_v18  ;;  %v4456_v17 = vshrl.u32 %v436_v12, 7  ;;  %v4102_v18 = vld [vmem:[#allocation2 + $0x31c] ss:$48 sps:$4 sm:$0xff]   ;;  %v4136_v12 = vld [vmem:[#allocation2 + $0xe0] ss:$48 sps:$4 sm:$0xff]  }
  0xdb   :  { %2827 = vmatprep.subr.bf16.mxu1 %v4015_v19  ;;  %v4105_v19 = vld [vmem:[#allocation2 + $0x91c] ss:$48 sps:$4 sm:$0xff]  }
  0xdc   :  { %2701 = vmatmul.mubr.bf16.vlgmr.msra.gmra.mxu0 %v4395_v4  ;;  %v4030_v4 = vld [vmem:[#allocation2 + $0x19c] ss:$48 sps:$4 sm:$0xff]  }
  0xdd   :  { %2754 = vmatmul.mubr.bf16.vlgmr.msra.gmra.mxu1 %v4400_v5  ;;  %2775 = vmatpush1.bf16.msra.mxu0 %v4010_v20  ;;  %v4033_v5 = vld [vmem:[#allocation2 + $0x79c] ss:$48 sps:$4 sm:$0xff]   ;;  %v4100_v20 = vld [vmem:[#allocation2 + $0x318] ss:$48 sps:$4 sm:$0xff]  }
  0xde   :  { %2828 = vmatpush1.bf16.msra.mxu1 %v4013_v21  ;;  %2776 = vmatprep.subr.bf16.mxu0 %v4018_v22  ;;  %v4103_v21 = vld [vmem:[#allocation2 + $0x918] ss:$48 sps:$4 sm:$0xff]   ;;  %v4458_v22 = vld [vmem:[#allocation4] sm:$0xff] }
  0xdf   :  { %2829 = vmatprep.subr.bf16.mxu1 %v4021_v23  ;;  %2710 = vmatprep.mubr.bf16.mxu0 %v4407_v26  ;;  %v4036_v26 = vld [vmem:[#allocation2 + $0x13c] ss:$48 sps:$4 sm:$0xff]   ;;  %v438_v23 = vsub.s32 0, %v4456_v17 }
  0xe0   :  { %2763 = vmatprep.mubr.bf16.mxu1 %v4418_v28  ;;  %v4039_v28 = vld [vmem:[#allocation2 + $0x73c] ss:$48 sps:$4 sm:$0xff]  }
  0xe1   :  { %2777 = vmatpush1.bf16.msra.mxu0 %v4016_v24  ;;  %v4108_v24 = vld [vmem:[#allocation2 + $0x2c4] ss:$48 sps:$4 sm:$0xff]  }
  0xe2   :  { %2830 = vmatpush1.bf16.msra.mxu1 %v4019_v25  ;;  %2778 = vmatprep.subr.bf16.mxu0 %v4024_v29  ;;  %v4111_v25 = vld [vmem:[#allocation2 + $0x8c4] ss:$48 sps:$4 sm:$0xff]   ;;  %v442_v29 = vsub.s32 1, %v4456_v17 }
  0xe3   :  { %2831 = vmatprep.subr.bf16.mxu1 %v4027_v30  ;;  %v4106_v30 = vld [vmem:[#allocation2 + $0x2c0] ss:$48 sps:$4 sm:$0xff]  }
  0xe4   :  { %2711 = vmatmul.mubr.bf16.gmra.mxu0 %v4412_v27  ;;  %v4453_v27 = vld [vmem:[%s4640_s0 + $0xc] ss:$16 sps:$4 sm:$0xff]  }
  0xe5   :  { %2764 = vmatmul.mubr.bf16.gmra.mxu1 %v4424_v33  ;;  %2779 = vmatpush1.bf16.msra.mxu0 %v4022_v31  ;;  %v4034_v33 = vld [vmem:[#allocation2 + $0x138] ss:$48 sps:$4 sm:$0xff]   ;;  %v4465_v31 = vrot.slane %v4458_v22, %v438_v23 }
  0xe6   :  { %2832 = vmatpush1.bf16.msra.mxu1 %v4025_v32  ;;  %2780 = vmatprep.subr.bf16.mxu0 %v4030_v4  ;;  %v4109_v32 = vld [vmem:[#allocation2 + $0x8c0] ss:$48 sps:$4 sm:$0xff]   ;;  %v4114_v4 = vld [vmem:[#allocation2 + $0x264] ss:$48 sps:$4 sm:$0xff]  }
  0xe7   :  { %2833 = vmatprep.subr.bf16.mxu1 %v4033_v5  ;;  %2806 = vmatprep.mubr.bf16.mxu0 %v4447_v36  ;;  %v4117_v5 = vld [vmem:[#allocation2 + $0x864] ss:$48 sps:$4 sm:$0xff]  }
  0xe8   :  { %2859 = vmatprep.mubr.bf16.mxu1 %v4453_v27 }
  0xe9   :  { %2781 = vmatpush1.bf16.msra.mxu0 %v4028_v34  ;;  %v4470_v34 = vrot.slane %v4458_v22, %v442_v29 }
  0xea   :  { %2834 = vmatpush1.bf16.msra.mxu1 %v4031_v35  ;;  %2782 = vmatprep.subr.bf16.mxu0 %v4036_v26 }
  0xeb   :  { %2835 = vmatprep.subr.bf16.mxu1 %v4039_v28  ;;  %v4475_v28 = vld [vmem:[%s4640_s0] ss:$16 sps:$4 sm:$0xff]  }
  0xed   :  { %2783 = vmatpush1.bf16.msra.mxu0 %v4034_v33  ;;  %v4481_v33 = vld [vmem:[%s4640_s0 + $0x8] ss:$16 sps:$4 sm:$0xff]  }
  0xee   :  { %2836 = vmatpush1.bf16.msra.mxu1 %v4037_v37  ;;  %2784 = vmatprep.subr.bf16.mxu0 %v4042_v38  ;;  %v4112_v37 = vld [vmem:[#allocation2 + $0x260] ss:$48 sps:$4 sm:$0xff]  }
  0xef   :  { %2837 = vmatprep.subr.bf16.mxu1 %v4045_v39  ;;  %v4115_v39 = vld [vmem:[#allocation2 + $0x860] ss:$48 sps:$4 sm:$0xff]  }
  0xf1   :  { %2785 = vmatpush1.bf16.msra.mxu0 %v4040_v40 }
  0xf2   :  { %2838 = vmatpush1.bf16.msra.mxu1 %v4043_v41  ;;  %2786 = vmatprep.subr.bf16.mxu0 %v4048_v42  ;;  %v4120_v42 = vld [vmem:[#allocation2 + $0x204] ss:$48 sps:$4 sm:$0xff]  }
  0xf3   :  { %2839 = vmatprep.subr.bf16.mxu1 %v4051_v48  ;;  %v4123_v48 = vld [vmem:[#allocation2 + $0x804] ss:$48 sps:$4 sm:$0xff]  }
  0xf5   :  { %2787 = vmatpush1.bf16.msra.mxu0 %v4046_v50 }
  0xf6   :  { %2840 = vmatpush1.bf16.msra.mxu1 %v4049_v43  ;;  %2788 = vmatprep.subr.bf16.mxu0 %v4054_v44  ;;  %v4489_v44 = vld [vmem:[%s4640_s0 + $0x24] ss:$16 sps:$4 sm:$0xff]  }
  0xf7   :  { %2841 = vmatprep.subr.bf16.mxu1 %v4057_v45  ;;  %v4495_v45 = vld [vmem:[%s4640_s0 + $0x2c] ss:$16 sps:$4 sm:$0xff]  }
  0xf9   :  { %2789 = vmatpush1.bf16.msra.mxu0 %v4052_v46 }
  0xfa   :  { %2842 = vmatpush1.bf16.msra.mxu1 %v4055_v47  ;;  %2790 = vmatprep.subr.bf16.mxu0 %v4060_v49 }
  0xfb   :  { %2843 = vmatprep.subr.bf16.mxu1 %v4063_v51 }
  0xfd   :  { %2791 = vmatpush2.bf16.msra.mxu0 %v4058_v52  ;;  %v4118_v52 = vld [vmem:[#allocation2 + $0x200] ss:$48 sps:$4 sm:$0xff]  }
  0xfe   :  { %2844 = vmatpush2.bf16.msra.mxu1 %v4061_v53  ;;  %2792 = vmatprep.subr.bf16.mxu0 %v4066_v54  ;;  %v4121_v53 = vld [vmem:[#allocation2 + $0x800] ss:$48 sps:$4 sm:$0xff]  }
  0xff   :  { %2845 = vmatprep.subr.bf16.mxu1 %v4069_v55  ;;  %v4126_v55 = vld [vmem:[#allocation2 + $0x1a4] ss:$48 sps:$4 sm:$0xff]  }
 0x101   :  { %2793 = vmatpush2.bf16.msra.mxu0 %v4064_v56  ;;  %v4129_v56 = vld [vmem:[#allocation2 + $0x7a4] ss:$48 sps:$4 sm:$0xff]  }
 0x102   :  { %2846 = vmatpush2.bf16.msra.mxu1 %v4067_v57  ;;  %2794 = vmatprep.subr.bf16.mxu0 %v4072_v58 }
 0x103   :  { %2847 = vmatprep.subr.bf16.mxu1 %v4075_v59 }
 0x105   :  { %2795 = vmatpush2.bf16.msra.mxu0 %v4070_v60  ;;  %v4503_v60 = vld [vmem:[%s4640_s0 + $0x20] ss:$16 sps:$4 sm:$0xff]  }
 0x106   :  { %2848 = vmatpush2.bf16.msra.mxu1 %v4073_v61  ;;  %2796 = vmatprep.subr.bf16.mxu0 %v4078_v62  ;;  %v4509_v61 = vld [vmem:[%s4640_s0 + $0x28] ss:$16 sps:$4 sm:$0xff]  }
 0x107   :  { %2849 = vmatprep.subr.bf16.mxu1 %v4081_v63 }
 0x109   :  { %2797 = vmatpush2.bf16.msra.mxu0 %v4076_v0  ;;  %v4124_v0 = vld [vmem:[#allocation2 + $0x1a0] ss:$48 sps:$4 sm:$0xff]  }
 0x10a   :  { %2850 = vmatpush2.bf16.msra.mxu1 %v4079_v1  ;;  %2798 = vmatprep.subr.bf16.mxu0 %v4084_v2  ;;  %v4127_v1 = vld [vmem:[#allocation2 + $0x7a0] ss:$48 sps:$4 sm:$0xff]   ;;  %v4132_v2 = vld [vmem:[#allocation2 + $0x144] ss:$48 sps:$4 sm:$0xff]  }
 0x10b   :  { %2851 = vmatprep.subr.bf16.mxu1 %v4087_v3  ;;  %v4135_v3 = vld [vmem:[#allocation2 + $0x744] ss:$48 sps:$4 sm:$0xff]  }
 0x10d   :  { %2799 = vmatpush2.bf16.msra.mxu0 %v4082_v6 }
 0x10e   :  { %2852 = vmatpush2.bf16.msra.mxu1 %v4085_v7  ;;  %2800 = vmatprep.subr.bf16.mxu0 %v4090_v8  ;;  %v4130_v7 = vld [vmem:[#allocation2 + $0x140] ss:$48 sps:$4 sm:$0xff]  }
 0x10f   :  { %2853 = vmatprep.subr.bf16.mxu1 %v4093_v9  ;;  %v4133_v8 = vld [vmem:[#allocation2 + $0x740] ss:$48 sps:$4 sm:$0xff]   ;;  %v4138_v9 = vld [vmem:[#allocation2 + $0xe4] ss:$48 sps:$4 sm:$0xff]  }
 0x111   :  { %2801 = vmatpush2.bf16.msra.mxu0 %v4088_v10  ;;  %v4141_v10 = vld [vmem:[#allocation2 + $0x6e4] ss:$48 sps:$4 sm:$0xff]  }
 0x112   :  { %2854 = vmatpush2.bf16.msra.mxu1 %v4091_v11  ;;  %2802 = vmatprep.subr.bf16.mxu0 %v4096_v13  ;;  %v4139_v13 = vld [vmem:[#allocation2 + $0x6e0] ss:$48 sps:$4 sm:$0xff]  }
 0x113   :  { %2855 = vmatprep.subr.bf16.mxu1 %v4099_v14 }
 0x115   :  { %2803 = vmatpush2.bf16.msra.mxu0 %v4094_v15  ;;  %v4144_v15 = vld [vmem:[#allocation2 + $0x84] ss:$48 sps:$4 sm:$0xff]  }
 0x116   :  { %2856 = vmatpush2.bf16.msra.mxu1 %v4097_v16  ;;  %2804 = vmatprep.subr.bf16.mxu0 %v4102_v18  ;;  %v4147_v16 = vld [vmem:[#allocation2 + $0x684] ss:$48 sps:$4 sm:$0xff]  }
 0x117   :  { %2857 = vmatprep.subr.bf16.mxu1 %v4105_v19 }
 0x119   :  { %2805 = vmatpush2.bf16.msra.mxu0 %v4100_v20 }
 0x11a   :  { %2858 = vmatpush2.bf16.msra.mxu1 %v4103_v21  ;;  %2880 = vmatprep.subr.bf16.mxu0 %v4108_v24  ;;  %v4142_v24 = vld [vmem:[#allocation2 + $0x80] ss:$48 sps:$4 sm:$0xff]  }
 0x11b   :  { %2933 = vmatprep.subr.bf16.mxu1 %v4111_v25  ;;  %v4145_v25 = vld [vmem:[#allocation2 + $0x680] ss:$48 sps:$4 sm:$0xff]  }
 0x11c   :  { %v2490_v35 = vpop.f32.mrf.mxu0  ;;  %2807 = vmatmul.mubr.bf16.vlgmr.msra.gmra.mxu0 %v4475_v28 }
 0x11d   :  { %v2543_v26 = vpop.f32.mrf.mxu1  ;;  %2860 = vmatmul.mubr.bf16.vlgmr.msra.gmra.mxu1 %v4481_v33  ;;  %v2491_v38 = vadd.f32 %v2490_v35, %v4465_v31  ;;  %2881 = vmatpush1.bf16.msra.mxu0 %v4106_v30 }
 0x11e   :  { %2934 = vmatpush1.bf16.msra.mxu1 %v4109_v32  ;;  %v2492_v40 = vpop.f32.mrf.mxu0  ;;  %2882 = vmatprep.subr.bf16.mxu0 %v4114_v4  ;;  %v4150_v4 = vld [vmem:[#allocation2 + $0x24] ss:$48 sps:$4 sm:$0xff]  }
 0x11f   :  { %v2545_v41 = vpop.f32.mrf.mxu1  ;;  %2935 = vmatprep.subr.bf16.mxu1 %v4117_v5  ;;  %v2544_v50 = vadd.f32 %v2543_v26, %v2491_v38  ;;  %v2493_v43 = vadd.f32 %v2492_v40, %v4470_v34  ;;  %2816 = vmatprep.mubr.bf16.mxu0 %v4489_v44  ;;  %v4153_v5 = vld [vmem:[#allocation2 + $0x624] ss:$48 sps:$4 sm:$0xff]   ;;  %v4148_v40 = vld [vmem:[#allocation2 + $0x20] ss:$48 sps:$4 sm:$0xff]  }
 0x120   :  { %2869 = vmatprep.mubr.bf16.mxu1 %v4495_v45  ;;  %v2494_v46 = vpop.f32.mrf.mxu0 }
 0x121   :  { %v2547_v47 = vpop.f32.mrf.mxu1  ;;  %v2546_v49 = vadd.f32 %v2545_v41, %v2493_v43  ;;  %v2495_v51 = vadd.f32 %v2494_v46, %v4465_v31  ;;  %2883 = vmatpush1.bf16.msra.mxu0 %v4112_v37  ;;  %v4151_v41 = vld [vmem:[#allocation2 + $0x620] ss:$48 sps:$4 sm:$0xff]  }
 0x122   :  { %2936 = vmatpush1.bf16.msra.mxu1 %v4115_v39  ;;  %v2496_v54 = vpop.f32.mrf.mxu0  ;;  %2884 = vmatprep.subr.bf16.mxu0 %v4120_v42 }
 0x123   :  { %2937 = vmatprep.subr.bf16.mxu1 %v4123_v48  ;;  %v3682_v57 = vpack.c.bf16 %v2546_v49, %v2544_v50  ;;  %v2497_v58 = vadd.f32 %v2496_v54, %v4470_v34  ;;  %v2549_v59 = vpop.f32.mrf.mxu1  ;;  %v2548_v62 = vadd.f32 %v2547_v47, %v2495_v51  ;;  %v4156_v50 = vld [vmem:[#allocation2 + $0x5c4] ss:$48 sps:$4 sm:$0xff]   ;;  %v4157_v47 = vld [vmem:[#allocation2 + $0xbc0] ss:$48 sps:$4 sm:$0xff]  }
 0x124   :  { %2817 = vmatmul.mubr.bf16.gmra.mxu0 %v4503_v60  ;;  %v2500_v11 = vpop.f32.mrf.mxu0  ;;  %v4162_v51 = vld [vmem:[#allocation2 + $0x564] ss:$48 sps:$4 sm:$0xff]   ;;  %v4163_v54 = vld [vmem:[#allocation2 + $0xb60] ss:$48 sps:$4 sm:$0xff]  }
 0x125   :  { %2870 = vmatmul.mubr.bf16.gmra.mxu1 %v4509_v61  ;;  %3236 = vst [vmem:[%s4643_s3] sm:$0xff] %v3682_v57  ;;  %v2550_v63 = vadd.f32 %v2549_v59, %v2497_v58  ;;  %2885 = vmatpush1.bf16.msra.mxu0 %v4118_v52  ;;  %v2501_v14 = vadd.f32 %v2500_v11, %v4465_v31  ;;  %v4165_v52 = vld [vmem:[#allocation2 + $0xb64] ss:$48 sps:$4 sm:$0xff]   ;;  %v4166_v57 = vld [vmem:[#allocation2 + $0x500] ss:$48 sps:$4 sm:$0xff]  }
 0x126   :  { %2938 = vmatpush1.bf16.msra.mxu1 %v4121_v53  ;;  %2886 = vmatprep.subr.bf16.mxu0 %v4126_v55  ;;  %v2502_v18 = vpop.f32.mrf.mxu0  ;;  %v4160_v53 = vld [vmem:[#allocation2 + $0x560] ss:$48 sps:$4 sm:$0xff]   ;;  %v4168_v55 = vld [vmem:[#allocation2 + $0x504] ss:$48 sps:$4 sm:$0xff]  }
 0x127   :  { %2939 = vmatprep.subr.bf16.mxu1 %v4129_v56  ;;  %v3688_v6 = vpack.c.bf16 %v2550_v63, %v2548_v62  ;;  %2912 = vmatprep.mubr.bf16.mxu0 %v4447_v36  ;;  %v2503_v19 = vadd.f32 %v2502_v18, %v4470_v34  ;;  %v2553_v20 = vpop.f32.mrf.mxu1  ;;  %v4171_v56 = vld [vmem:[#allocation2 + $0xb04] ss:$48 sps:$4 sm:$0xff]   ;;  %v4169_v58 = vld [vmem:[#allocation2 + $0xb00] ss:$48 sps:$4 sm:$0xff]  }
 0x128   :  { %2965 = vmatprep.mubr.bf16.mxu1 %v4453_v27  ;;  %v2504_v21 = vpop.f32.mrf.mxu0  ;;  %v2554_v30 = vadd.f32 %v2553_v20, %v2501_v14  ;;  %v4174_v59 = vld [vmem:[#allocation2 + $0x4a4] ss:$48 sps:$4 sm:$0xff]   ;;  %v4172_v63 = vld [vmem:[#allocation2 + $0x4a0] ss:$48 sps:$4 sm:$0xff]   ;;  %v446_v20 = vsub.s32 2, %v4456_v17 }
 0x129   :  { %3242 = vst [vmem:[%s4643_s3 + $0x30] sm:$0xff] %v3688_v6  ;;  %2887 = vmatpush1.bf16.msra.mxu0 %v4124_v0  ;;  %v2505_v32 = vadd.f32 %v2504_v21, %v4465_v31  ;;  %v2555_v35 = vpop.f32.mrf.mxu1  ;;  %v4159_v31 = vld [vmem:[#allocation2 + $0xbc4] ss:$48 sps:$4 sm:$0xff]   ;;  %v4175_v0 = vld [vmem:[#allocation2 + $0xaa0] ss:$48 sps:$4 sm:$0xff]  }
 0x12a   :  { %2940 = vmatpush1.bf16.msra.mxu1 %v4127_v1  ;;  %2888 = vmatprep.subr.bf16.mxu0 %v4132_v2  ;;  %v2506_v26 = vpop.f32.mrf.mxu0  ;;  %v2556_v37 = vadd.f32 %v2555_v35, %v2503_v19  ;;  %v4177_v62 = vld [vmem:[#allocation2 + $0xaa4] ss:$48 sps:$4 sm:$0xff]   ;;  %v4181_v6 = vld [vmem:[#allocation2 + $0xa40] ss:$48 sps:$4 sm:$0xff]   ;;  %v4204_v21 = vld [vmem:[#allocation2 + $0x2cc] ss:$48 sps:$4 sm:$0xff]  }
 0x12b   :  { %2941 = vmatprep.subr.bf16.mxu1 %v4135_v3  ;;  %v2507_v38 = vadd.f32 %v2506_v26, %v4470_v34  ;;  %v2557_v39 = vpop.f32.mrf.mxu1  ;;  %v4154_v34 = vld [vmem:[#allocation2 + $0x5c0] ss:$48 sps:$4 sm:$0xff]   ;;  %v4180_v1 = vld [vmem:[#allocation2 + $0x444] ss:$48 sps:$4 sm:$0xff]   ;;  %v4213_v35 = vld [vmem:[#allocation2 + $0x86c] ss:$48 sps:$4 sm:$0xff]  }
 0x12c   :  { %v3694_v42 = vpack.c.bf16 %v2556_v37, %v2554_v30  ;;  %v2558_v48 = vadd.f32 %v2557_v39, %v2505_v32  ;;  %v4183_v2 = vld [vmem:[#allocation2 + $0xa44] ss:$48 sps:$4 sm:$0xff]   ;;  %v4178_v3 = vld [vmem:[#allocation2 + $0x440] ss:$48 sps:$4 sm:$0xff]   ;;  %v4535_v30 = vrot.slane %v4458_v22, %v446_v20  ;;  %v4202_v32 = vld [vmem:[#allocation2 + $0x2c8] ss:$48 sps:$4 sm:$0xff]  }
 0x12d   :  { %2889 = vmatpush1.bf16.msra.mxu0 %v4130_v7  ;;  %v2559_v43 = vpop.f32.mrf.mxu1  ;;  %v4186_v7 = vld [vmem:[#allocation2 + $0x3e4] ss:$48 sps:$4 sm:$0xff]   ;;  %v4193_v14 = vld [vmem:[#allocation2 + $0x980] ss:$48 sps:$4 sm:$0xff]  }
 0x12e   :  { %2942 = vmatpush1.bf16.msra.mxu1 %v4133_v8  ;;  %2890 = vmatprep.subr.bf16.mxu0 %v4138_v9  ;;  %3248 = vst [vmem:[%s4643_s3 + $0x60] sm:$0xff] %v3694_v42  ;;  %v2560_v46 = vadd.f32 %v2559_v43, %v2507_v38  ;;  %v4189_v8 = vld [vmem:[#allocation2 + $0x9e4] ss:$48 sps:$4 sm:$0xff]   ;;  %v4184_v9 = vld [vmem:[#allocation2 + $0x3e0] ss:$48 sps:$4 sm:$0xff]  }
 0x12f   :  { %2943 = vmatprep.subr.bf16.mxu1 %v4141_v10  ;;  %v4187_v10 = vld [vmem:[#allocation2 + $0x9e0] ss:$48 sps:$4 sm:$0xff]   ;;  %v4192_v11 = vld [vmem:[#allocation2 + $0x384] ss:$48 sps:$4 sm:$0xff]  }
 0x130   :  { %v3700_v49 = vpack.c.bf16 %v2560_v46, %v2558_v48  ;;  %v4196_v18 = vld [vmem:[#allocation2 + $0x320] ss:$48 sps:$4 sm:$0xff]  }
 0x131   :  { %2891 = vmatpush1.bf16.msra.mxu0 %v4136_v12  ;;  %v4195_v12 = vld [vmem:[#allocation2 + $0x984] ss:$48 sps:$4 sm:$0xff]   ;;  %v4199_v19 = vld [vmem:[#allocation2 + $0x920] ss:$48 sps:$4 sm:$0xff]  }
 0x132   :  { %2944 = vmatpush1.bf16.msra.mxu1 %v4139_v13  ;;  %2892 = vmatprep.subr.bf16.mxu0 %v4144_v15  ;;  %3254 = vst [vmem:[%s4643_s3 + $0x90] sm:$0xff] %v3700_v49  ;;  %v4190_v13 = vld [vmem:[#allocation2 + $0x380] ss:$48 sps:$4 sm:$0xff]   ;;  %v4198_v15 = vld [vmem:[#allocation2 + $0x324] ss:$48 sps:$4 sm:$0xff]  }
 0x133   :  { %2945 = vmatprep.subr.bf16.mxu1 %v4147_v16  ;;  %v4201_v16 = vld [vmem:[#allocation2 + $0x924] ss:$48 sps:$4 sm:$0xff]  }
 0x135   :  { %2893 = vmatpush1.bf16.msra.mxu0 %v4142_v24  ;;  %v4207_v24 = vld [vmem:[#allocation2 + $0x8cc] ss:$48 sps:$4 sm:$0xff]  }
 0x136   :  { %2946 = vmatpush1.bf16.msra.mxu1 %v4145_v25  ;;  %2894 = vmatprep.subr.bf16.mxu0 %v4150_v4  ;;  %v450_v25 = vsub.s32 3, %v4456_v17  ;;  %v4205_v4 = vld [vmem:[#allocation2 + $0x8c8] ss:$48 sps:$4 sm:$0xff]  }
 0x137   :  { %2947 = vmatprep.subr.bf16.mxu1 %v4153_v5  ;;  %v4210_v5 = vld [vmem:[#allocation2 + $0x26c] ss:$48 sps:$4 sm:$0xff]  }
 0x138   :  { %v4540_v26 = vrot.slane %v4458_v22, %v450_v25 }
 0x139   :  { %2895 = vmatpush1.bf16.msra.mxu0 %v4148_v40  ;;  %v4208_v40 = vld [vmem:[#allocation2 + $0x268] ss:$48 sps:$4 sm:$0xff]  }
 0x13a   :  { %2948 = vmatpush1.bf16.msra.mxu1 %v4151_v41  ;;  %2896 = vmatprep.subr.bf16.mxu0 %v4156_v50  ;;  %v4211_v41 = vld [vmem:[#allocation2 + $0x868] ss:$48 sps:$4 sm:$0xff]   ;;  %v4216_v50 = vld [vmem:[#allocation2 + $0x20c] ss:$48 sps:$4 sm:$0xff]  }
 0x13b   :  { %2949 = vmatprep.subr.bf16.mxu1 %v4159_v31  ;;  %v4219_v31 = vld [vmem:[#allocation2 + $0x80c] ss:$48 sps:$4 sm:$0xff]  }
 0x13d   :  { %2897 = vmatpush2.bf16.msra.mxu0 %v4154_v34 }
 0x13e   :  { %2950 = vmatpush2.bf16.msra.mxu1 %v4157_v47  ;;  %2898 = vmatprep.subr.bf16.mxu0 %v4162_v51 }
 0x13f   :  { %2951 = vmatprep.subr.bf16.mxu1 %v4165_v52  ;;  %v4214_v52 = vld [vmem:[#allocation2 + $0x208] ss:$48 sps:$4 sm:$0xff]  }
 0x141   :  { %2899 = vmatpush2.bf16.msra.mxu0 %v4160_v53  ;;  %v4217_v53 = vld [vmem:[#allocation2 + $0x808] ss:$48 sps:$4 sm:$0xff]  }
 0x142   :  { %2952 = vmatpush2.bf16.msra.mxu1 %v4163_v54  ;;  %2900 = vmatprep.subr.bf16.mxu0 %v4168_v55 }
 0x143   :  { %2953 = vmatprep.subr.bf16.mxu1 %v4171_v56  ;;  %v4222_v56 = vld [vmem:[#allocation2 + $0x1ac] ss:$48 sps:$4 sm:$0xff]  }
 0x145   :  { %2901 = vmatpush2.bf16.msra.mxu0 %v4166_v57  ;;  %v4225_v57 = vld [vmem:[#allocation2 + $0x7ac] ss:$48 sps:$4 sm:$0xff]  }
 0x146   :  { %2954 = vmatpush2.bf16.msra.mxu1 %v4169_v58  ;;  %2902 = vmatprep.subr.bf16.mxu0 %v4174_v59 }
 0x147   :  { %2955 = vmatprep.subr.bf16.mxu1 %v4177_v62 }
 0x149   :  { %2903 = vmatpush2.bf16.msra.mxu0 %v4172_v63 }
 0x14a   :  { %2956 = vmatpush2.bf16.msra.mxu1 %v4175_v0  ;;  %2904 = vmatprep.subr.bf16.mxu0 %v4180_v1 }
 0x14b   :  { %2957 = vmatprep.subr.bf16.mxu1 %v4183_v2  ;;  %v4220_v2 = vld [vmem:[#allocation2 + $0x1a8] ss:$48 sps:$4 sm:$0xff]  }
 0x14d   :  { %2905 = vmatpush2.bf16.msra.mxu0 %v4178_v3  ;;  %v4223_v3 = vld [vmem:[#allocation2 + $0x7a8] ss:$48 sps:$4 sm:$0xff]  }
 0x14e   :  { %2958 = vmatpush2.bf16.msra.mxu1 %v4181_v6  ;;  %2906 = vmatprep.subr.bf16.mxu0 %v4186_v7  ;;  %v4228_v7 = vld [vmem:[#allocation2 + $0x14c] ss:$48 sps:$4 sm:$0xff]  }
 0x14f   :  { %2959 = vmatprep.subr.bf16.mxu1 %v4189_v8  ;;  %v4231_v8 = vld [vmem:[#allocation2 + $0x74c] ss:$48 sps:$4 sm:$0xff]  }
 0x151   :  { %2907 = vmatpush2.bf16.msra.mxu0 %v4184_v9 }
 0x152   :  { %2960 = vmatpush2.bf16.msra.mxu1 %v4187_v10  ;;  %2908 = vmatprep.subr.bf16.mxu0 %v4192_v11 }
 0x153   :  { %2961 = vmatprep.subr.bf16.mxu1 %v4195_v12 }
 0x155   :  { %2909 = vmatpush2.bf16.msra.mxu0 %v4190_v13 }
 0x156   :  { %2962 = vmatpush2.bf16.msra.mxu1 %v4193_v14  ;;  %2910 = vmatprep.subr.bf16.mxu0 %v4198_v15 }
 0x157   :  { %2963 = vmatprep.subr.bf16.mxu1 %v4201_v16  ;;  %v4226_v16 = vld [vmem:[#allocation2 + $0x148] ss:$48 sps:$4 sm:$0xff]  }
 0x159   :  { %2911 = vmatpush2.bf16.msra.mxu0 %v4196_v18  ;;  %v4229_v18 = vld [vmem:[#allocation2 + $0x748] ss:$48 sps:$4 sm:$0xff]  }
 0x15a   :  { %2964 = vmatpush2.bf16.msra.mxu1 %v4199_v19  ;;  %2986 = vmatprep.subr.bf16.mxu0 %v4204_v21 }
 0x15b   :  { %3039 = vmatprep.subr.bf16.mxu1 %v4207_v24  ;;  %v4234_v24 = vld [vmem:[#allocation2 + $0xec] ss:$48 sps:$4 sm:$0xff]  }
 0x15c   :  { %v2596_v37 = vpop.f32.mrf.mxu0  ;;  %2913 = vmatmul.mubr.bf16.vlgmr.msra.gmra.mxu0 %v4475_v28 }
 0x15d   :  { %v2649_v38 = vpop.f32.mrf.mxu1  ;;  %2966 = vmatmul.mubr.bf16.vlgmr.msra.gmra.mxu1 %v4481_v33  ;;  %v2597_v39 = vadd.f32 %v2596_v37, %v4535_v30  ;;  %2987 = vmatpush1.bf16.msra.mxu0 %v4202_v32  ;;  %v4237_v32 = vld [vmem:[#allocation2 + $0x6ec] ss:$48 sps:$4 sm:$0xff]   ;;  %v4232_v37 = vld [vmem:[#allocation2 + $0xe8] ss:$48 sps:$4 sm:$0xff]  }
 0x15e   :  { %3040 = vmatpush1.bf16.msra.mxu1 %v4205_v4  ;;  %v2598_v42 = vpop.f32.mrf.mxu0  ;;  %2988 = vmatprep.subr.bf16.mxu0 %v4210_v5 }
 0x15f   :  { %v2651_v48 = vpop.f32.mrf.mxu1  ;;  %3041 = vmatprep.subr.bf16.mxu1 %v4213_v35  ;;  %v2650_v43 = vadd.f32 %v2649_v38, %v2597_v39  ;;  %v2599_v46 = vadd.f32 %v2598_v42, %v4540_v26  ;;  %2922 = vmatprep.mubr.bf16.mxu0 %v4489_v44  ;;  %v4235_v38 = vld [vmem:[#allocation2 + $0x6e8] ss:$48 sps:$4 sm:$0xff]   ;;  %v4240_v39 = vld [vmem:[#allocation2 + $0x8c] ss:$48 sps:$4 sm:$0xff]  }
 0x160   :  { %2975 = vmatprep.mubr.bf16.mxu1 %v4495_v45  ;;  %v2600_v34 = vpop.f32.mrf.mxu0  ;;  %v4238_v42 = vld [vmem:[#allocation2 + $0x88] ss:$48 sps:$4 sm:$0xff]  }
 0x161   :  { %v2653_v47 = vpop.f32.mrf.mxu1  ;;  %v2652_v49 = vadd.f32 %v2651_v48, %v2599_v46  ;;  %v2601_v51 = vadd.f32 %v2600_v34, %v4535_v30  ;;  %2989 = vmatpush1.bf16.msra.mxu0 %v4208_v40  ;;  %v4243_v40 = vld [vmem:[#allocation2 + $0x68c] ss:$48 sps:$4 sm:$0xff]   ;;  %v4241_v48 = vld [vmem:[#allocation2 + $0x688] ss:$48 sps:$4 sm:$0xff]  }
 0x162   :  { %3042 = vmatpush1.bf16.msra.mxu1 %v4211_v41  ;;  %v2602_v54 = vpop.f32.mrf.mxu0  ;;  %2990 = vmatprep.subr.bf16.mxu0 %v4216_v50  ;;  %v4249_v50 = vld [vmem:[#allocation2 + $0x62c] ss:$48 sps:$4 sm:$0xff]  }
 0x163   :  { %v2655_v55 = vpop.f32.mrf.mxu1  ;;  %3043 = vmatprep.subr.bf16.mxu1 %v4219_v31  ;;  %v3683_v58 = vpack.c.bf16 %v2652_v49, %v2650_v43  ;;  %v2603_v59 = vadd.f32 %v2602_v54, %v4540_v26  ;;  %v2654_v0 = vadd.f32 %v2653_v47, %v2601_v51  ;;  %v4244_v31 = vld [vmem:[#allocation2 + $0x28] ss:$48 sps:$4 sm:$0xff]   ;;  %v4252_v46 = vld [vmem:[#allocation2 + $0x5cc] ss:$48 sps:$4 sm:$0xff]  }
 0x164   :  { %2923 = vmatmul.mubr.bf16.gmra.mxu0 %v4503_v60  ;;  %v2606_v62 = vpop.f32.mrf.mxu0  ;;  %v4247_v43 = vld [vmem:[#allocation2 + $0x628] ss:$48 sps:$4 sm:$0xff]   ;;  %v4255_v34 = vld [vmem:[#allocation2 + $0xbcc] ss:$48 sps:$4 sm:$0xff]  }
 0x165   :  { %2976 = vmatmul.mubr.bf16.gmra.mxu1 %v4509_v61  ;;  %v2659_v63 = vpop.f32.mrf.mxu1  ;;  %3237 = vst [vmem:[%s4643_s3 + $0x8] sm:$0xff] %v3683_v58  ;;  %v2656_v1 = vadd.f32 %v2655_v55, %v2603_v59  ;;  %2991 = vmatpush1.bf16.msra.mxu0 %v4214_v52  ;;  %v2607_v6 = vadd.f32 %v2606_v62, %v4535_v30  ;;  %v4250_v47 = vld [vmem:[#allocation2 + $0x5c8] ss:$48 sps:$4 sm:$0xff]   ;;  %v4258_v51 = vld [vmem:[#allocation2 + $0x56c] ss:$48 sps:$4 sm:$0xff]  }
 0x166   :  { %3044 = vmatpush1.bf16.msra.mxu1 %v4217_v53  ;;  %2992 = vmatprep.subr.bf16.mxu0 %v4222_v56  ;;  %v2608_v9 = vpop.f32.mrf.mxu0  ;;  %v4253_v49 = vld [vmem:[#allocation2 + $0xbc8] ss:$48 sps:$4 sm:$0xff]   ;;  %v4261_v52 = vld [vmem:[#allocation2 + $0xb6c] ss:$48 sps:$4 sm:$0xff]  }
 0x167   :  { %3045 = vmatprep.subr.bf16.mxu1 %v4225_v57  ;;  %v2661_v10 = vpop.f32.mrf.mxu1  ;;  %v3689_v11 = vpack.c.bf16 %v2656_v1, %v2654_v0  ;;  %v2609_v12 = vadd.f32 %v2608_v9, %v4540_v26  ;;  %v2660_v13 = vadd.f32 %v2659_v63, %v2607_v6  ;;  %3018 = vmatprep.mubr.bf16.mxu0 %v4447_v36  ;;  %v4256_v53 = vld [vmem:[#allocation2 + $0x568] ss:$48 sps:$4 sm:$0xff]   ;;  %v4264_v55 = vld [vmem:[#allocation2 + $0x50c] ss:$48 sps:$4 sm:$0xff]  }
 0x168   :  { %3071 = vmatprep.mubr.bf16.mxu1 %v4453_v27  ;;  %v2610_v14 = vpop.f32.mrf.mxu0  ;;  %v4259_v54 = vld [vmem:[#allocation2 + $0xb68] ss:$48 sps:$4 sm:$0xff]   ;;  %v4267_v56 = vld [vmem:[#allocation2 + $0xb0c] ss:$48 sps:$4 sm:$0xff]  }
 0x169   :  { %v2663_v15 = vpop.f32.mrf.mxu1  ;;  %3243 = vst [vmem:[%s4643_s3 + $0x38] sm:$0xff] %v3689_v11  ;;  %2993 = vmatpush1.bf16.msra.mxu0 %v4220_v2  ;;  %v2611_v19 = vadd.f32 %v2610_v14, %v4535_v30  ;;  %v2662_v21 = vadd.f32 %v2661_v10, %v2609_v12  ;;  %v4262_v57 = vld [vmem:[#allocation2 + $0x508] ss:$48 sps:$4 sm:$0xff]   ;;  %v4270_v59 = vld [vmem:[#allocation2 + $0x4ac] ss:$48 sps:$4 sm:$0xff]  }
 0x16a   :  { %3046 = vmatpush1.bf16.msra.mxu1 %v4223_v3  ;;  %2994 = vmatprep.subr.bf16.mxu0 %v4228_v7  ;;  %v2612_v36 = vpop.f32.mrf.mxu0  ;;  %v4265_v58 = vld [vmem:[#allocation2 + $0xb08] ss:$48 sps:$4 sm:$0xff]   ;;  %v4273_v62 = vld [vmem:[#allocation2 + $0xaac] ss:$48 sps:$4 sm:$0xff]  }
 0x16b   :  { %3047 = vmatprep.subr.bf16.mxu1 %v4231_v8  ;;  %v2665_v4 = vpop.f32.mrf.mxu1  ;;  %v3695_v27 = vpack.c.bf16 %v2662_v21, %v2660_v13  ;;  %v2613_v5 = vadd.f32 %v2612_v36, %v4540_v26  ;;  %v2664_v35 = vadd.f32 %v2663_v15, %v2611_v19  ;;  %v4246_v26 = vld [vmem:[#allocation2 + $0x2c] ss:$48 sps:$4 sm:$0xff]   ;;  %v4268_v63 = vld [vmem:[#allocation2 + $0x4a8] ss:$48 sps:$4 sm:$0xff]   ;;  %v454_v21 = vsub.s32 4, %v4456_v17 }
 0x16c   :  { %v4271_v0 = vld [vmem:[#allocation2 + $0xaa8] ss:$48 sps:$4 sm:$0xff]   ;;  %v4276_v1 = vld [vmem:[#allocation2 + $0x44c] ss:$48 sps:$4 sm:$0xff]  }
 0x16d   :  { %2995 = vmatpush1.bf16.msra.mxu0 %v4226_v16  ;;  %3249 = vst [vmem:[%s4643_s3 + $0x68] sm:$0xff] %v3695_v27  ;;  %v2666_v30 = vadd.f32 %v2665_v4, %v2613_v5  ;;  %v4279_v2 = vld [vmem:[#allocation2 + $0xa4c] ss:$48 sps:$4 sm:$0xff]   ;;  %v4274_v3 = vld [vmem:[#allocation2 + $0x448] ss:$48 sps:$4 sm:$0xff]  }
 0x16e   :  { %3048 = vmatpush1.bf16.msra.mxu1 %v4229_v18  ;;  %2996 = vmatprep.subr.bf16.mxu0 %v4234_v24  ;;  %v4277_v6 = vld [vmem:[#allocation2 + $0xa48] ss:$48 sps:$4 sm:$0xff]   ;;  %v4282_v7 = vld [vmem:[#allocation2 + $0x3ec] ss:$48 sps:$4 sm:$0xff]   ;;  %v458_v24 = vsub.s32 5, %v4456_v17 }
 0x16f   :  { %3049 = vmatprep.subr.bf16.mxu1 %v4237_v32  ;;  %v3701_v41 = vpack.c.bf16 %v2666_v30, %v2664_v35  ;;  %v4285_v8 = vld [vmem:[#allocation2 + $0x9ec] ss:$48 sps:$4 sm:$0xff]   ;;  %v4280_v9 = vld [vmem:[#allocation2 + $0x3e8] ss:$48 sps:$4 sm:$0xff]   ;;  %v455_v32 = vrot.slane %v4458_v22, %v454_v21 }
 0x170   :  { %v4283_v10 = vld [vmem:[#allocation2 + $0x9e8] ss:$48 sps:$4 sm:$0xff]   ;;  %v4288_v11 = vld [vmem:[#allocation2 + $0x38c] ss:$48 sps:$4 sm:$0xff]   ;;  %v459_v36 = vrot.slane %v4458_v22, %v458_v24 }
 0x171   :  { %2997 = vmatpush1.bf16.msra.mxu0 %v4232_v37  ;;  %3255 = vst [vmem:[%s4643_s3 + $0x98] sm:$0xff] %v3701_v41  ;;  %v4291_v12 = vld [vmem:[#allocation2 + $0x98c] ss:$48 sps:$4 sm:$0xff]   ;;  %v4286_v13 = vld [vmem:[#allocation2 + $0x388] ss:$48 sps:$4 sm:$0xff]  }
 0x172   :  { %3050 = vmatpush1.bf16.msra.mxu1 %v4235_v38  ;;  %2998 = vmatprep.subr.bf16.mxu0 %v4240_v39  ;;  %v4289_v14 = vld [vmem:[#allocation2 + $0x988] ss:$48 sps:$4 sm:$0xff]   ;;  %v4294_v15 = vld [vmem:[#allocation2 + $0x32c] ss:$48 sps:$4 sm:$0xff]  }
 0x173   :  { %3051 = vmatprep.subr.bf16.mxu1 %v4243_v40  ;;  %v4297_v16 = vld [vmem:[#allocation2 + $0x92c] ss:$48 sps:$4 sm:$0xff]   ;;  %v4292_v18 = vld [vmem:[#allocation2 + $0x328] ss:$48 sps:$4 sm:$0xff]  }
 0x174   :  { %v4295_v19 = vld [vmem:[#allocation2 + $0x928] ss:$48 sps:$4 sm:$0xff]  }
 0x175   :  { %2999 = vmatpush1.bf16.msra.mxu0 %v4238_v42 }
 0x176   :  { %3052 = vmatpush1.bf16.msra.mxu1 %v4241_v48  ;;  %3000 = vmatprep.subr.bf16.mxu0 %v4246_v26 }
 0x177   :  { %3053 = vmatprep.subr.bf16.mxu1 %v4249_v50 }
 0x179   :  { %3001 = vmatpush1.bf16.msra.mxu0 %v4244_v31 }
 0x17a   :  { %3054 = vmatpush1.bf16.msra.mxu1 %v4247_v43  ;;  %3002 = vmatprep.subr.bf16.mxu0 %v4252_v46 }
 0x17b   :  { %3055 = vmatprep.subr.bf16.mxu1 %v4255_v34 }
 0x17d   :  { %3003 = vmatpush2.bf16.msra.mxu0 %v4250_v47 }
 0x17e   :  { %3056 = vmatpush2.bf16.msra.mxu1 %v4253_v49  ;;  %3004 = vmatprep.subr.bf16.mxu0 %v4258_v51 }
 0x17f   :  { %3057 = vmatprep.subr.bf16.mxu1 %v4261_v52 }
 0x181   :  { %3005 = vmatpush2.bf16.msra.mxu0 %v4256_v53 }
 0x182   :  { %3058 = vmatpush2.bf16.msra.mxu1 %v4259_v54  ;;  %3006 = vmatprep.subr.bf16.mxu0 %v4264_v55 }
 0x183   :  { %3059 = vmatprep.subr.bf16.mxu1 %v4267_v56 }
 0x185   :  { %3007 = vmatpush2.bf16.msra.mxu0 %v4262_v57 }
 0x186   :  { %3060 = vmatpush2.bf16.msra.mxu1 %v4265_v58  ;;  %3008 = vmatprep.subr.bf16.mxu0 %v4270_v59 }
 0x187   :  { %3061 = vmatprep.subr.bf16.mxu1 %v4273_v62 }
 0x189   :  { %3009 = vmatpush2.bf16.msra.mxu0 %v4268_v63  ;;  %v462_v63 = vsub.s32 6, %v4456_v17 }
 0x18a   :  { %3062 = vmatpush2.bf16.msra.mxu1 %v4271_v0  ;;  %3010 = vmatprep.subr.bf16.mxu0 %v4276_v1  ;;  %v466_v0 = vsub.s32 7, %v4456_v17 }
 0x18b   :  { %3063 = vmatprep.subr.bf16.mxu1 %v4279_v2  ;;  %v463_v1 = vrot.slane %v4458_v22, %v462_v63 }
 0x18c   :  { %v467_v2 = vrot.slane %v4458_v22, %v466_v0 }
 0x18d   :  { %3011 = vmatpush2.bf16.msra.mxu0 %v4274_v3 }
 0x18e   :  { %3064 = vmatpush2.bf16.msra.mxu1 %v4277_v6  ;;  %3012 = vmatprep.subr.bf16.mxu0 %v4282_v7 }
 0x18f   :  { %3065 = vmatprep.subr.bf16.mxu1 %v4285_v8 }
 0x191   :  { %3013 = vmatpush2.bf16.msra.mxu0 %v4280_v9 }
 0x192   :  { %3066 = vmatpush2.bf16.msra.mxu1 %v4283_v10  ;;  %3014 = vmatprep.subr.bf16.mxu0 %v4288_v11 }
 0x193   :  { %3067 = vmatprep.subr.bf16.mxu1 %v4291_v12 }
 0x195   :  { %3015 = vmatpush2.bf16.msra.mxu0 %v4286_v13 }
 0x196   :  { %3068 = vmatpush2.bf16.msra.mxu1 %v4289_v14  ;;  %3016 = vmatprep.subr.bf16.mxu0 %v4294_v15 }
 0x197   :  { %3069 = vmatprep.subr.bf16.mxu1 %v4297_v16 }
 0x199   :  { %3017 = vmatpush2.bf16.msra.mxu0 %v4292_v18 }
 0x19a   :  { %3070 = vmatpush2.bf16.msra.mxu1 %v4295_v19 }
 0x19c   :  { %v2702_v4 = vpop.f32.mrf.mxu0  ;;  %3019 = vmatmul.mubr.bf16.vlgmr.msra.gmra.mxu0 %v4475_v28 }
 0x19d   :  { %v2755_v27 = vpop.f32.mrf.mxu1  ;;  %3072 = vmatmul.mubr.bf16.vlgmr.msra.gmra.mxu1 %v4481_v33  ;;  %v2703_v5 = vadd.f32 %v2702_v4, %v455_v32  ;;  %3028 = vmatprep.mubr.bf16.mxu0 %v4489_v44 }
 0x19e   :  { %3081 = vmatprep.mubr.bf16.mxu1 %v4495_v45  ;;  %v2704_v35 = vpop.f32.mrf.mxu0 }
 0x19f   :  { %v2757_v37 = vpop.f32.mrf.mxu1  ;;  %v2756_v38 = vadd.f32 %v2755_v27, %v2703_v5  ;;  %v2705_v30 = vadd.f32 %v2704_v35, %v459_v36 }
 0x1a0   :  { %v2706_v39 = vpop.f32.mrf.mxu0 }
 0x1a1   :  { %v2759_v40 = vpop.f32.mrf.mxu1  ;;  %v2758_v41 = vadd.f32 %v2757_v37, %v2705_v30  ;;  %v2707_v42 = vadd.f32 %v2706_v39, %v455_v32 }
 0x1a2   :  { %v2708_v48 = vpop.f32.mrf.mxu0 }
 0x1a3   :  { %v2761_v26 = vpop.f32.mrf.mxu1  ;;  %v3684_v50 = vpack.c.bf16 %v2758_v41, %v2756_v38  ;;  %v2709_v31 = vadd.f32 %v2708_v48, %v459_v36  ;;  %v2760_v44 = vadd.f32 %v2759_v40, %v2707_v42 }
 0x1a4   :  { %3029 = vmatmul.mubr.bf16.gmra.mxu0 %v4503_v60  ;;  %v2712_v28 = vpop.f32.mrf.mxu0 }
 0x1a5   :  { %3082 = vmatmul.mubr.bf16.gmra.mxu1 %v4509_v61  ;;  %v2765_v33 = vpop.f32.mrf.mxu1  ;;  %3238 = vst [vmem:[%s4643_s3 + $0x10] sm:$0xff] %v3684_v50  ;;  %v2762_v45 = vadd.f32 %v2761_v26, %v2709_v31  ;;  %v2713_v43 = vadd.f32 %v2712_v28, %v455_v32 }
 0x1a6   :  { %v2714_v46 = vpop.f32.mrf.mxu0 }
 0x1a7   :  { %v2767_v34 = vpop.f32.mrf.mxu1  ;;  %v3690_v47 = vpack.c.bf16 %v2762_v45, %v2760_v44  ;;  %v2715_v49 = vadd.f32 %v2714_v46, %v459_v36  ;;  %v2766_v51 = vadd.f32 %v2765_v33, %v2713_v43  ;;  %v433_v44 = vld [vmem:[#allocation4 + $0x8] sm:$0xf] }
 0x1a8   :  { %v2716_v52 = vpop.f32.mrf.mxu0  ;;  %v471_v45 = vrot.slane %v433_v44, %v438_v23  ;;  %v475_v43 = vrot.slane %v433_v44, %v442_v29 }
 0x1a9   :  { %v2769_v53 = vpop.f32.mrf.mxu1  ;;  %3244 = vst [vmem:[%s4643_s3 + $0x40] sm:$0xff] %v3690_v47  ;;  %v2717_v60 = vadd.f32 %v2716_v52, %v455_v32  ;;  %v2768_v61 = vadd.f32 %v2767_v34, %v2715_v49 }
 0x1aa   :  { %v2718_v54 = vpop.f32.mrf.mxu0 }
 0x1ab   :  { %v2771_v55 = vpop.f32.mrf.mxu1  ;;  %v3696_v56 = vpack.c.bf16 %v2768_v61, %v2766_v51  ;;  %v2719_v57 = vadd.f32 %v2718_v54, %v459_v36  ;;  %v2770_v58 = vadd.f32 %v2769_v53, %v2717_v60 }
 0x1ad   :  { %3250 = vst [vmem:[%s4643_s3 + $0x70] sm:$0xff] %v3696_v56  ;;  %v2772_v59 = vadd.f32 %v2771_v55, %v2719_v57 }
 0x1af   :  { %v3702_v62 = vpack.c.bf16 %v2772_v59, %v2770_v58 }
 0x1b1   :  { %3256 = vst [vmem:[%s4643_s3 + $0xa0] sm:$0xff] %v3702_v62 }
 0x1dc   :  { %v2808_v3 = vpop.f32.mrf.mxu0 }
 0x1dd   :  { %v2861_v6 = vpop.f32.mrf.mxu1  ;;  %v2809_v7 = vadd.f32 %v2808_v3, %v463_v1 }
 0x1de   :  { %v2810_v8 = vpop.f32.mrf.mxu0 }
 0x1df   :  { %v2863_v9 = vpop.f32.mrf.mxu1  ;;  %v2862_v10 = vadd.f32 %v2861_v6, %v2809_v7  ;;  %v2811_v11 = vadd.f32 %v2810_v8, %v467_v2 }
 0x1e0   :  { %v2812_v12 = vpop.f32.mrf.mxu0 }
 0x1e1   :  { %v2865_v13 = vpop.f32.mrf.mxu1  ;;  %v2864_v14 = vadd.f32 %v2863_v9, %v2811_v11  ;;  %v2813_v15 = vadd.f32 %v2812_v12, %v463_v1 }
 0x1e2   :  { %v2814_v16 = vpop.f32.mrf.mxu0 }
 0x1e3   :  { %v2867_v18 = vpop.f32.mrf.mxu1  ;;  %v3685_v19 = vpack.c.bf16 %v2864_v14, %v2862_v10  ;;  %v2815_v21 = vadd.f32 %v2814_v16, %v467_v2  ;;  %v2866_v22 = vadd.f32 %v2865_v13, %v2813_v15 }
 0x1e4   :  { %v2818_v24 = vpop.f32.mrf.mxu0 }
 0x1e5   :  { %v2871_v32 = vpop.f32.mrf.mxu1  ;;  %3239 = vst [vmem:[%s4643_s3 + $0x18] sm:$0xff] %v3685_v19  ;;  %v2868_v36 = vadd.f32 %v2867_v18, %v2815_v21  ;;  %v2819_v4 = vadd.f32 %v2818_v24, %v463_v1  ;;  %v479_v21 = vrot.slane %v433_v44, %v446_v20  ;;  %v483_v24 = vrot.slane %v433_v44, %v450_v25 }
 0x1e6   :  { %v2820_v27 = vpop.f32.mrf.mxu0 }
 0x1e7   :  { %v2873_v5 = vpop.f32.mrf.mxu1  ;;  %v3691_v35 = vpack.c.bf16 %v2868_v36, %v2866_v22  ;;  %v2821_v37 = vadd.f32 %v2820_v27, %v467_v2  ;;  %v2872_v38 = vadd.f32 %v2871_v32, %v2819_v4 }
 0x1e8   :  { %v2822_v30 = vpop.f32.mrf.mxu0 }
 0x1e9   :  { %v2875_v39 = vpop.f32.mrf.mxu1  ;;  %3245 = vst [vmem:[%s4643_s3 + $0x48] sm:$0xff] %v3691_v35  ;;  %v2823_v40 = vadd.f32 %v2822_v30, %v463_v1  ;;  %v2874_v41 = vadd.f32 %v2873_v5, %v2821_v37 }
 0x1ea   :  { %v2824_v42 = vpop.f32.mrf.mxu0 }
 0x1eb   :  { %v2877_v48 = vpop.f32.mrf.mxu1  ;;  %v3697_v26 = vpack.c.bf16 %v2874_v41, %v2872_v38  ;;  %v2825_v50 = vadd.f32 %v2824_v42, %v467_v2  ;;  %v2876_v31 = vadd.f32 %v2875_v39, %v2823_v40 }
 0x1ed   :  { %3251 = vst [vmem:[%s4643_s3 + $0x78] sm:$0xff] %v3697_v26  ;;  %v2878_v28 = vadd.f32 %v2877_v48, %v2825_v50 }
 0x1ef   :  { %v3703_v33 = vpack.c.bf16 %v2878_v28, %v2876_v31 }
 0x1f1   :  { %3257 = vst [vmem:[%s4643_s3 + $0xa8] sm:$0xff] %v3703_v33 }
 0x21c   :  { %v2914_v46 = vpop.f32.mrf.mxu0 }
 0x21d   :  { %v2967_v34 = vpop.f32.mrf.mxu1  ;;  %v2915_v47 = vadd.f32 %v2914_v46, %v471_v45 }
 0x21e   :  { %v2916_v49 = vpop.f32.mrf.mxu0 }
 0x21f   :  { %v2969_v51 = vpop.f32.mrf.mxu1  ;;  %v2968_v52 = vadd.f32 %v2967_v34, %v2915_v47  ;;  %v2917_v53 = vadd.f32 %v2916_v49, %v475_v43 }
 0x220   :  { %v2918_v60 = vpop.f32.mrf.mxu0 }
 0x221   :  { %v2971_v61 = vpop.f32.mrf.mxu1  ;;  %v2970_v54 = vadd.f32 %v2969_v51, %v2917_v53  ;;  %v2919_v55 = vadd.f32 %v2918_v60, %v471_v45 }
 0x222   :  { %v2920_v56 = vpop.f32.mrf.mxu0 }
 0x223   :  { %v2973_v57 = vpop.f32.mrf.mxu1  ;;  %v3686_v58 = vpack.c.bf16 %v2970_v54, %v2968_v52  ;;  %v2921_v59 = vadd.f32 %v2920_v56, %v475_v43  ;;  %v2972_v29 = vadd.f32 %v2971_v61, %v2919_v55 }
 0x224   :  { %v2924_v62 = vpop.f32.mrf.mxu0 }
 0x225   :  { %v2977_v23 = vpop.f32.mrf.mxu1  ;;  %3240 = vst [vmem:[%s4643_s3 + $0x20] sm:$0xff] %v3686_v58  ;;  %v2974_v63 = vadd.f32 %v2973_v57, %v2921_v59  ;;  %v2925_v0 = vadd.f32 %v2924_v62, %v471_v45 }
 0x226   :  { %v2926_v1 = vpop.f32.mrf.mxu0 }
 0x227   :  { %v2979_v2 = vpop.f32.mrf.mxu1  ;;  %v3692_v3 = vpack.c.bf16 %v2974_v63, %v2972_v29  ;;  %v2927_v6 = vadd.f32 %v2926_v1, %v475_v43  ;;  %v2978_v7 = vadd.f32 %v2977_v23, %v2925_v0 }
 0x228   :  { %v2928_v8 = vpop.f32.mrf.mxu0 }
 0x229   :  { %v2981_v9 = vpop.f32.mrf.mxu1  ;;  %3246 = vst [vmem:[%s4643_s3 + $0x50] sm:$0xff] %v3692_v3  ;;  %v2929_v10 = vadd.f32 %v2928_v8, %v471_v45  ;;  %v2980_v11 = vadd.f32 %v2979_v2, %v2927_v6 }
 0x22a   :  { %v2930_v12 = vpop.f32.mrf.mxu0 }
 0x22b   :  { %v2983_v13 = vpop.f32.mrf.mxu1  ;;  %v3698_v14 = vpack.c.bf16 %v2980_v11, %v2978_v7  ;;  %v2931_v15 = vadd.f32 %v2930_v12, %v475_v43  ;;  %v2982_v16 = vadd.f32 %v2981_v9, %v2929_v10 }
 0x22d   :  { %3252 = vst [vmem:[%s4643_s3 + $0x80] sm:$0xff] %v3698_v14  ;;  %v2984_v18 = vadd.f32 %v2983_v13, %v2931_v15 }
 0x22f   :  { %v3704_v19 = vpack.c.bf16 %v2984_v18, %v2982_v16 }
 0x231   :  { %3258 = vst [vmem:[%s4643_s3 + $0xb0] sm:$0xff] %v3704_v19 }
 0x25c   :  { %v3020_v32 = vpop.f32.mrf.mxu0 }
 0x25d   :  { %v3073_v22 = vpop.f32.mrf.mxu1  ;;  %v3021_v36 = vadd.f32 %v3020_v32, %v479_v21 }
 0x25e   :  { %v3022_v4 = vpop.f32.mrf.mxu0 }
 0x25f   :  { %v3075_v27 = vpop.f32.mrf.mxu1  ;;  %v3023_v5 = vadd.f32 %v3022_v4, %v483_v24  ;;  %v3074_v38 = vadd.f32 %v3073_v22, %v3021_v36 }
 0x260   :  { %v3024_v35 = vpop.f32.mrf.mxu0 }
 0x261   :  { %v3077_v37 = vpop.f32.mrf.mxu1  ;;  %v3076_v30 = vadd.f32 %v3075_v27, %v3023_v5  ;;  %v3025_v39 = vadd.f32 %v3024_v35, %v479_v21 }
 0x262   :  { %v3026_v40 = vpop.f32.mrf.mxu0 }
 0x263   :  { %v3079_v41 = vpop.f32.mrf.mxu1  ;;  %v3687_v42 = vpack.c.bf16 %v3076_v30, %v3074_v38  ;;  %v3027_v48 = vadd.f32 %v3026_v40, %v483_v24  ;;  %v3078_v17 = vadd.f32 %v3077_v37, %v3025_v39 }
 0x264   :  { %v3030_v26 = vpop.f32.mrf.mxu0 }
 0x265   :  { %v3083_v20 = vpop.f32.mrf.mxu1  ;;  %3241 = vst [vmem:[%s4643_s3 + $0x28] sm:$0xff] %v3687_v42  ;;  %v3080_v25 = vadd.f32 %v3079_v41, %v3027_v48  ;;  %v3031_v50 = vadd.f32 %v3030_v26, %v479_v21 }
 0x266   :  { %v3032_v31 = vpop.f32.mrf.mxu0 }
 0x267   :  { %v3085_v28 = vpop.f32.mrf.mxu1  ;;  %v3693_v33 = vpack.c.bf16 %v3080_v25, %v3078_v17  ;;  %v3033_v44 = vadd.f32 %v3032_v31, %v483_v24  ;;  %v3084_v46 = vadd.f32 %v3083_v20, %v3031_v50 }
 0x268   :  { %v3034_v45 = vpop.f32.mrf.mxu0 }
 0x269   :  { %v3087_v43 = vpop.f32.mrf.mxu1  ;;  %3247 = vst [vmem:[%s4643_s3 + $0x58] sm:$0xff] %v3693_v33  ;;  %v3086_v34 = vadd.f32 %v3085_v28, %v3033_v44  ;;  %v3035_v47 = vadd.f32 %v3034_v45, %v479_v21 }
 0x26a   :  { %v3036_v49 = vpop.f32.mrf.mxu0 }
 0x26b   :  { %v3699_v51 = vpack.c.bf16 %v3086_v34, %v3084_v46  ;;  %v3037_v52 = vadd.f32 %v3036_v49, %v483_v24  ;;  %v3089_v53 = vpop.f32.mrf.mxu1  ;;  %v3088_v60 = vadd.f32 %v3087_v43, %v3035_v47 }
 0x26d   :  { %3253 = vst [vmem:[%s4643_s3 + $0x88] sm:$0xff] %v3699_v51  ;;  %v3090_v61 = vadd.f32 %v3089_v53, %v3037_v52 }
 0x26f   :  { %v3705_v54 = vpack.c.bf16 %v3090_v61, %v3088_v60 }
 0x271   :  { %3259 = vst [vmem:[%s4643_s3 + $0xb8] sm:$0xff] %v3705_v54 }
 0x272   :  { %3264 = vsyncpa [#allocation3], 1 }
 0x273   :  { %3265 = vsyncpa [#allocation5], 1 }

// kernel: prob_attention_forward.6
= control target key start
LH: loop header
LB: loop body
LE: loop exit
PB: predicated region body
PF: predicated region fallthrough
CT: control target
= control target key end

     0   :  { %s1279_s18 = smov 0   ;;  %s1281_s19 = smov 0   ;;  %s1431_s0 = inlined_call_operand.vmem [shape: s32[30,1], index: 0, kind: input, shape index: {}]   ;;  %s1432_s1 = inlined_call_operand.vmem [shape: s32[1,30], index: 1, kind: input, shape index: {}]   ;;  %s1433_s2 = inlined_call_operand.vmem [shape: bf16[2,30,512], index: 2, kind: input, shape index: {}]   ;;  %s1434_s3 = inlined_call_operand.vmem [shape: bf16[2,16,1536], index: 3, kind: input, shape index: {}, may-alias: {3,4}]   ;;  %s1435_s4 = inlined_call_operand.vmem [shape: bf16[2,16,1536], index: 4, kind: input, shape index: {}, may-alias: {3,4}]   ;;  %s1436_s5 = inlined_call_operand.vmem [shape: bf16[2,16,512], index: 5, kind: output, shape index: {}]  }
   0x1   :  { %s1283_s20 = smov 0  }
   0x2 LB: > { %s1093_s21 = sadd.s32 4294967295, %s1245_s20   ;;  %s1296_s22 = sadd.s32 1, %s1245_s20   ;;  %s1245_s20 = sphi %s1283_s20, %s1440_s20   ;;  %s1241_s19 = sphi %s1281_s19, %s1439_s19   ;;  %s1237_s18 = sphi %s1279_s18, %s1438_s18  }
   0x3   : > { %s87_s23 = ssub.s32 %s1245_s20, %s1296_s22  ;;  %s90_s24 = sadd.s32 1, %s1241_s19 }
   0x4   : > { %p88_p0 = scmp.eq.s32.totalorder %s87_s23, 0  ;;  %p97_p1 = scmp.ne.s32.totalorder %s1241_s19, %s1237_s18 }
   0x5   : > { %p98_p2 = scmp.eq.s32.totalorder %s1245_s20, 0  ;;  %p1096_p4 = scmp.ge.s32.totalorder %s1245_s20, 2 }
   0x6   : > { %s1305_s25 = scalar_select %p88_p0, %s1241_s19, %s90_s24  }
   0x7   : > { %p1307_p3 = por %p98_p2, %p97_p1  ;;  %181 = sbr.rel (%p1096_p4) target bundleno = 26 (0x1a), region = 24 }
   0xc   : > { %192 = sbr.rel (!%p1307_p3) target bundleno = 19 (0x13), region = 32  ;;  %s194_s27 = sand.u32 (%p1307_p3), 1, %s1241_s19  }
   0xd   : > { %s1098_s28 = smul.u32 (%p1307_p3), 96, %s1245_s20  ;;  %s1097_s29 = sshll.u32 (%p1307_p3), %s194_s27, 5 }
   0xe   : > { %s196_s8 = scalar_lea.vmem (%p1307_p3), [#allocation2], %s1097_s29 }
   0xf   : > { %s1025_s7 = scalar_lea.vmem (%p1307_p3), %s1434_s3, %s1098_s28 }
  0x10   : > { %v1099_v0 = vld [vmem:[%s1025_s7 + $0x10] sm:$0xff] (%p1307_p3)  ;;  %v1100_v1 = vld [vmem:[%s1025_s7 + $0x18] sm:$0xff] (%p1307_p3)  ;;  %v1101_v2 = vld [vmem:[%s1025_s7 + $0x40] sm:$0xff] (%p1307_p3) }
  0x11   : > { %214 = vst [vmem:[%s196_s8] sm:$0xff] %v1099_v0  ;;  %216 = vst [vmem:[%s196_s8 + $0x8] sm:$0xff] %v1100_v1  ;;  %v1102_v3 = vld [vmem:[%s1025_s7 + $0x48] sm:$0xff] }
  0x12   : > { %218 = vst [vmem:[%s196_s8 + $0x10] sm:$0xff] %v1101_v2  ;;  %220 = vst [vmem:[%s196_s8 + $0x18] sm:$0xff] %v1102_v3 }
  0x13 PF: > { %226 = sbr.rel (!%p1307_p3) target bundleno = 26 (0x1a), region = 55  ;;  %s228_s9 = sand.u32 (%p1307_p3), 1, %s1241_s19  }
  0x14   : > { %s1104_s10 = smul.u32 (%p1307_p3), 96, %s1245_s20  ;;  %s1103_s11 = sshll.u32 (%p1307_p3), %s228_s9, 5 }
  0x15   : > { %s230_s15 = scalar_lea.vmem (%p1307_p3), [#allocation3], %s1103_s11 }
  0x16   : > { %s1031_s14 = scalar_lea.vmem (%p1307_p3), %s1435_s4, %s1104_s10 }
  0x17   : > { %v1105_v4 = vld [vmem:[%s1031_s14 + $0x20] sm:$0xff] (%p1307_p3)  ;;  %v1106_v5 = vld [vmem:[%s1031_s14 + $0x28] sm:$0xff] (%p1307_p3)  ;;  %v1107_v6 = vld [vmem:[%s1031_s14 + $0x50] sm:$0xff] (%p1307_p3) }
  0x18   : > { %248 = vst [vmem:[%s230_s15] sm:$0xff] %v1105_v4  ;;  %250 = vst [vmem:[%s230_s15 + $0x8] sm:$0xff] %v1106_v5  ;;  %v1108_v7 = vld [vmem:[%s1031_s14 + $0x58] sm:$0xff] }
  0x19   : > { %252 = vst [vmem:[%s230_s15 + $0x10] sm:$0xff] %v1107_v6  ;;  %254 = vst [vmem:[%s230_s15 + $0x18] sm:$0xff] %v1108_v7 }
  0x1a PF: > { %p1109_p5 = scmp.ge.s32.totalorder %s1245_s20, 1  ;;  %p259_p6 = scmp.lt.s32.totalorder %s1245_s20, 3 }
  0x1c   : > { %p260_p7 = pnand %p1109_p5, %p259_p6 }
  0x1d   : > { %s266_s16 = sand.u32 (!%p260_p7), 1, %s1237_s18   ;;  %p309_p8 = scmp.lt.s32.totalorder (!%p260_p7), %s1093_s21, 1 }
  0x1e   : > { %263 = sbr.rel (%p260_p7) target bundleno = 982 (0x3d6), region = 78  ;;  %s1110_s27 = sshll.u32 (!%p260_p7), %s266_s16, 5 }
  0x1f   : > { %s268_s18 = scalar_lea.vmem (!%p260_p7), [#allocation2], %s1110_s27  ;;  %s1350_s8 = scalar_lea.vmem (!%p260_p7), [#allocation3], %s1110_s27 }
  0x23   : > { %v336_v8 = vld [vmem:[%s1431_s0] sm:$0xff]  ;;  %v338_v9 = vld [vmem:[%s1431_s0 + $0x10] sm:$0xff]  ;;  %v1247_v10 = vmov 0   ;;  %v337_v11 = vld [vmem:[%s1431_s0 + $0x8] sm:$0xff]  ;;  %s1442_s21 = smov (!%p309_p8, %s1093_s21), 1  ;;  %v503_v25 = vlaneseq  ;;  %vm525_vm1 = vcmask 130048  }
  0x24   : > { %1181 = vset.pattern.permute.xlu0 %v1247_v10  ;;  %1182 = vset.pattern.permute.xlu1 %v1247_v10  ;;  %v1183_v12 = vld [vmem:[%s268_s18 + $0x4] ss:$16 sps:$4 sm:$0xff]   ;;  %v339_v13 = vld [vmem:[%s1431_s0 + $0x18] sm:$0x3f]  ;;  %v1187_v15 = vld [vmem:[%s268_s18] ss:$16 sps:$4 sm:$0xff]  }
  0x25   : > { %506 = vperm.xlu0 %1181, %v336_v8   ;;  %512 = vperm.xlu1 %1182, %v338_v9   ;;  %v1185_v14 = vld [vmem:[%s268_s18 + $0xc] ss:$16 sps:$4 sm:$0xff]   ;;  %v1188_v16 = vld [vmem:[%s268_s18 + $0x8] ss:$16 sps:$4 sm:$0xff]   ;;  %s1149_s7 = sshll.u32 %s1442_s21, 6  ;;  %v1357_v26 = vand.u32 127, %v503_v25 }
  0x26   : > { %415 = vmatprep.subr.bf16.mxu0 %v1183_v12  ;;  %464 = vmatprep.subr.bf16.mxu1 %v1185_v14  ;;  %s313_s11 = scalar_lea.vmem %s1433_s2, %s1149_s7  ;;  %vm535_vm4 = vcmask 128000   ;;  %v1367_v8 = vshrl.u32 %v503_v25, 7  ;;  %vm810_vm7 = vcmask 244736   ;;  %vm857_vm13 = vcmask 1046528   ;;  %s1150_s13 = sshll.u32 %s1442_s21, 5 }
  0x27   : > { %416 = vmatpush1.bf16.xpose.msra.mxu0 %v1187_v15  ;;  %465 = vmatpush1.bf16.xpose.msra.mxu1 %v1188_v16  ;;  %v1189_v17 = vld [vmem:[%s313_s11] ss:$16 sps:$4 sm:$0xff]   ;;  %v1191_v18 = vld [vmem:[%s313_s11 + $0x4] ss:$16 sps:$4 sm:$0xff]   ;;  %v1192_v19 = vld [vmem:[%s313_s11 + $0x8] ss:$16 sps:$4 sm:$0xff]   ;;  %s318_s16 = scalar_lea.vmem %s1436_s5, %s1150_s13 }
  0x28   : > { %v1194_v20 = vld [vmem:[%s313_s11 + $0xc] ss:$16 sps:$4 sm:$0xff]   ;;  %433 = vmatprep.mubr.bf16.mxu0 %v1191_v18  ;;  %v1195_v21 = vld [vmem:[%s313_s11 + $0x24] ss:$16 sps:$4 sm:$0x7f]   ;;  %v1374_v14 = vadd.s32 8, %v1367_v8  ;;  %vm708_vm12 = vcmp.le.s32.totalorder %v1357_v26, %v1367_v8 }
  0x29   : > { %509 = vperm.xlu0 %1181, %v337_v11   ;;  %515 = vperm.xlu1 %1182, %v339_v13   ;;  %v1197_v22 = vld [vmem:[%s313_s11 + $0x2c] ss:$16 sps:$4 sm:$0x7f]   ;;  %v1199_v23 = vld [vmem:[%s313_s11 + $0x20] ss:$16 sps:$4 sm:$0x7f]  }
  0x2a   : > { %482 = vmatprep.mubr.bf16.mxu1 %v1194_v20  ;;  %v1200_v24 = vld [vmem:[%s313_s11 + $0x28] ss:$16 sps:$4 sm:$0x7f]   ;;  %v1138_v11 = vld [vmem:[%s1432_s1] ss:$0 sm:$0xff]  ;;  %vm709_vm11 = vcmp.le.s32.totalorder %v1357_v26, %v1374_v14 }
  0x2b   : > { %vm806_vm6 = vcmp.eq.s32.totalorder %v1367_v8, %v1138_v11  ;;  %vm807_vm8 = vcmp.eq.s32.totalorder %v1374_v14, %v1138_v11 }
  0x2c   : > { %v808_v16 = vsel %vm806_vm6, %v1357_v26, 4294967295  ;;  %v809_v20 = vsel %vm807_vm8, %v1357_v26, 4294967295 }
  0x2d   : > { %v811_v18 = vsel %vm810_vm7, %v808_v16, 2147483648 }
  0x2e   : > { %434 = vmatmul.mubr.bf16.vlgmr.msra.gmra.mxu0 %v1189_v17  ;;  %483 = vmatmul.mubr.bf16.vlgmr.msra.gmra.mxu1 %v1192_v19 }
  0x2f   : > { %441 = vmatprep.mubr.bf16.mxu0 %v1195_v21  ;;  %490 = vmatprep.mubr.bf16.mxu1 %v1197_v22  ;;  %v813_v22 = vshra.s32 %v811_v18, 16 }
  0x36   : > { %442 = vmatmul.mubr.bf16.gmra.mxu0 %v1199_v23  ;;  %491 = vmatmul.mubr.bf16.gmra.mxu1 %v1200_v24  ;;  %v826_v23 = vsel %vm810_vm7, %v809_v20, 2147483648 }
  0x37   : > { %631 = vmatprep.mubr.bf16.mxu0 %v1247_v10  ;;  %684 = vmatprep.mubr.bf16.mxu1 %v1247_v10 }
  0xa0   : > { %v507_v27 = vpop.permute.xlu0 %506  ;;  %v513_v43 = vpop.permute.xlu1 %512 }
  0xa1   : > { %vm517_vm0 = vcmp.gt.s32.totalorder %v1357_v26, %v507_v27  ;;  %vm519_vm3 = vcmp.gt.s32.totalorder %v1357_v26, %v513_v43  ;;  %v815_v27 = vcvt.s32.f32 %v813_v22 }
  0xa4   : > { %v510_v36 = vpop.permute.xlu0 %509  ;;  %v516_v54 = vpop.permute.xlu1 %515 }
  0xa5   : > { %vm518_vm2 = vcmp.gt.s32.totalorder %v1357_v26, %v510_v36  ;;  %vm520_vm5 = vcmp.gt.s32.totalorder %v1357_v26, %v516_v54 }
  0xee   : > { %v435_v28 = vpop.f32.mrf.mxu0  ;;  %v484_v29 = vpop.f32.mrf.mxu1 }
  0xef   : > { %v485_v30 = vadd.f32 %v484_v29, %v435_v28  ;;  %v828_v28 = vshra.s32 %v826_v23, 16 }
  0xf0   : > { %v437_v31 = vpop.f32.mrf.mxu0  ;;  %v486_v32 = vpop.f32.mrf.mxu1 }
  0xf1   : > { %v499_v33 = vmul.f32 0.044194173, %v485_v30  ;;  %v830_v31 = vcvt.s32.f32 %v828_v28  ;;  %v1203_v32 = vld [vmem:[%s1350_s8 + $0x4] ss:$16 sps:$4 sm:$0xff]  }
  0xf2   : > { %v438_v34 = vpop.f32.mrf.mxu0  ;;  %v487_v35 = vpop.f32.mrf.mxu1  ;;  %613 = vmatprep.subr.bf16.mxu0 %v1203_v32 }
  0xf3   : > { %v488_v37 = vadd.f32 %v487_v35, %v438_v34  ;;  %v521_v38 = vsel %vm517_vm0, -3.4028235e+38, %v499_v33  ;;  %v1206_v33 = vld [vmem:[%s1350_s8 + $0xc] ss:$16 sps:$4 sm:$0xff]   ;;  %v1201_v34 = vld [vmem:[%s1350_s8] ss:$16 sps:$4 sm:$0xff]  }
  0xf4   : > { %v440_v39 = vpop.f32.mrf.mxu0  ;;  %v489_v40 = vpop.f32.mrf.mxu1  ;;  %v526_v41 = vsel %vm525_vm1, %v521_v38, -inf  ;;  %v1204_v35 = vld [vmem:[%s1350_s8 + $0x8] ss:$16 sps:$4 sm:$0xff]   ;;  %666 = vmatprep.subr.bf16.mxu1 %v1206_v33  ;;  %614 = vmatpush1.bf16.msra.mxu0 %v1201_v34 }
  0xf5   : > { %v500_v42 = vmul.f32 0.044194173, %v488_v37  ;;  %527 = vmax.xlane.f32.xlu0 %v526_v41  ;;  %667 = vmatpush1.bf16.msra.mxu1 %v1204_v35  ;;  %v827_v41 = vand.u32 65535, %v826_v23 }
  0xf6   : > { %v443_v44 = vpop.f32.mrf.mxu0  ;;  %v492_v45 = vpop.f32.mrf.mxu1  ;;  %730 = vmatprep.subr.bf16.mxu0 %v1203_v32  ;;  %773 = vmatprep.subr.bf16.mxu1 %v1206_v33 }
  0xf7   : > { %v493_v46 = vadd.f32 %v492_v45, %v443_v44  ;;  %v522_v47 = vsel %vm518_vm2, -3.4028235e+38, %v500_v42  ;;  %v829_v45 = vcvt.s32.f32 %v827_v41 }
  0xf8   : > { %v445_v48 = vpop.f32.mrf.mxu0  ;;  %v494_v49 = vpop.f32.mrf.mxu1  ;;  %v529_v50 = vsel %vm525_vm1, %v522_v47, -inf }
  0xf9   : > { %v501_v51 = vmul.f32 0.044194173, %v493_v46  ;;  %530 = vmax.xlane.f32.xlu1 %v529_v50 }
  0xfa   : > { %v446_v52 = vpop.f32.mrf.mxu0  ;;  %v495_v53 = vpop.f32.mrf.mxu1 }
  0xfb   : > { %v496_v55 = vadd.f32 %v495_v53, %v446_v52  ;;  %v523_v56 = vsel %vm519_vm3, -3.4028235e+38, %v501_v51 }
  0xfc   : > { %v448_v57 = vpop.f32.mrf.mxu0  ;;  %v497_v58 = vpop.f32.mrf.mxu1  ;;  %v532_v59 = vsel %vm525_vm1, %v523_v56, -inf }
  0xfd   : > { %v502_v60 = vmul.f32 0.044194173, %v496_v55  ;;  %533 = vmax.xlane.f32.xlu0 %v532_v59  ;;  %v1248_v58 = vmov 0.0  }
  0xfe   : > { %v710_v59 = vsel %vm708_vm12, 1.0, %v1248_v58 }
  0xff   : > { %v524_v61 = vsel %vm520_vm5, -3.4028235e+38, %v502_v60  ;;  %v711_v60 = vsel %vm709_vm11, 1.0, %v1248_v58 }
 0x100   : > { %v536_v62 = vsel %vm535_vm4, %v524_v61, -inf }
 0x101   : > { %537 = vmax.xlane.f32.xlu0 %v536_v62 }
 0x17e   : > { %v528_v63 = vpop.xlane.xlu0 %527 }
 0x17f   : > { %v539_v0 = vsub.f32 %v521_v38, %v528_v63  ;;  %v812_v38 = vand.u32 65535, %v811_v18 }
 0x181   : > { %v543_v1 = vmul.f32 1.442695, %v539_v0  ;;  %v814_v40 = vcvt.s32.f32 %v812_v38 }
 0x182   : > { %v531_v2 = vpop.xlane.xlu1 %530 }
 0x183   : > { %1207 = vpow2.f32 %v543_v1  ;;  %v540_v3 = vsub.f32 %v522_v47, %v531_v2 }
 0x185   : > { %v545_v4 = vmul.f32 1.442695, %v540_v3 }
 0x186   : > { %v534_v5 = vpop.xlane.xlu0 %533 }
 0x187   : > { %1209 = vpow2.f32 %v545_v4  ;;  %v541_v6 = vsub.f32 %v523_v56, %v534_v5 }
 0x189   : > { %v547_v7 = vmul.f32 1.442695, %v541_v6 }
 0x18a   : > { %v538_v9 = vpop.xlane.xlu0 %537 }
 0x18b   : > { %1211 = vpow2.f32 %v547_v7  ;;  %v542_v12 = vsub.f32 %v524_v61, %v538_v9  ;;  %v712_v61 = vpack.c.bf16 %v711_v60, %v710_v59 }
 0x18d   : > { %v549_v13 = vmul.f32 1.442695, %v542_v12 }
 0x18f   : > { %1213 = vpow2.f32 %v549_v13 }
 0x190   : > { %v1208_v15 = vpop.eup %1207 }
 0x191   : > { %v551_v17 = vsel %vm525_vm1, %v1208_v15, 0.0 }
 0x192   : > { %552 = vadd.xlane.f32.xlu1 %v551_v17 }
 0x194   : > { %v1210_v19 = vpop.eup %1209 }
 0x195   : > { %v554_v21 = vsel %vm525_vm1, %v1210_v19, 0.0 }
 0x196   : > { %555 = vadd.xlane.f32.xlu0 %v554_v21 }
 0x198   : > { %v1212_v24 = vpop.eup %1211 }
 0x199   : > { %v557_v25 = vsel %vm525_vm1, %v1212_v24, 0.0 }
 0x19a   : > { %558 = vadd.xlane.f32.xlu1 %v557_v25 }
 0x19c   : > { %v1214_v29 = vpop.eup %1213 }
 0x19d   : > { %v560_v30 = vsel %vm535_vm4, %v1214_v29, 0.0 }
 0x19e   : > { %816 = vmax.xlane.f32.xlu1 %v815_v27  ;;  %561 = vadd.xlane.f32.xlu0 %v560_v30 }
 0x1a2   : > { %831 = vmax.xlane.f32.xlu0 %v830_v31 }
 0x21b   : > { %v553_v36 = vpop.xlane.xlu1 %552 }
 0x21c   : > { %1215 = vrcp.f32 %v553_v36 }
 0x21f   : > { %v556_v37 = vpop.xlane.xlu0 %555 }
 0x220   : > { %1217 = vrcp.f32 %v556_v37 }
 0x223   : > { %v559_v39 = vpop.xlane.xlu1 %558 }
 0x224   : > { %1219 = vrcp.f32 %v559_v39 }
 0x227   : > { %v1389_v42 = vpop.xlane.xlu1 %816  ;;  %v562_v43 = vpop.xlane.xlu0 %561 }
 0x228   : > { %1221 = vrcp.f32 %v562_v43  ;;  %vm818_vm9 = vcmp.eq.f32.partialorder %v815_v27, %v1389_v42  ;;  %v823_v13 = vcvt.f32.s32 %v1389_v42 }
 0x229   : > { %v819_v44 = vsel %vm818_vm9, %v814_v40, -inf  ;;  %v1216_v46 = vpop.eup %1215 }
 0x22a   : > { %820 = vmax.xlane.f32.xlu1 %v819_v44  ;;  %v567_v50 = vmul.f32 %v1216_v46, %v1208_v15  ;;  %v824_v20 = vshll.u32 %v823_v13, 16 }
 0x22b   : > { %v832_v47 = vpop.xlane.xlu0 %831 }
 0x22c   : > { %vm833_vm10 = vcmp.eq.f32.partialorder %v830_v31, %v832_v47  ;;  %v838_v5 = vcvt.f32.s32 %v832_v47 }
 0x22d   : > { %v1218_v48 = vpop.eup %1217  ;;  %v834_v49 = vsel %vm833_vm10, %v829_v45, -inf }
 0x22e   : > { %v568_v51 = vmul.f32 %v1218_v48, %v1210_v19  ;;  %835 = vmax.xlane.f32.xlu0 %v834_v49  ;;  %v839_v14 = vshll.u32 %v838_v5, 16 }
 0x230   : > { %v571_v52 = vpack.c.bf16 %v568_v51, %v567_v50 }
 0x231   : > { %v1220_v53 = vpop.eup %1219 }
 0x232   : > { %1132 = vmatmul.mubr.msk.bf16.vlgmr.msra.gmra.mxu0 %vm525_vm1, %v571_v52  ;;  %1134 = vmatmul.mubr.msk.bf16.vlgmr.msra.gmra.mxu1 %vm525_vm1, %v571_v52  ;;  %v569_v55 = vmul.f32 %v1220_v53, %v1212_v24 }
 0x233   : > { %641 = vmatprep.mubr.bf16.mxu0 %v1247_v10  ;;  %694 = vmatprep.mubr.bf16.mxu1 %v1247_v10 }
 0x234   : > { %731 = vmatpush1.bf16.msra.mxu0 %v1201_v34  ;;  %774 = vmatpush1.bf16.msra.mxu1 %v1204_v35 }
 0x235   : > { %v1222_v54 = vpop.eup %1221 }
 0x236   : > { %v570_v56 = vmul.f32 %v1222_v54, %v1214_v29 }
 0x238   : > { %v572_v57 = vpack.c.bf16 %v570_v56, %v569_v55 }
 0x23a   : > { %1133 = vmatmul.mubr.msk.bf16.gmra.mxu0 %vm525_vm1, %v572_v57  ;;  %1135 = vmatmul.mubr.msk.bf16.gmra.mxu1 %vm525_vm1, %v572_v57 }
 0x23b   : > { %748 = vmatprep.mubr.bf16.mxu0 %v1247_v10  ;;  %791 = vmatprep.mubr.bf16.mxu1 %v1247_v10 }
 0x242   : > { %1136 = vmatmul.mubr.msk.bf16.vlgmr.msra.gmra.mxu0 %vm525_vm1, %v712_v61  ;;  %1137 = vmatmul.mubr.msk.bf16.vlgmr.msra.gmra.mxu1 %vm525_vm1, %v712_v61 }
 0x243   : > { %902 = vmatprep.mubr.bf16.mxu0 %v1247_v10  ;;  %945 = vmatprep.mubr.bf16.mxu1 %v1247_v10 }
 0x2b3   : > { %v821_v8 = vpop.xlane.xlu1 %820 }
 0x2b4   : > { %v822_v10 = vcvt.f32.s32 %v821_v8 }
 0x2b6   : > { %v825_v25 = vadd.s32 %v824_v20, %v822_v10 }
 0x2b7   : > { %v836_v4 = vpop.xlane.xlu0 %835 }
 0x2b8   : > { %v837_v9 = vcvt.f32.s32 %v836_v4  ;;  %vm841_vm15 = vcmp.eq.s32.totalorder %v1357_v26, %v825_v25  ;;  %vm956_vm0 = vcmp.ge.s32.totalorder %v825_v25, 0 }
 0x2b9   : > { %v843_v36 = vsel %vm841_vm15, 1.0, %v1248_v58 }
 0x2ba   : > { %v1409_v17 = vadd.s32 %v839_v14, %v837_v9 }
 0x2bc   : > { %vm842_vm14 = vcmp.eq.s32.totalorder %v1357_v26, %v1409_v17  ;;  %vm957_vm1 = vcmp.ge.s32.totalorder %v1409_v17, 0 }
 0x2bd   : > { %v844_v33 = vsel %vm842_vm14, 1.0, %v1248_v58 }
 0x2be   : > { %v845_v37 = vpack.c.bf16 %v844_v33, %v843_v36 }
 0x2f2   : > { %v633_v62 = vpop.f32.mrf.mxu0  ;;  %v686_v63 = vpop.f32.mrf.mxu1 }
 0x2f4   : > { %v635_v0 = vpop.f32.mrf.mxu0  ;;  %v688_v1 = vpop.f32.mrf.mxu1 }
 0x2f6   : > { %v637_v2 = vpop.f32.mrf.mxu0  ;;  %v690_v3 = vpop.f32.mrf.mxu1 }
 0x2f7   : > { %v846_v34 = vpack.c.bf16 %v637_v2, %v633_v62  ;;  %v848_v35 = vpack.c.bf16 %v690_v3, %v686_v63 }
 0x2f8   : > { %v639_v6 = vpop.f32.mrf.mxu0  ;;  %v692_v7 = vpop.f32.mrf.mxu1 }
 0x2f9   : > { %v847_v29 = vpack.c.bf16 %v639_v6, %v635_v0  ;;  %v849_v30 = vpack.c.bf16 %v692_v7, %v688_v1 }
 0x2fa   : > { %v643_v11 = vpop.f32.mrf.mxu0  ;;  %v696_v12 = vpop.f32.mrf.mxu1 }
 0x2fc   : > { %v645_v15 = vpop.f32.mrf.mxu0  ;;  %v698_v16 = vpop.f32.mrf.mxu1 }
 0x2fe   : > { %v647_v18 = vpop.f32.mrf.mxu0  ;;  %v700_v19 = vpop.f32.mrf.mxu1 }
 0x2ff   : > { %v850_v21 = vpack.c.bf16 %v647_v18, %v643_v11  ;;  %v852_v22 = vpack.c.bf16 %v700_v19, %v696_v12 }
 0x300   : > { %v649_v23 = vpop.f32.mrf.mxu0  ;;  %v702_v24 = vpop.f32.mrf.mxu1 }
 0x301   : > { %v851_v27 = vpack.c.bf16 %v649_v23, %v645_v15  ;;  %v853_v28 = vpack.c.bf16 %v702_v24, %v698_v16  ;;  %v859_v31 = vsel %vm857_vm13, %v850_v21, 0  ;;  %v865_v32 = vsel %vm857_vm13, %v852_v22, 0 }
 0x302   : > { %v750_v38 = vpop.f32.mrf.mxu0  ;;  %v793_v39 = vpop.f32.mrf.mxu1 }
 0x303   : > { %1139 = vmatprep.subr.msk.bf16.mxu0 %vm857_vm13, %v851_v27  ;;  %1141 = vmatprep.subr.msk.bf16.mxu1 %vm857_vm13, %v853_v28 }
 0x304   : > { %883 = vmatpush1.bf16.msra.mxu0 %v859_v31  ;;  %926 = vmatpush1.bf16.msra.mxu1 %v865_v32  ;;  %v752_v40 = vpop.f32.mrf.mxu0  ;;  %v795_v41 = vpop.f32.mrf.mxu1 }
 0x305   : > { %884 = vmatprep.subr.bf16.mxu0 %v847_v29  ;;  %927 = vmatprep.subr.bf16.mxu1 %v849_v30 }
 0x306   : > { %v754_v42 = vpop.f32.mrf.mxu0  ;;  %v797_v26 = vpop.f32.mrf.mxu1 }
 0x308   : > { %885 = vmatpush1.bf16.msra.mxu0 %v846_v34  ;;  %928 = vmatpush1.bf16.msra.mxu1 %v848_v35  ;;  %v756_v43 = vpop.f32.mrf.mxu0  ;;  %v799_v44 = vpop.f32.mrf.mxu1 }
 0x30b   : > { %1140 = vmatmul.mubr.msk.bf16.vlgmr.msra.gmra.mxu0 %vm810_vm7, %v845_v37  ;;  %1142 = vmatmul.mubr.msk.bf16.vlgmr.msra.gmra.mxu1 %vm810_vm7, %v845_v37 }
 0x3cb   : > { %v904_v45 = vpop.f32.mrf.mxu0  ;;  %v947_v46 = vpop.f32.mrf.mxu1 }
 0x3cc   : > { %v962_v49 = vsel %vm956_vm0, %v904_v45, %v750_v38  ;;  %v964_v50 = vsel %vm956_vm0, %v947_v46, %v793_v39 }
 0x3cd   : > { %v906_v47 = vpop.f32.mrf.mxu0  ;;  %v949_v48 = vpop.f32.mrf.mxu1 }
 0x3ce   : > { %v963_v51 = vsel %vm956_vm0, %v906_v47, %v752_v40  ;;  %v965_v52 = vsel %vm956_vm0, %v949_v48, %v795_v41 }
 0x3cf   : > { %v1151_v53 = vpack.c.bf16 %v963_v51, %v962_v49  ;;  %v1152_v54 = vpack.c.bf16 %v965_v52, %v964_v50  ;;  %v908_v55 = vpop.f32.mrf.mxu0  ;;  %v951_v56 = vpop.f32.mrf.mxu1 }
 0x3d0   : > { %v966_v59 = vsel %vm957_vm1, %v908_v55, %v754_v42  ;;  %v968_v60 = vsel %vm957_vm1, %v951_v56, %v797_v26 }
 0x3d1   : > { %994 = vst [vmem:[%s318_s16] sm:$0xff] %v1151_v53  ;;  %995 = vst [vmem:[%s318_s16 + $0x8] sm:$0xff] %v1152_v54  ;;  %v910_v57 = vpop.f32.mrf.mxu0  ;;  %v953_v58 = vpop.f32.mrf.mxu1 }
 0x3d2   : > { %v967_v61 = vsel %vm957_vm1, %v910_v57, %v756_v43  ;;  %v969_v62 = vsel %vm957_vm1, %v953_v58, %v799_v44 }
 0x3d3   : > { %v1153_v63 = vpack.c.bf16 %v967_v61, %v966_v59  ;;  %v1154_v0 = vpack.c.bf16 %v969_v62, %v968_v60 }
 0x3d5   : > { %996 = vst [vmem:[%s318_s16 + $0x10] sm:$0xff] %v1153_v63  ;;  %997 = vst [vmem:[%s318_s16 + $0x18] sm:$0xff] %v1154_v0 }
 0x3d6 PF: > { %p12_p9 = scmp.ge.s32.totalorder %s1296_s22, 4   ;;  %s1438_s18 = smov %s1241_s19 }
 0x3d7   : > { %s1439_s19 = smov %s1305_s25  ;;  %s1440_s20 = smov %s1296_s22 }
 0x3d8   :  { %14 = sbr.rel (!%p12_p9) target bundleno = 2 (0x2), region = 132 }

// kernel: prob_attention_forward.7
= control target key start
LH: loop header
LB: loop body
LE: loop exit
PB: predicated region body
PF: predicated region fallthrough
CT: control target
= control target key end

     0   :  { %s1931_s0 = inlined_call_operand.vmem [shape: bf16[32,512], index: 0, kind: input, shape index: {}]   ;;  %s1932_s1 = inlined_call_operand.vmem [shape: bf16[512,512], index: 1, kind: input, shape index: {}]   ;;  %s1933_s2 = inlined_call_operand.vmem [shape: f32[1,512], index: 2, kind: input, shape index: {}]   ;;  %s1934_s3 = inlined_call_operand.hbm [shape: f32[32,512], index: 3, kind: output, shape index: {}]  }
   0x1   :  { %v1236_v0 = vld [vmem:[%s1932_s1 + $0xe4] ss:$16 sps:$4 sm:$0xff]   ;;  %v1240_v2 = vld [vmem:[%s1932_s1 + $0xe0] ss:$16 sps:$4 sm:$0xff]   ;;  %v1643_v51 = vld [vmem:[%s1931_s0 + $0xc] ss:$16 sps:$4 sm:$0xff]  }
   0x2   :  { %v1238_v1 = vld [vmem:[%s1932_s1 + $0x2e4] ss:$16 sps:$4 sm:$0xff]   ;;  %853 = vmatprep.subr.bf16.mxu0 %v1236_v0  ;;  %v1241_v3 = vld [vmem:[%s1932_s1 + $0x2e0] ss:$16 sps:$4 sm:$0xff]   ;;  %938 = vmatprep.mubr.bf16.mxu1 %v1643_v51 }
   0x3   :  { %906 = vmatprep.subr.bf16.mxu1 %v1238_v1  ;;  %v1242_v4 = vld [vmem:[%s1932_s1 + $0xc4] ss:$16 sps:$4 sm:$0xff]   ;;  %854 = vmatpush1.bf16.msra.mxu0 %v1240_v2  ;;  %v1246_v6 = vld [vmem:[%s1932_s1 + $0xc0] ss:$16 sps:$4 sm:$0xff]   ;;  %v1340_v2 = vld [vmem:[%s1932_s1 + $0xec] ss:$16 sps:$4 sm:$0xff]  }
   0x4   :  { %907 = vmatpush1.bf16.msra.mxu1 %v1241_v3  ;;  %v1244_v5 = vld [vmem:[%s1932_s1 + $0x2c4] ss:$16 sps:$4 sm:$0xff]   ;;  %855 = vmatprep.subr.bf16.mxu0 %v1242_v4  ;;  %v1247_v7 = vld [vmem:[%s1932_s1 + $0x2c0] ss:$16 sps:$4 sm:$0xff]   ;;  %v1343_v3 = vld [vmem:[%s1932_s1 + $0x2ec] ss:$16 sps:$4 sm:$0xff]  }
   0x5   :  { %908 = vmatprep.subr.bf16.mxu1 %v1244_v5  ;;  %v1248_v8 = vld [vmem:[%s1932_s1 + $0xa4] ss:$16 sps:$4 sm:$0xff]   ;;  %v1252_v10 = vld [vmem:[%s1932_s1 + $0xa0] ss:$16 sps:$4 sm:$0xff]   ;;  %v1703_v5 = vld [vmem:[%s1931_s0 + $0x8] ss:$16 sps:$4 sm:$0xff]  }
   0x6   :  { %v1250_v9 = vld [vmem:[%s1932_s1 + $0x2a4] ss:$16 sps:$4 sm:$0xff]   ;;  %v1253_v11 = vld [vmem:[%s1932_s1 + $0x2a0] ss:$16 sps:$4 sm:$0xff]  }
   0x7   :  { %856 = vmatpush1.bf16.msra.mxu0 %v1246_v6  ;;  %v1254_v12 = vld [vmem:[%s1932_s1 + $0x84] ss:$16 sps:$4 sm:$0xff]   ;;  %v1258_v14 = vld [vmem:[%s1932_s1 + $0x80] ss:$16 sps:$4 sm:$0xff]   ;;  %v1338_v6 = vld [vmem:[%s1932_s1 + $0xe8] ss:$16 sps:$4 sm:$0xff]  }
   0x8   :  { %909 = vmatpush1.bf16.msra.mxu1 %v1247_v7  ;;  %857 = vmatprep.subr.bf16.mxu0 %v1248_v8  ;;  %v1256_v13 = vld [vmem:[%s1932_s1 + $0x284] ss:$16 sps:$4 sm:$0xff]   ;;  %v1259_v15 = vld [vmem:[%s1932_s1 + $0x280] ss:$16 sps:$4 sm:$0xff]   ;;  %v1341_v7 = vld [vmem:[%s1932_s1 + $0x2e8] ss:$16 sps:$4 sm:$0xff]  }
   0x9   :  { %910 = vmatprep.subr.bf16.mxu1 %v1250_v9  ;;  %v1260_v16 = vld [vmem:[%s1932_s1 + $0x64] ss:$16 sps:$4 sm:$0xff]   ;;  %v1264_v18 = vld [vmem:[%s1932_s1 + $0x60] ss:$16 sps:$4 sm:$0xff]   ;;  %v1346_v8 = vld [vmem:[%s1932_s1 + $0xcc] ss:$16 sps:$4 sm:$0xff]  }
   0xa   :  { %v1262_v17 = vld [vmem:[%s1932_s1 + $0x264] ss:$16 sps:$4 sm:$0xff]   ;;  %v1265_v19 = vld [vmem:[%s1932_s1 + $0x260] ss:$16 sps:$4 sm:$0xff]   ;;  %v1349_v9 = vld [vmem:[%s1932_s1 + $0x2cc] ss:$16 sps:$4 sm:$0xff]  }
   0xb   :  { %858 = vmatpush1.bf16.msra.mxu0 %v1252_v10  ;;  %v1266_v20 = vld [vmem:[%s1932_s1 + $0x44] ss:$16 sps:$4 sm:$0xff]   ;;  %v1270_v22 = vld [vmem:[%s1932_s1 + $0x40] ss:$16 sps:$4 sm:$0xff]   ;;  %v1344_v10 = vld [vmem:[%s1932_s1 + $0xc8] ss:$16 sps:$4 sm:$0xff]  }
   0xc   :  { %911 = vmatpush1.bf16.msra.mxu1 %v1253_v11  ;;  %859 = vmatprep.subr.bf16.mxu0 %v1254_v12  ;;  %v1268_v21 = vld [vmem:[%s1932_s1 + $0x244] ss:$16 sps:$4 sm:$0xff]   ;;  %v1271_v23 = vld [vmem:[%s1932_s1 + $0x240] ss:$16 sps:$4 sm:$0xff]   ;;  %v1347_v11 = vld [vmem:[%s1932_s1 + $0x2c8] ss:$16 sps:$4 sm:$0xff]  }
   0xd   :  { %912 = vmatprep.subr.bf16.mxu1 %v1256_v13  ;;  %v1272_v24 = vld [vmem:[%s1932_s1 + $0x24] ss:$16 sps:$4 sm:$0xff]   ;;  %v1276_v26 = vld [vmem:[%s1932_s1 + $0x20] ss:$16 sps:$4 sm:$0xff]   ;;  %v1352_v12 = vld [vmem:[%s1932_s1 + $0xac] ss:$16 sps:$4 sm:$0xff]  }
   0xe   :  { %v1274_v25 = vld [vmem:[%s1932_s1 + $0x224] ss:$16 sps:$4 sm:$0xff]   ;;  %v1277_v27 = vld [vmem:[%s1932_s1 + $0x220] ss:$16 sps:$4 sm:$0xff]   ;;  %v1355_v13 = vld [vmem:[%s1932_s1 + $0x2ac] ss:$16 sps:$4 sm:$0xff]  }
   0xf   :  { %860 = vmatpush1.bf16.msra.mxu0 %v1258_v14  ;;  %v1278_v28 = vld [vmem:[%s1932_s1 + $0x4] ss:$16 sps:$4 sm:$0xff]   ;;  %v1282_v30 = vld [vmem:[%s1932_s1] ss:$16 sps:$4 sm:$0xff]   ;;  %v1350_v14 = vld [vmem:[%s1932_s1 + $0xa8] ss:$16 sps:$4 sm:$0xff]  }
  0x10   :  { %913 = vmatpush1.bf16.msra.mxu1 %v1259_v15  ;;  %861 = vmatprep.subr.bf16.mxu0 %v1260_v16  ;;  %v1280_v29 = vld [vmem:[%s1932_s1 + $0x204] ss:$16 sps:$4 sm:$0xff]   ;;  %v1283_v31 = vld [vmem:[%s1932_s1 + $0x200] ss:$16 sps:$4 sm:$0xff]   ;;  %v1353_v15 = vld [vmem:[%s1932_s1 + $0x2a8] ss:$16 sps:$4 sm:$0xff]  }
  0x11   :  { %914 = vmatprep.subr.bf16.mxu1 %v1262_v17  ;;  %v1284_v32 = vld [vmem:[%s1932_s1 + $0x1e4] ss:$16 sps:$4 sm:$0xff]   ;;  %v1288_v34 = vld [vmem:[%s1932_s1 + $0x1e0] ss:$16 sps:$4 sm:$0xff]   ;;  %v1358_v16 = vld [vmem:[%s1932_s1 + $0x8c] ss:$16 sps:$4 sm:$0xff]  }
  0x12   :  { %v1286_v33 = vld [vmem:[%s1932_s1 + $0x3e4] ss:$16 sps:$4 sm:$0xff]   ;;  %v1289_v35 = vld [vmem:[%s1932_s1 + $0x3e0] ss:$16 sps:$4 sm:$0xff]   ;;  %v1361_v17 = vld [vmem:[%s1932_s1 + $0x28c] ss:$16 sps:$4 sm:$0xff]  }
  0x13   :  { %862 = vmatpush1.bf16.msra.mxu0 %v1264_v18  ;;  %v1290_v36 = vld [vmem:[%s1932_s1 + $0x1c4] ss:$16 sps:$4 sm:$0xff]   ;;  %v1294_v38 = vld [vmem:[%s1932_s1 + $0x1c0] ss:$16 sps:$4 sm:$0xff]   ;;  %v1356_v18 = vld [vmem:[%s1932_s1 + $0x88] ss:$16 sps:$4 sm:$0xff]  }
  0x14   :  { %915 = vmatpush1.bf16.msra.mxu1 %v1265_v19  ;;  %863 = vmatprep.subr.bf16.mxu0 %v1266_v20  ;;  %v1292_v37 = vld [vmem:[%s1932_s1 + $0x3c4] ss:$16 sps:$4 sm:$0xff]   ;;  %v1295_v39 = vld [vmem:[%s1932_s1 + $0x3c0] ss:$16 sps:$4 sm:$0xff]   ;;  %v1359_v19 = vld [vmem:[%s1932_s1 + $0x288] ss:$16 sps:$4 sm:$0xff]  }
  0x15   :  { %916 = vmatprep.subr.bf16.mxu1 %v1268_v21  ;;  %v1296_v40 = vld [vmem:[%s1932_s1 + $0x1a4] ss:$16 sps:$4 sm:$0xff]   ;;  %v1300_v42 = vld [vmem:[%s1932_s1 + $0x1a0] ss:$16 sps:$4 sm:$0xff]   ;;  %v1364_v20 = vld [vmem:[%s1932_s1 + $0x6c] ss:$16 sps:$4 sm:$0xff]  }
  0x16   :  { %v1298_v41 = vld [vmem:[%s1932_s1 + $0x3a4] ss:$16 sps:$4 sm:$0xff]   ;;  %v1301_v43 = vld [vmem:[%s1932_s1 + $0x3a0] ss:$16 sps:$4 sm:$0xff]   ;;  %v1367_v21 = vld [vmem:[%s1932_s1 + $0x26c] ss:$16 sps:$4 sm:$0xff]  }
  0x17   :  { %864 = vmatpush1.bf16.msra.mxu0 %v1270_v22  ;;  %v1302_v44 = vld [vmem:[%s1932_s1 + $0x184] ss:$16 sps:$4 sm:$0xff]   ;;  %v1306_v46 = vld [vmem:[%s1932_s1 + $0x180] ss:$16 sps:$4 sm:$0xff]   ;;  %v1362_v22 = vld [vmem:[%s1932_s1 + $0x68] ss:$16 sps:$4 sm:$0xff]  }
  0x18   :  { %917 = vmatpush1.bf16.msra.mxu1 %v1271_v23  ;;  %865 = vmatprep.subr.bf16.mxu0 %v1272_v24  ;;  %v1304_v45 = vld [vmem:[%s1932_s1 + $0x384] ss:$16 sps:$4 sm:$0xff]   ;;  %v1307_v47 = vld [vmem:[%s1932_s1 + $0x380] ss:$16 sps:$4 sm:$0xff]   ;;  %v1365_v23 = vld [vmem:[%s1932_s1 + $0x268] ss:$16 sps:$4 sm:$0xff]  }
  0x19   :  { %918 = vmatprep.subr.bf16.mxu1 %v1274_v25  ;;  %v1308_v48 = vld [vmem:[%s1932_s1 + $0x164] ss:$16 sps:$4 sm:$0xff]   ;;  %v1312_v52 = vld [vmem:[%s1932_s1 + $0x160] ss:$16 sps:$4 sm:$0xff]   ;;  %v1370_v24 = vld [vmem:[%s1932_s1 + $0x4c] ss:$16 sps:$4 sm:$0xff]  }
  0x1a   :  { %v1635_v49 = vld [vmem:[%s1931_s0 + $0x4] ss:$16 sps:$4 sm:$0xff]   ;;  %v1313_v53 = vld [vmem:[%s1932_s1 + $0x360] ss:$16 sps:$4 sm:$0xff]   ;;  %v1373_v25 = vld [vmem:[%s1932_s1 + $0x24c] ss:$16 sps:$4 sm:$0xff]  }
  0x1b   :  { %866 = vmatpush1.bf16.msra.mxu0 %v1276_v26  ;;  %v1310_v50 = vld [vmem:[%s1932_s1 + $0x364] ss:$16 sps:$4 sm:$0xff]   ;;  %885 = vmatprep.mubr.bf16.mxu0 %v1635_v49  ;;  %v1318_v56 = vld [vmem:[%s1932_s1 + $0x140] ss:$16 sps:$4 sm:$0xff]  }
  0x1c   :  { %919 = vmatpush1.bf16.msra.mxu1 %v1277_v27  ;;  %867 = vmatprep.subr.bf16.mxu0 %v1278_v28  ;;  %v1314_v54 = vld [vmem:[%s1932_s1 + $0x144] ss:$16 sps:$4 sm:$0xff]   ;;  %v1319_v57 = vld [vmem:[%s1932_s1 + $0x340] ss:$16 sps:$4 sm:$0xff]   ;;  %v1368_v28 = vld [vmem:[%s1932_s1 + $0x48] ss:$16 sps:$4 sm:$0xff]  }
  0x1d   :  { %920 = vmatprep.subr.bf16.mxu1 %v1280_v29  ;;  %v1316_v55 = vld [vmem:[%s1932_s1 + $0x344] ss:$16 sps:$4 sm:$0xff]   ;;  %v1324_v60 = vld [vmem:[%s1932_s1 + $0x120] ss:$16 sps:$4 sm:$0xff]   ;;  %v1784_v29 = vld [vmem:[%s1931_s0 + $0x2c] ss:$16 sps:$4 sm:$0xff]  }
  0x1e   :  { %v1320_v58 = vld [vmem:[%s1932_s1 + $0x124] ss:$16 sps:$4 sm:$0xff]   ;;  %v1325_v61 = vld [vmem:[%s1932_s1 + $0x320] ss:$16 sps:$4 sm:$0xff]  }
  0x1f   :  { %868 = vmatpush1.bf16.msra.mxu0 %v1282_v30  ;;  %v1322_v59 = vld [vmem:[%s1932_s1 + $0x324] ss:$16 sps:$4 sm:$0xff]   ;;  %v1330_v0 = vld [vmem:[%s1932_s1 + $0x100] ss:$16 sps:$4 sm:$0xff]   ;;  %v1371_v30 = vld [vmem:[%s1932_s1 + $0x248] ss:$16 sps:$4 sm:$0xff]  }
  0x20   :  { %921 = vmatpush1.bf16.msra.mxu1 %v1283_v31  ;;  %869 = vmatprep.subr.bf16.mxu0 %v1284_v32  ;;  %v1326_v62 = vld [vmem:[%s1932_s1 + $0x104] ss:$16 sps:$4 sm:$0xff]   ;;  %v1331_v1 = vld [vmem:[%s1932_s1 + $0x300] ss:$16 sps:$4 sm:$0xff]   ;;  %v1793_v31 = vld [vmem:[%s1931_s0 + $0x28] ss:$16 sps:$4 sm:$0xff]  }
  0x21   :  { %922 = vmatprep.subr.bf16.mxu1 %v1286_v33  ;;  %v1328_v63 = vld [vmem:[%s1932_s1 + $0x304] ss:$16 sps:$4 sm:$0xff]   ;;  %v1698_v4 = vld [vmem:[%s1931_s0] ss:$16 sps:$4 sm:$0xff]   ;;  %v1376_v32 = vld [vmem:[%s1932_s1 + $0x2c] ss:$16 sps:$4 sm:$0xff]  }
  0x22   :  { %v1770_v26 = vld [vmem:[%s1931_s0 + $0x24] ss:$16 sps:$4 sm:$0xff]   ;;  %v1775_v27 = vld [vmem:[%s1931_s0 + $0x20] ss:$16 sps:$4 sm:$0xff]   ;;  %v1379_v33 = vld [vmem:[%s1932_s1 + $0x22c] ss:$16 sps:$4 sm:$0xff]  }
  0x23   :  { %870 = vmatpush2.bf16.msra.mxu0 %v1288_v34  ;;  %v1374_v34 = vld [vmem:[%s1932_s1 + $0x28] ss:$16 sps:$4 sm:$0xff]  }
  0x24   :  { %923 = vmatpush2.bf16.msra.mxu1 %v1289_v35  ;;  %871 = vmatprep.subr.bf16.mxu0 %v1290_v36  ;;  %v1377_v35 = vld [vmem:[%s1932_s1 + $0x228] ss:$16 sps:$4 sm:$0xff]   ;;  %v1382_v36 = vld [vmem:[%s1932_s1 + $0xc] ss:$16 sps:$4 sm:$0xff]  }
  0x25   :  { %924 = vmatprep.subr.bf16.mxu1 %v1292_v37  ;;  %v1385_v37 = vld [vmem:[%s1932_s1 + $0x20c] ss:$16 sps:$4 sm:$0xff]  }
  0x27   :  { %872 = vmatpush2.bf16.msra.mxu0 %v1294_v38 }
  0x28   :  { %925 = vmatpush2.bf16.msra.mxu1 %v1295_v39  ;;  %873 = vmatprep.subr.bf16.mxu0 %v1296_v40 }
  0x29   :  { %926 = vmatprep.subr.bf16.mxu1 %v1298_v41 }
  0x2b   :  { %874 = vmatpush2.bf16.msra.mxu0 %v1300_v42 }
  0x2c   :  { %927 = vmatpush2.bf16.msra.mxu1 %v1301_v43  ;;  %875 = vmatprep.subr.bf16.mxu0 %v1302_v44 }
  0x2d   :  { %928 = vmatprep.subr.bf16.mxu1 %v1304_v45 }
  0x2f   :  { %876 = vmatpush2.bf16.msra.mxu0 %v1306_v46 }
  0x30   :  { %929 = vmatpush2.bf16.msra.mxu1 %v1307_v47  ;;  %877 = vmatprep.subr.bf16.mxu0 %v1308_v48 }
  0x31   :  { %930 = vmatprep.subr.bf16.mxu1 %v1310_v50 }
  0x33   :  { %878 = vmatpush2.bf16.msra.mxu0 %v1312_v52 }
  0x34   :  { %931 = vmatpush2.bf16.msra.mxu1 %v1313_v53  ;;  %879 = vmatprep.subr.bf16.mxu0 %v1314_v54 }
  0x35   :  { %932 = vmatprep.subr.bf16.mxu1 %v1316_v55 }
  0x37   :  { %880 = vmatpush2.bf16.msra.mxu0 %v1318_v56 }
  0x38   :  { %933 = vmatpush2.bf16.msra.mxu1 %v1319_v57  ;;  %881 = vmatprep.subr.bf16.mxu0 %v1320_v58 }
  0x39   :  { %934 = vmatprep.subr.bf16.mxu1 %v1322_v59 }
  0x3b   :  { %882 = vmatpush2.bf16.msra.mxu0 %v1324_v60 }
  0x3c   :  { %935 = vmatpush2.bf16.msra.mxu1 %v1325_v61  ;;  %883 = vmatprep.subr.bf16.mxu0 %v1326_v62 }
  0x3d   :  { %936 = vmatprep.subr.bf16.mxu1 %v1328_v63 }
  0x3f   :  { %884 = vmatpush2.bf16.msra.mxu0 %v1330_v0 }
  0x40   :  { %937 = vmatpush2.bf16.msra.mxu1 %v1331_v1  ;;  %959 = vmatprep.subr.bf16.mxu0 %v1340_v2 }
  0x41   :  { %1012 = vmatprep.subr.bf16.mxu1 %v1343_v3 }
  0x42   :  { %886 = vmatmul.mubr.bf16.vlgmr.msra.gmra.mxu0 %v1698_v4 }
  0x43   :  { %939 = vmatmul.mubr.bf16.vlgmr.msra.gmra.mxu1 %v1703_v5  ;;  %960 = vmatpush1.bf16.msra.mxu0 %v1338_v6 }
  0x44   :  { %1013 = vmatpush1.bf16.msra.mxu1 %v1341_v7  ;;  %961 = vmatprep.subr.bf16.mxu0 %v1346_v8 }
  0x45   :  { %1014 = vmatprep.subr.bf16.mxu1 %v1349_v9  ;;  %895 = vmatprep.mubr.bf16.mxu0 %v1770_v26 }
  0x46   :  { %948 = vmatprep.mubr.bf16.mxu1 %v1784_v29 }
  0x47   :  { %962 = vmatpush1.bf16.msra.mxu0 %v1344_v10 }
  0x48   :  { %1015 = vmatpush1.bf16.msra.mxu1 %v1347_v11  ;;  %963 = vmatprep.subr.bf16.mxu0 %v1352_v12 }
  0x49   :  { %1016 = vmatprep.subr.bf16.mxu1 %v1355_v13 }
  0x4a   :  { %896 = vmatmul.mubr.bf16.gmra.mxu0 %v1775_v27 }
  0x4b   :  { %964 = vmatpush1.bf16.msra.mxu0 %v1350_v14  ;;  %991 = vmatprep.mubr.bf16.mxu0 %v1635_v49 }
  0x4c   :  { %1017 = vmatpush1.bf16.msra.mxu1 %v1353_v15  ;;  %965 = vmatprep.subr.bf16.mxu0 %v1358_v16 }
  0x4d   :  { %1018 = vmatprep.subr.bf16.mxu1 %v1361_v17  ;;  %949 = vmatmul.mubr.bf16.gmra.mxu1 %v1793_v31 }
  0x4e   :  { %1044 = vmatprep.mubr.bf16.mxu1 %v1643_v51 }
  0x4f   :  { %966 = vmatpush1.bf16.msra.mxu0 %v1356_v18 }
  0x50   :  { %1019 = vmatpush1.bf16.msra.mxu1 %v1359_v19  ;;  %967 = vmatprep.subr.bf16.mxu0 %v1364_v20 }
  0x51   :  { %1020 = vmatprep.subr.bf16.mxu1 %v1367_v21 }
  0x53   :  { %968 = vmatpush1.bf16.msra.mxu0 %v1362_v22 }
  0x54   :  { %1021 = vmatpush1.bf16.msra.mxu1 %v1365_v23  ;;  %969 = vmatprep.subr.bf16.mxu0 %v1370_v24 }
  0x55   :  { %1022 = vmatprep.subr.bf16.mxu1 %v1373_v25 }
  0x57   :  { %970 = vmatpush1.bf16.msra.mxu0 %v1368_v28 }
  0x58   :  { %1023 = vmatpush1.bf16.msra.mxu1 %v1371_v30  ;;  %971 = vmatprep.subr.bf16.mxu0 %v1376_v32 }
  0x59   :  { %1024 = vmatprep.subr.bf16.mxu1 %v1379_v33 }
  0x5a   :  { %8 = vsyncpa [#allocation3], 0  ;;  %v1380_v38 = vld [vmem:[%s1932_s1 + $0x8] ss:$16 sps:$4 sm:$0xff]   ;;  %v1388_v40 = vld [vmem:[%s1932_s1 + $0x1ec] ss:$16 sps:$4 sm:$0xff]   ;;  %v153_v10 = vlaneseq }
  0x5b   :  { %972 = vmatpush1.bf16.msra.mxu0 %v1374_v34  ;;  %v1383_v39 = vld [vmem:[%s1932_s1 + $0x208] ss:$16 sps:$4 sm:$0xff]   ;;  %v1391_v41 = vld [vmem:[%s1932_s1 + $0x3ec] ss:$16 sps:$4 sm:$0xff]   ;;  %v151_v13 = vld [vmem:[%s1933_s2] sm:$0xf] }
  0x5c   :  { %1025 = vmatpush1.bf16.msra.mxu1 %v1377_v35  ;;  %973 = vmatprep.subr.bf16.mxu0 %v1382_v36  ;;  %v1386_v42 = vld [vmem:[%s1932_s1 + $0x1e8] ss:$16 sps:$4 sm:$0xff]   ;;  %v1394_v44 = vld [vmem:[%s1932_s1 + $0x1cc] ss:$16 sps:$4 sm:$0xff]   ;;  %v154_v11 = vshrl.u32 %v153_v10, 7  ;;  %s1462_s2 = smov [#allocation2]  }
  0x5d   :  { %1026 = vmatprep.subr.bf16.mxu1 %v1385_v37  ;;  %v1389_v43 = vld [vmem:[%s1932_s1 + $0x3e8] ss:$16 sps:$4 sm:$0xff]   ;;  %v1397_v45 = vld [vmem:[%s1932_s1 + $0x3cc] ss:$16 sps:$4 sm:$0xff]   ;;  %s1086_s12 = sshll.u32 %s1462_s2, 4  ;;  %s1087_s12 = int_to_ptr.vmem [resolvable:$true] %s1086_s12 }
  0x5e   :  { %v1392_v46 = vld [vmem:[%s1932_s1 + $0x1c8] ss:$16 sps:$4 sm:$0xff]   ;;  %v1400_v48 = vld [vmem:[%s1932_s1 + $0x1ac] ss:$16 sps:$4 sm:$0xff]   ;;  %v155_v12 = vsub.s32 0, %v154_v11  ;;  %v159_v14 = vsub.s32 1, %v154_v11  ;;  %p1445_p1 = scmp.lt.s32.totalorder %s1087_s12, %s1087_s12 }
  0x5f   :  { %974 = vmatpush1.bf16.msra.mxu0 %v1380_v38  ;;  %v1395_v47 = vld [vmem:[%s1932_s1 + $0x3c8] ss:$16 sps:$4 sm:$0xff]   ;;  %v1403_v49 = vld [vmem:[%s1932_s1 + $0x3ac] ss:$16 sps:$4 sm:$0xff]   ;;  %s1440_s13 = scalar_lea.vmem %s1087_s12, 2048 }
  0x60   :  { %1027 = vmatpush1.bf16.msra.mxu1 %v1383_v39  ;;  %975 = vmatprep.subr.bf16.mxu0 %v1388_v40  ;;  %v1398_v50 = vld [vmem:[%s1932_s1 + $0x1a8] ss:$16 sps:$4 sm:$0xff]   ;;  %v1406_v52 = vld [vmem:[%s1932_s1 + $0x18c] ss:$16 sps:$4 sm:$0xff]   ;;  %v156_v15 = vrot.slane %v151_v13, %v155_v12  ;;  %p1441_p0 = scmp.ne.s32.totalorder %s1087_s12, %s1440_s13  ;;  %p1446_p2 = scmp.lt.s32.totalorder %s1440_s13, %s1440_s13 }
  0x61   :  { %1028 = vmatprep.subr.bf16.mxu1 %v1391_v41  ;;  %v1401_v51 = vld [vmem:[%s1932_s1 + $0x3a8] ss:$16 sps:$4 sm:$0xff]   ;;  %v1409_v53 = vld [vmem:[%s1932_s1 + $0x38c] ss:$16 sps:$4 sm:$0xff]  }
  0x62   :  { %v1404_v54 = vld [vmem:[%s1932_s1 + $0x188] ss:$16 sps:$4 sm:$0xff]   ;;  %v1412_v56 = vld [vmem:[%s1932_s1 + $0x16c] ss:$16 sps:$4 sm:$0xff]   ;;  %p1447_p3 = por %p1446_p2, %p1445_p1 }
  0x63   :  { %976 = vmatpush2.bf16.msra.mxu0 %v1386_v42  ;;  %v1407_v55 = vld [vmem:[%s1932_s1 + $0x388] ss:$16 sps:$4 sm:$0xff]   ;;  %v1415_v57 = vld [vmem:[%s1932_s1 + $0x36c] ss:$16 sps:$4 sm:$0xff]  }
  0x64   :  { %1029 = vmatpush2.bf16.msra.mxu1 %v1389_v43  ;;  %977 = vmatprep.subr.bf16.mxu0 %v1394_v44  ;;  %v1410_v58 = vld [vmem:[%s1932_s1 + $0x168] ss:$16 sps:$4 sm:$0xff]   ;;  %v1424_v60 = vld [vmem:[%s1932_s1 + $0x14c] ss:$16 sps:$4 sm:$0xff]   ;;  %p1448_p4 = pnand %p1447_p3, %p1441_p0 }
  0x65   :  { %1030 = vmatprep.subr.bf16.mxu1 %v1397_v45  ;;  %v1413_v59 = vld [vmem:[%s1932_s1 + $0x368] ss:$16 sps:$4 sm:$0xff]   ;;  %v1427_v61 = vld [vmem:[%s1932_s1 + $0x34c] ss:$16 sps:$4 sm:$0xff]  }
  0x66   :  { %v1422_v62 = vld [vmem:[%s1932_s1 + $0x148] ss:$16 sps:$4 sm:$0xff]   ;;  %v1430_v0 = vld [vmem:[%s1932_s1 + $0x12c] ss:$16 sps:$4 sm:$0xff]  }
  0x67   :  { %978 = vmatpush2.bf16.msra.mxu0 %v1392_v46  ;;  %v1425_v63 = vld [vmem:[%s1932_s1 + $0x348] ss:$16 sps:$4 sm:$0xff]   ;;  %v1433_v1 = vld [vmem:[%s1932_s1 + $0x32c] ss:$16 sps:$4 sm:$0xff]  }
  0x68   :  { %1031 = vmatpush2.bf16.msra.mxu1 %v1395_v47  ;;  %979 = vmatprep.subr.bf16.mxu0 %v1400_v48  ;;  %v1428_v2 = vld [vmem:[%s1932_s1 + $0x128] ss:$16 sps:$4 sm:$0xff]   ;;  %v1436_v6 = vld [vmem:[%s1932_s1 + $0x10c] ss:$16 sps:$4 sm:$0xff]   ;;  %v163_v47 = vsub.s32 2, %v154_v11  ;;  %v167_v48 = vsub.s32 3, %v154_v11 }
  0x69   :  { %1032 = vmatprep.subr.bf16.mxu1 %v1403_v49  ;;  %v1431_v3 = vld [vmem:[%s1932_s1 + $0x328] ss:$16 sps:$4 sm:$0xff]   ;;  %v1439_v7 = vld [vmem:[%s1932_s1 + $0x30c] ss:$16 sps:$4 sm:$0xff]  }
  0x6a   :  { %v1434_v8 = vld [vmem:[%s1932_s1 + $0x108] ss:$16 sps:$4 sm:$0xff]   ;;  %v164_v49 = vrot.slane %v151_v13, %v163_v47 }
  0x6b   :  { %980 = vmatpush2.bf16.msra.mxu0 %v1398_v50  ;;  %v1437_v9 = vld [vmem:[%s1932_s1 + $0x308] ss:$16 sps:$4 sm:$0xff]   ;;  %v168_v50 = vrot.slane %v151_v13, %v167_v48 }
  0x6c   :  { %1033 = vmatpush2.bf16.msra.mxu1 %v1401_v51  ;;  %981 = vmatprep.subr.bf16.mxu0 %v1406_v52 }
  0x6d   :  { %1034 = vmatprep.subr.bf16.mxu1 %v1409_v53 }
  0x6f   :  { %982 = vmatpush2.bf16.msra.mxu0 %v1404_v54 }
  0x70   :  { %1035 = vmatpush2.bf16.msra.mxu1 %v1407_v55  ;;  %983 = vmatprep.subr.bf16.mxu0 %v1412_v56 }
  0x71   :  { %1036 = vmatprep.subr.bf16.mxu1 %v1415_v57 }
  0x73   :  { %984 = vmatpush2.bf16.msra.mxu0 %v1410_v58 }
  0x74   :  { %1037 = vmatpush2.bf16.msra.mxu1 %v1413_v59  ;;  %985 = vmatprep.subr.bf16.mxu0 %v1424_v60 }
  0x75   :  { %1038 = vmatprep.subr.bf16.mxu1 %v1427_v61 }
  0x77   :  { %986 = vmatpush2.bf16.msra.mxu0 %v1422_v62 }
  0x78   :  { %1039 = vmatpush2.bf16.msra.mxu1 %v1425_v63  ;;  %987 = vmatprep.subr.bf16.mxu0 %v1430_v0 }
  0x79   :  { %1040 = vmatprep.subr.bf16.mxu1 %v1433_v1 }
  0x7b   :  { %988 = vmatpush2.bf16.msra.mxu0 %v1428_v2 }
  0x7c   :  { %1041 = vmatpush2.bf16.msra.mxu1 %v1431_v3  ;;  %989 = vmatprep.subr.bf16.mxu0 %v1436_v6 }
  0x7d   :  { %1042 = vmatprep.subr.bf16.mxu1 %v1439_v7 }
  0x7f   :  { %990 = vmatpush2.bf16.msra.mxu0 %v1434_v8 }
  0x80   :  { %1043 = vmatpush2.bf16.msra.mxu1 %v1437_v9 }
  0x82   :  { %992 = vmatmul.mubr.bf16.vlgmr.msra.gmra.mxu0 %v1698_v4  ;;  %v160_v4 = vrot.slane %v151_v13, %v159_v14 }
  0x83   :  { %1045 = vmatmul.mubr.bf16.vlgmr.msra.gmra.mxu1 %v1703_v5  ;;  %1001 = vmatprep.mubr.bf16.mxu0 %v1770_v26 }
  0x84   :  { %1054 = vmatprep.mubr.bf16.mxu1 %v1784_v29 }
  0x8a   :  { %1002 = vmatmul.mubr.bf16.gmra.mxu0 %v1775_v27 }
  0x8b   :  { %1055 = vmatmul.mubr.bf16.gmra.mxu1 %v1793_v31 }
 0x102   :  { %v887_v16 = vpop.f32.mrf.mxu0 }
 0x103   :  { %v940_v5 = vpop.f32.mrf.mxu1  ;;  %v888_v17 = vadd.f32 %v887_v16, %v156_v15 }
 0x104   :  { %v889_v18 = vpop.f32.mrf.mxu0 }
 0x105   :  { %v942_v19 = vpop.f32.mrf.mxu1  ;;  %v941_v20 = vadd.f32 %v940_v5, %v888_v17  ;;  %v890_v21 = vadd.f32 %v889_v18, %v160_v4 }
 0x106   :  { %v891_v22 = vpop.f32.mrf.mxu0 }
 0x107   :  { %v944_v23 = vpop.f32.mrf.mxu1  ;;  %1065 = vst [vmem:[#allocation2] sm:$0xff] %v941_v20  ;;  %v943_v24 = vadd.f32 %v942_v19, %v890_v21  ;;  %v892_v25 = vadd.f32 %v891_v22, %v156_v15 }
 0x108   :  { %v893_v26 = vpop.f32.mrf.mxu0 }
 0x109   :  { %1066 = vst [vmem:[#allocation2 + $0x8] sm:$0xff] %v943_v24  ;;  %v945_v27 = vadd.f32 %v944_v23, %v892_v25  ;;  %v894_v28 = vadd.f32 %v893_v26, %v160_v4  ;;  %v946_v29 = vpop.f32.mrf.mxu1 }
 0x10a   :  { %v897_v31 = vpop.f32.mrf.mxu0 }
 0x10b   :  { %1069 = vst [vmem:[#allocation2 + $0x20] sm:$0xff] %v945_v27  ;;  %v947_v30 = vadd.f32 %v946_v29, %v894_v28  ;;  %v898_v32 = vadd.f32 %v897_v31, %v156_v15 }
 0x10c   :  { %v899_v33 = vpop.f32.mrf.mxu0 }
 0x10d   :  { %1070 = vst [vmem:[#allocation2 + $0x28] sm:$0xff] %v947_v30  ;;  %v900_v34 = vadd.f32 %v899_v33, %v160_v4  ;;  %v950_v35 = vpop.f32.mrf.mxu1 }
 0x10e   :  { %v901_v36 = vpop.f32.mrf.mxu0  ;;  %v951_v37 = vadd.f32 %v950_v35, %v898_v32 }
 0x10f   :  { %v902_v38 = vadd.f32 %v901_v36, %v156_v15  ;;  %v952_v39 = vpop.f32.mrf.mxu1 }
 0x110   :  { %v903_v40 = vpop.f32.mrf.mxu0  ;;  %1073 = vst [vmem:[#allocation2 + $0x40] sm:$0xff] %v951_v37  ;;  %v953_v41 = vadd.f32 %v952_v39, %v900_v34 }
 0x111   :  { %v904_v42 = vadd.f32 %v903_v40, %v160_v4  ;;  %v954_v43 = vpop.f32.mrf.mxu1 }
 0x112   :  { %1074 = vst [vmem:[#allocation2 + $0x48] sm:$0xff] %v953_v41  ;;  %v955_v44 = vadd.f32 %v954_v43, %v902_v38 }
 0x113   :  { %v956_v45 = vpop.f32.mrf.mxu1 }
 0x114   :  { %1077 = vst [vmem:[#allocation2 + $0x60] sm:$0xff] %v955_v44  ;;  %v957_v46 = vadd.f32 %v956_v45, %v904_v42 }
 0x116   :  { %1078 = vst [vmem:[#allocation2 + $0x68] sm:$0xff] %v957_v46 }
 0x142   :  { %v993_v51 = vpop.f32.mrf.mxu0 }
 0x143   :  { %v1046_v52 = vpop.f32.mrf.mxu1  ;;  %v994_v53 = vadd.f32 %v993_v51, %v164_v49 }
 0x144   :  { %v995_v54 = vpop.f32.mrf.mxu0 }
 0x145   :  { %v1048_v55 = vpop.f32.mrf.mxu1  ;;  %v1047_v56 = vadd.f32 %v1046_v52, %v994_v53  ;;  %v996_v57 = vadd.f32 %v995_v54, %v168_v50 }
 0x146   :  { %v997_v58 = vpop.f32.mrf.mxu0 }
 0x147   :  { %v1050_v59 = vpop.f32.mrf.mxu1  ;;  %1067 = vst [vmem:[#allocation2 + $0x10] sm:$0xff] %v1047_v56  ;;  %v1049_v60 = vadd.f32 %v1048_v55, %v996_v57  ;;  %v998_v61 = vadd.f32 %v997_v58, %v164_v49 }
 0x148   :  { %v999_v62 = vpop.f32.mrf.mxu0 }
 0x149   :  { %v1052_v63 = vpop.f32.mrf.mxu1  ;;  %1068 = vst [vmem:[#allocation2 + $0x18] sm:$0xff] %v1049_v60  ;;  %v1051_v0 = vadd.f32 %v1050_v59, %v998_v61  ;;  %v1000_v1 = vadd.f32 %v999_v62, %v168_v50 }
 0x14a   :  { %v1003_v2 = vpop.f32.mrf.mxu0 }
 0x14b   :  { %v1056_v3 = vpop.f32.mrf.mxu1  ;;  %1071 = vst [vmem:[#allocation2 + $0x30] sm:$0xff] %v1051_v0  ;;  %v1053_v6 = vadd.f32 %v1052_v63, %v1000_v1  ;;  %v1004_v7 = vadd.f32 %v1003_v2, %v164_v49 }
 0x14c   :  { %v1005_v8 = vpop.f32.mrf.mxu0 }
 0x14d   :  { %v1058_v9 = vpop.f32.mrf.mxu1  ;;  %1072 = vst [vmem:[#allocation2 + $0x38] sm:$0xff] %v1053_v6  ;;  %v1057_v10 = vadd.f32 %v1056_v3, %v1004_v7  ;;  %v1006_v11 = vadd.f32 %v1005_v8, %v168_v50 }
 0x14e   :  { %v1007_v12 = vpop.f32.mrf.mxu0 }
 0x14f   :  { %v1060_v13 = vpop.f32.mrf.mxu1  ;;  %1075 = vst [vmem:[#allocation2 + $0x50] sm:$0xff] %v1057_v10  ;;  %v1059_v14 = vadd.f32 %v1058_v9, %v1006_v11  ;;  %v1008_v15 = vadd.f32 %v1007_v12, %v164_v49 }
 0x150   :  { %v1009_v4 = vpop.f32.mrf.mxu0 }
 0x151   :  { %1076 = vst [vmem:[#allocation2 + $0x58] sm:$0xff] %v1059_v14  ;;  %v1061_v16 = vadd.f32 %v1060_v13, %v1008_v15  ;;  %v1010_v5 = vadd.f32 %v1009_v4, %v168_v50  ;;  %v1062_v17 = vpop.f32.mrf.mxu1 }
 0x153   :  { %1079 = vst [vmem:[#allocation2 + $0x70] sm:$0xff] %v1061_v16  ;;  %v1063_v18 = vadd.f32 %v1062_v17, %v1010_v5 }
 0x155   :  { %1080 = vst [vmem:[#allocation2 + $0x78] sm:$0xff] %v1063_v18 }
 0x156   :  { %1451 = shalt.err (!%p1448_p4)
}
 0x157   :  { %s1463_s14 = smov 512   ;;  %s1464_s15 = smov 32  }
 0x158   :  { %1092 = dma.vmem_to_hbm [thread:$0]  %s1087_s12, 2048, %s1934_s3, [#allocation3], %s1463_s14, %s1463_s14, %s1464_s15  }
 0x159   :  { %1460 = dma.done.wait [#allocation3], 2048  }
 0x15a   :  { %1461 = vsyncadd [#allocation3], 4294965248 }
 0x15b   :  { %1096 = vsyncpa [#allocation3], 1 }

</bundles_post_ra>
